<compile_context>
chip_gen: v7x
topology: tpu7x:2x2x1
jax: 0.10.0
libtpu: 0.0.40
codegen_flags: <defaults>
</compile_context>

<pallas_src>
import functools

import jax
import jax.numpy as jnp
import numpy as np
from jax import lax
from jax.experimental import pallas as pl
from jax.experimental.pallas import tpu as pltpu

EPS = 2.220446049250313e-16  # np.finfo(float).eps, as in the PyTorch module
HP = 128                     # padded hidden width (one full lane tile)
EP = 128                     # padded event width (lane-dense lambda output)


def _softplus(x, beta):
    # matches F.softplus(x, beta) incl. the linear threshold at beta*x > 20
    bx = beta * x
    return jnp.where(bx > 20.0, x, jnp.log(1.0 + jnp.exp(jnp.minimum(bx, 20.0))) / beta)


def nhp_kernel(emb_ref, aux_ref, wcx_ref, wch_ref, bc_ref, wl_ref,
               lam_ref, stats_ref,
               gx_sc, hb_sc,
               *, T1, BB, beta, eps, event_num):
    Hp = wch_ref.shape[0]          # 128
    Ep = wl_ref.shape[1]           # 128
    NB = T1 * BB                   # rows of this block, ordered r = t*BB + b_local

    # ---- hoisted input projection + bias: ONE MXU call covering every timestep ----
    gx_sc[...] = (jnp.dot(emb_ref[...], wcx_ref[...],
                          preferred_element_type=jnp.float32) + bc_ref[...])

    wch = wch_ref[...]             # (Hp, 7*Hp) bf16, hidden -> gates
    aux = aux_ref[...]             # (NB, 8) f32
    # aux columns: 0 dt_next, 1 dt_sample, 2 mask_complete, 3 integral weight, 4 target

    h = jnp.zeros((BB, Hp), jnp.float32)    # init_h
    c = jnp.zeros((BB, Hp), jnp.float32)    # init_c
    cb = jnp.zeros((BB, Hp), jnp.float32)   # init_cb

    # ---- serial recurrence (unrolled at T1=9; use fori_loop / a time grid past ~32) ----
    # Gate order follows the Mei & Eisner CTLSTM: (i, f, o, z, i_bar, f_bar, delta).
    for t in range(T1):
        r0, r1 = t * BB, (t + 1) * BB
        gates = gx_sc[r0:r1, :] + jnp.dot(h.astype(jnp.bfloat16), wch,
                                          preferred_element_type=jnp.float32)
        # each gate occupies its own 128-lane block -> vreg-aligned slices
        gi  = jax.nn.sigmoid(gates[:, 0 * Hp:1 * Hp])
        gf  = jax.nn.sigmoid(gates[:, 1 * Hp:2 * Hp])
        go  = jax.nn.sigmoid(gates[:, 2 * Hp:3 * Hp])
        gz  = jnp.tanh(      gates[:, 3 * Hp:4 * Hp])
        gib = jax.nn.sigmoid(gates[:, 4 * Hp:5 * Hp])
        gfb = jax.nn.sigmoid(gates[:, 5 * Hp:6 * Hp])
        gd  = _softplus(     gates[:, 6 * Hp:7 * Hp], beta)

        cell = gf * c + gi * gz
        cbar = gfb * cb + gib * gz

        dt_t  = aux[r0:r1, 0:1]    # (BB,1) time to next observed event -> lane splat
        dts_t = aux[r0:r1, 1:2]    # (BB,1) Monte-Carlo sampled dt

        # decay to the next observed event (hidden_t_ip1_minus) - feeds the recurrence
        c_next = cbar + (cell - cbar) * jnp.exp(-gd * dt_t)
        h_next = go * jnp.tanh(c_next)

        # sampled decay folded into the loop: off the dependence chain -> ~free filler
        c_s = cbar + (cell - cbar) * jnp.exp(-gd * dts_t)
        h_s = go * jnp.tanh(c_s)

        # one bf16 staging scratch feeds the lambda matmul directly (cast at store time)
        hb_sc[r0:r1, :] = h_next.astype(jnp.bfloat16)
        hb_sc[NB + r0:NB + r1, :] = h_s.astype(jnp.bfloat16)

        c, cb, h = c_next, cbar, h_next

    # ---- batched epilogue: one intensity matmul for observed + Monte-Carlo paths ----
    lam = _softplus(jnp.dot(hb_sc[...], wl_ref[...],
                            preferred_element_type=jnp.float32), beta)
    lam_obs = lam[:NB, :]                  # (NB, Ep) f32
    lam_s = lam[NB:, :]                    # (NB, Ep) f32
    lam_ref[...] = lam_s.astype(lam_ref.dtype)       # single lane-dense bf16 store

    mc  = aux[:, 2:3]                      # mask_complete
    iw  = aux[:, 3:4]                      # mask_s * duration / sum_t mask_s
    tgt = aux[:, 4:5].astype(jnp.int32)    # target event id

    eid = lax.broadcasted_iota(jnp.int32, (NB, Ep), 1)
    loglam = jnp.log(lam_obs + eps)
    picked = jnp.sum(jnp.where(eid == tgt, loglam, 0.0), axis=1, keepdims=True)    # (NB,1)
    # only the first `event_num` lanes are real (rest is weight padding)
    lam_s_sum = jnp.sum(jnp.where(eid < event_num, lam_s, 0.0), axis=1, keepdims=True)

    contrib = picked * mc - lam_s_sum * iw            # log-lik minus integral, per row
    obj_p = -jnp.sum(contrib, axis=0, keepdims=True)  # (1,1) per-block partial
    nev_p = jnp.sum(mc, axis=0, keepdims=True)        # (1,1)

    # pack both partial scalars into lanes 0/1 of one (8,128)-aligned stats tile
    lane = lax.broadcasted_iota(jnp.int32, (8, 128), 1)
    stats_ref[...] = jnp.where(lane == 0, obj_p, jnp.where(lane == 1, nev_p, 0.0))


def neural_hawkes_forward(event, dtime, duration, dtime_sampling, mask_sampling,
                          emb_table, wc_t, bc, wl_t, *, beta, event_num):
    """Glue: embedding gather, padding / block packing, pallas_call, unpadding."""
    B, M, T_plus_2 = event.shape
    assert M == 1, "num_groups must be 1 (module asserts)"
    T1 = T_plus_2 - 1
    H = emb_table.shape[1]
    E = wl_t.shape[1]
    # the module's [:256*T_sample] view is only an identity reshape when T_sample==T+1
    assert dtime_sampling.shape[2] == T1
    Hp, Ep = HP, EP

    # batch blocking: BB grows toward 128 with B (fills the MXU per step); >=2 blocks
    # spread over both TensorCores on v7x via the "parallel" grid axis.
    B8 = ((B + 7) // 8) * 8
    BB = min(B8, 128)
    n_bblk = -(-B8 // BB)
    Bp = n_bblk * BB
    NB = T1 * BB

    # ---- weight padding: each gate in its own 128-lane block, H/E padded to 128 ----
    def pad_gate_blocks(w):                # w: (H, 7H) -> (Hp, 7*Hp), zeros elsewhere
        return jnp.concatenate(
            [jnp.pad(w[:, k * H:(k + 1) * H], ((0, Hp - w.shape[0]), (0, Hp - H)))
             for k in range(7)], axis=1)

    wcx = pad_gate_blocks(wc_t[:H, :]).astype(jnp.bfloat16)        # (Hp, 7*Hp)
    wch = pad_gate_blocks(wc_t[H:, :]).astype(jnp.bfloat16)        # (Hp, 7*Hp)
    bcp = jnp.concatenate(
        [jnp.pad(bc[:, k * H:(k + 1) * H], ((0, 0), (0, Hp - H))) for k in range(7)],
        axis=1).astype(jnp.float32)                                # (1, 7*Hp)
    wlp = jnp.pad(wl_t, ((0, Hp - H), (0, Ep - E))).astype(jnp.bfloat16)   # (Hp, Ep)

    # ---- inputs packed per batch block: rows r = t*BB + b_local ----
    def to_blocks(x_bt):                   # (B, T1) -> (n_bblk, NB)
        x = jnp.pad(x_bt, ((0, Bp - B), (0, 0)))
        x = x.reshape(n_bblk, BB, T1)
        return jnp.transpose(x, (0, 2, 1)).reshape(n_bblk, NB)

    ev = event[:, 0, :]
    emb = emb_table[ev[:, :T1]]                                     # (B, T1, H)
    emb = jnp.pad(emb, ((0, Bp - B), (0, 0), (0, Hp - H)))          # (Bp, T1, Hp)
    emb = emb.reshape(n_bblk, BB, T1, Hp).transpose(0, 2, 1, 3)
    emb = emb.reshape(n_bblk, NB, Hp).astype(jnp.bfloat16)

    tgt_raw = ev[:, 1:]
    mask_c = (tgt_raw < event_num).astype(jnp.float32)              # (B, T1)
    target = jnp.where(tgt_raw >= event_num, 0, tgt_raw).astype(jnp.float32)
    ms_bt = mask_sampling[:, 0, :].astype(jnp.float32)              # (B, T1)
    dur_b = duration[:, 0].astype(jnp.float32)                      # (B,)
    # fold the per-batch normalisation of the MC integral into a per-row weight so the
    # kernel only needs one flat reduction (mathematically identical to the module);
    # guard the division against an all-zero sampling-mask row (reference would NaN).
    ms_sum = jnp.sum(ms_bt, axis=1)
    iw_bt = ms_bt * (dur_b / jnp.where(ms_sum == 0.0, 1.0, ms_sum))[:, None]

    aux = jnp.stack([to_blocks(dtime[:, 0, 1:]),                    # dt to next event
                     to_blocks(dtime_sampling[:, 0, :]),            # sampled dt
                     to_blocks(mask_c),
                     to_blocks(iw_bt),
                     to_blocks(target)], axis=-1).astype(jnp.float32)   # (n_bblk, NB, 5)
    aux = jnp.pad(aux, ((0, 0), (0, 0), (0, 8 - aux.shape[-1])))        # (n_bblk, NB, 8)

    # ---- explicit VMEM budget (do not rely on the scoped default, esp. on v7x) ----
    est = (2 * NB * Hp * 2 + 2 * NB * 8 * 4                 # emb + aux (double-buffered)
           + 2 * 2 * (Hp * 7 * Hp) * 2 + 2 * 7 * Hp * 4     # wcx + wch + bias
           + 2 * Hp * Ep * 2                                # wl
           + 2 * NB * Ep * 2 + 2 * 8 * 128 * 4              # lam + stats outputs
           + NB * 7 * Hp * 4 + 2 * NB * Hp * 2)             # gx (f32) + hb (bf16) scratch
    vmem_limit = int(min(max(2 * est, 16 << 20), 48 << 20))

    kernel = functools.partial(nhp_kernel, T1=T1, BB=BB, beta=beta, eps=EPS,
                               event_num=event_num)
    lam_pad, stats = pl.pallas_call(
        kernel,
        grid=(n_bblk,),
        out_shape=(jax.ShapeDtypeStruct((n_bblk, NB, Ep), jnp.bfloat16),
                   jax.ShapeDtypeStruct((n_bblk, 8, 128), jnp.float32)),
        in_specs=[
            pl.BlockSpec((None, NB, Hp), lambda i: (i, 0, 0)),      # emb (per block)
            pl.BlockSpec((None, NB, 8), lambda i: (i, 0, 0)),       # aux (per block)
            pl.BlockSpec((Hp, 7 * Hp), lambda i: (0, 0)),           # wcx (shared)
            pl.BlockSpec((Hp, 7 * Hp), lambda i: (0, 0)),           # wch (shared)
            pl.BlockSpec((1, 7 * Hp), lambda i: (0, 0)),            # bias (shared)
            pl.BlockSpec((Hp, Ep), lambda i: (0, 0)),               # wl (shared)
        ],
        out_specs=(
            pl.BlockSpec((None, NB, Ep), lambda i: (i, 0, 0)),      # sampled lambda
            pl.BlockSpec((None, 8, 128), lambda i: (i, 0, 0)),      # packed obj/nev
        ),
        scratch_shapes=[
            pltpu.VMEM((NB, 7 * Hp), jnp.float32),    # hoisted input-projection gates
            pltpu.VMEM((2 * NB, Hp), jnp.bfloat16),   # hidden-next ++ sampled-hidden
        ],
        compiler_params=pltpu.CompilerParams(
            dimension_semantics=("parallel",),        # independent batch blocks (v7x 2TC)
            vmem_limit_bytes=vmem_limit),
    )(emb, aux, wcx, wch, bcp, wlp)

    obj = jnp.sum(stats[:, 0, 0])
    nev = jnp.sum(stats[:, 0, 1])

    lam = lam_pad.astype(jnp.float32).reshape(n_bblk, T1, BB, Ep)
    lam = jnp.transpose(lam, (0, 2, 1, 3)).reshape(Bp, T1, Ep)[:B, :, :E]
    lam_samp = lam[:, None]                                         # (B, 1, T1, E)
    return obj, nev, lam_samp


# ---------------- pure-JAX reference (mirrors the PyTorch forward) -------------
def ref_forward(event, dtime, duration, dtime_sampling, mask_sampling,
                emb_table, wc_t, bc, wl_t, beta, event_num):
    B, M, T2 = event.shape
    H = emb_table.shape[1]
    h = jnp.zeros((B, M, H)); c = jnp.zeros((B, M, H)); cb = jnp.zeros((B, M, H))
    cells, cbars, gds, gos, hiddens = [], [], [], [], []
    for i in range(T2 - 1):
        x = emb_table[event[:, :, i]]
        gates = jnp.concatenate([x, h], axis=-1) @ wc_t + bc[0]
        gi, gf, go, gz, gib, gfb, gd = jnp.split(gates, 7, axis=-1)
        gi, gf, go = jax.nn.sigmoid(gi), jax.nn.sigmoid(gf), jax.nn.sigmoid(go)
        gz, gib, gfb = jnp.tanh(gz), jax.nn.sigmoid(gib), jax.nn.sigmoid(gfb)
        gd = _softplus(gd, beta)
        cell = gf * c + gi * gz
        cbar = gfb * cb + gib * gz
        dt = dtime[:, :, i + 1][..., None]
        c_next = cbar + (cell - cbar) * jnp.exp(-gd * dt)
        h_next = go * jnp.tanh(c_next)
        cells.append(cell); cbars.append(cbar); gds.append(gd); gos.append(go); hiddens.append(h_next)
        c, cb, h = c_next, cbar, h_next
    all_cell = jnp.stack(cells, 2); all_cbar = jnp.stack(cbars, 2)
    all_gd = jnp.stack(gds, 2); all_go = jnp.stack(gos, 2); all_hidden = jnp.stack(hiddens, 2)

    tgt_raw = event[:, :, 1:]
    mask_c = (tgt_raw < event_num).astype(jnp.float32)
    target = jnp.where(tgt_raw >= event_num, 0, tgt_raw)

    # T_sample == T+1, so the module's [:256*T_sample] view is an identity reshape
    dts = dtime_sampling[..., None]
    c_s = all_cbar + (all_cell - all_cbar) * jnp.exp(-all_gd * dts)
    h_s = all_go * jnp.tanh(c_s)

    all_lambda = _softplus(all_hidden @ wl_t, beta)
    log_lambda = jnp.log(all_lambda + EPS)
    loglam_t = jnp.take_along_axis(log_lambda, target[..., None], axis=3)[..., 0] * mask_c
    lam_samp = _softplus(h_s @ wl_t, beta)
    lam_mean = jnp.sum(jnp.sum(lam_samp, axis=3) * mask_sampling, axis=2) / jnp.sum(mask_sampling, axis=2)
    integral = lam_mean * duration
    objective = -jnp.sum(jnp.sum(loglam_t, axis=2) - integral)
    num_events = jnp.sum(mask_c)
    return objective, num_events, lam_samp


if __name__ == "__main__":
    key = jax.random.PRNGKey(0)
    B, M = 4, 1                    # num_groups must be 1 (module asserts)
    event_num, group_num = 5, 1
    H = 32
    T_plus_2 = 10
    T1 = T_plus_2 - 1              # T+1 = 9
    T_sample = T1                  # required so the module's view() slicing is consistent
    beta = 1.0
    vocab = event_num + group_num + 2

    k = jax.random.split(key, 8)
    # deterministic synthetic parameters (shapes from __init__; not a checkpoint)
    emb_table = 0.1 * jax.random.normal(k[0], (vocab, H), jnp.float32)          # nn.Embedding
    wc_t = 0.1 * jax.random.normal(k[1], (2 * H, 7 * H), jnp.float32)           # CTLSTM Linear(2H,7H)^T
    bc = 0.1 * jax.random.normal(k[2], (1, 7 * H), jnp.float32)
    wl_t = 0.1 * jax.random.normal(k[3], (H, event_num), jnp.float32)           # hidden_lambda^T (no bias)

    # inputs:  event/dtime (B,M,T+2), duration (B,M), dtime_sampling/mask (B,M,T_sample)
    mid = jax.random.randint(k[4], (B, M, T_plus_2 - 2), 0, event_num)
    bos = jnp.full((B, M, 1), event_num, jnp.int32)                 # idx_BOS[0]
    eos = jnp.full((B, M, 1), event_num + group_num, jnp.int32)     # idx_EOS
    event = jnp.concatenate([bos, mid, eos], axis=2).astype(jnp.int32)
    dtime = jax.random.uniform(k[5], (B, M, T_plus_2), jnp.float32, 0.1, 1.0)
    dtime = dtime.at[:, :, 0].set(0.0)
    duration = jnp.sum(dtime, axis=2)
    dtime_sampling = jax.random.uniform(k[6], (B, M, T_sample), jnp.float32, 0.0, 1.0)
    mask_sampling = jnp.ones((B, M, T_sample), jnp.float32)
    # TODO(synk): `feats` and `index_of_hidden_sampling` are unused by the original
    # forward (the gather on index_of_hidden_sampling is commented out upstream).

    obj, nev, lam_samp = neural_hawkes_forward(
        event, dtime, duration, dtime_sampling, mask_sampling,
        emb_table, wc_t, bc, wl_t, beta=beta, event_num=event_num)
    jax.block_until_ready((obj, nev, lam_samp))

    # correctness check against a plain-JAX (f32) reference of the PyTorch forward
    obj_r, nev_r, lam_r = ref_forward(event, dtime, duration, dtime_sampling, mask_sampling,
                                      emb_table, wc_t, bc, wl_t, beta, event_num)
    np.testing.assert_allclose(np.asarray(obj), np.asarray(obj_r), rtol=2e-2, atol=2e-2)
    np.testing.assert_allclose(np.asarray(nev), np.asarray(nev_r), rtol=1e-5, atol=1e-5)
    np.testing.assert_allclose(np.asarray(lam_samp), np.asarray(lam_r), rtol=2e-2, atol=2e-2)

    print("KERNEL_OK")
</pallas_src>

<mosaic_0001>
module attributes {stable_mosaic.version = 11 : i64} {
  func.func @nhp_kernel(%arg0: i32, %arg1: memref<1x72x128xbf16, #tpu.memory_space<vmem>>, %arg2: memref<1x72x8xf32, #tpu.memory_space<vmem>>, %arg3: memref<128x896xbf16, #tpu.memory_space<vmem>>, %arg4: memref<128x896xbf16, #tpu.memory_space<vmem>>, %arg5: memref<1x896xf32, #tpu.memory_space<vmem>>, %arg6: memref<128x128xbf16, #tpu.memory_space<vmem>>, %arg7: memref<1x72x128xbf16, #tpu.memory_space<vmem>>, %arg8: memref<1x8x128xf32, #tpu.memory_space<vmem>>, %arg9: memref<72x896xf32, #tpu.memory_space<vmem>>, %arg10: memref<144x128xbf16, #tpu.memory_space<vmem>>) attributes {dimension_semantics = [#tpu.dimension_semantics<parallel>], iteration_bounds = array<i64: 1>, scalar_prefetch = 0 : i64, scratch_operands = 2 : i64, tpu.core_type = #tpu.core_type<tc>, window_params = [{transform_indices = @transform_0, window_bounds = array<i64: 1, 72, 128>}, {transform_indices = @transform_1, window_bounds = array<i64: 1, 72, 8>}, {pipeline_mode = #tpu.pipeline_mode<synchronous>, transform_indices = @transform_2, window_bounds = array<i64: 128, 896>}, {pipeline_mode = #tpu.pipeline_mode<synchronous>, transform_indices = @transform_3, window_bounds = array<i64: 128, 896>}, {pipeline_mode = #tpu.pipeline_mode<synchronous>, transform_indices = @transform_4, window_bounds = array<i64: 1, 896>}, {pipeline_mode = #tpu.pipeline_mode<synchronous>, transform_indices = @transform_5, window_bounds = array<i64: 128, 128>}, {transform_indices = @transform_6, window_bounds = array<i64: 1, 72, 128>}, {transform_indices = @transform_7, window_bounds = array<i64: 1, 8, 128>}]} {
    %c0 = arith.constant 0 : index
    %c0_0 = arith.constant 0 : index
    %c0_1 = arith.constant 0 : index
    %0 = vector.load %arg1[%c0, %c0_0, %c0_1] : memref<1x72x128xbf16, #tpu.memory_space<vmem>>, vector<1x72x128xbf16>
    %1 = vector.shape_cast %0 : vector<1x72x128xbf16> to vector<72x128xbf16>
    %c0_2 = arith.constant 0 : index
    %c0_3 = arith.constant 0 : index
    %2 = vector.load %arg3[%c0_2, %c0_3] : memref<128x896xbf16, #tpu.memory_space<vmem>>, vector<128x896xbf16>
    %cst = arith.constant dense<0.000000e+00> : vector<72x896xf32>
    %3 = tpu.matmul %1, %2, %cst {dimension_numbers = #tpu.dot_dimension_numbers<[1], [0], [0], [1], [0, 0, 1, 1], [], []>} : vector<72x128xbf16>, vector<128x896xbf16>, vector<72x896xf32> -> vector<72x896xf32>
    %c0_4 = arith.constant 0 : index
    %c0_5 = arith.constant 0 : index
    %4 = vector.load %arg5[%c0_4, %c0_5] : memref<1x896xf32, #tpu.memory_space<vmem>>, vector<1x896xf32>
    %5 = vector.broadcast %4 : vector<1x896xf32> to vector<72x896xf32>
    %6 = arith.addf %3, %5 : vector<72x896xf32>
    %c0_6 = arith.constant 0 : index
    %c0_7 = arith.constant 0 : index
    %7 = vector.load %arg9[%c0_6, %c0_7] : memref<72x896xf32, #tpu.memory_space<vmem>>, vector<72x896xf32>
    tpu.vector_store %arg9[%c0_6, %c0_7], %6 {strides = array<i32>} : memref<72x896xf32, #tpu.memory_space<vmem>>, vector<72x896xf32>,
    %c0_8 = arith.constant 0 : index
    %c0_9 = arith.constant 0 : index
    %8 = vector.load %arg4[%c0_8, %c0_9] : memref<128x896xbf16, #tpu.memory_space<vmem>>, vector<128x896xbf16>
    %c0_10 = arith.constant 0 : index
    %c0_11 = arith.constant 0 : index
    %c0_12 = arith.constant 0 : index
    %9 = vector.load %arg2[%c0_10, %c0_11, %c0_12] : memref<1x72x8xf32, #tpu.memory_space<vmem>>, vector<1x72x8xf32>
    %10 = vector.shape_cast %9 : vector<1x72x8xf32> to vector<72x8xf32>
    %cst_13 = arith.constant 0.000000e+00 : f32
    %11 = vector.broadcast %cst_13 : f32 to vector<8x128xf32>
    %cst_14 = arith.constant 0.000000e+00 : f32
    %12 = vector.broadcast %cst_14 : f32 to vector<8x128xf32>
    %cst_15 = arith.constant 0.000000e+00 : f32
    %13 = vector.broadcast %cst_15 : f32 to vector<8x128xf32>
    %c0_16 = arith.constant 0 : index
    %c0_17 = arith.constant 0 : index
    %14 = vector.load %arg9[%c0_16, %c0_17] : memref<72x896xf32, #tpu.memory_space<vmem>>, vector<8x896xf32>
    %15 = arith.truncf %11 : vector<8x128xf32> to vector<8x128xbf16>
    %cst_18 = arith.constant dense<0.000000e+00> : vector<8x896xf32>
    %16 = tpu.matmul %15, %8, %cst_18 {dimension_numbers = #tpu.dot_dimension_numbers<[1], [0], [0], [1], [0, 0, 1, 1], [], []>} : vector<8x128xbf16>, vector<128x896xbf16>, vector<8x896xf32> -> vector<8x896xf32>
    %17 = arith.addf %14, %16 : vector<8x896xf32>
    %18 = vector.extract_strided_slice %17 {offsets = [0, 0], sizes = [8, 128], strides = [1, 1]} : vector<8x896xf32> to vector<8x128xf32>
    %19 = arith.negf %18 : vector<8x128xf32>
    %20 = math.exp %19 : vector<8x128xf32>
    %cst_19 = arith.constant 1.000000e+00 : f32
    %21 = vector.broadcast %cst_19 : f32 to vector<8x128xf32>
    %22 = arith.addf %21, %20 : vector<8x128xf32>
    %23 = arith.divf %21, %22 : vector<8x128xf32>
    %24 = vector.extract_strided_slice %17 {offsets = [0, 128], sizes = [8, 128], strides = [1, 1]} : vector<8x896xf32> to vector<8x128xf32>
    %25 = arith.negf %24 : vector<8x128xf32>
    %26 = math.exp %25 : vector<8x128xf32>
    %cst_20 = arith.constant 1.000000e+00 : f32
    %27 = vector.broadcast %cst_20 : f32 to vector<8x128xf32>
    %28 = arith.addf %27, %26 : vector<8x128xf32>
    %29 = arith.divf %27, %28 : vector<8x128xf32>
    %30 = vector.extract_strided_slice %17 {offsets = [0, 256], sizes = [8, 128], strides = [1, 1]} : vector<8x896xf32> to vector<8x128xf32>
    %31 = arith.negf %30 : vector<8x128xf32>
    %32 = math.exp %31 : vector<8x128xf32>
    %cst_21 = arith.constant 1.000000e+00 : f32
    %33 = vector.broadcast %cst_21 : f32 to vector<8x128xf32>
    %34 = arith.addf %33, %32 : vector<8x128xf32>
    %35 = arith.divf %33, %34 : vector<8x128xf32>
    %36 = vector.extract_strided_slice %17 {offsets = [0, 384], sizes = [8, 128], strides = [1, 1]} : vector<8x896xf32> to vector<8x128xf32>
    %37 = math.tanh %36 : vector<8x128xf32>
    %38 = vector.extract_strided_slice %17 {offsets = [0, 512], sizes = [8, 128], strides = [1, 1]} : vector<8x896xf32> to vector<8x128xf32>
    %39 = arith.negf %38 : vector<8x128xf32>
    %40 = math.exp %39 : vector<8x128xf32>
    %cst_22 = arith.constant 1.000000e+00 : f32
    %41 = vector.broadcast %cst_22 : f32 to vector<8x128xf32>
    %42 = arith.addf %41, %40 : vector<8x128xf32>
    %43 = arith.divf %41, %42 : vector<8x128xf32>
    %44 = vector.extract_strided_slice %17 {offsets = [0, 640], sizes = [8, 128], strides = [1, 1]} : vector<8x896xf32> to vector<8x128xf32>
    %45 = arith.negf %44 : vector<8x128xf32>
    %46 = math.exp %45 : vector<8x128xf32>
    %cst_23 = arith.constant 1.000000e+00 : f32
    %47 = vector.broadcast %cst_23 : f32 to vector<8x128xf32>
    %48 = arith.addf %47, %46 : vector<8x128xf32>
    %49 = arith.divf %47, %48 : vector<8x128xf32>
    %50 = vector.extract_strided_slice %17 {offsets = [0, 768], sizes = [8, 128], strides = [1, 1]} : vector<8x896xf32> to vector<8x128xf32>
    %cst_24 = arith.constant 1.000000e+00 : f32
    %51 = vector.broadcast %cst_24 : f32 to vector<8x128xf32>
    %52 = arith.mulf %51, %50 : vector<8x128xf32>
    %cst_25 = arith.constant 2.000000e+01 : f32
    %53 = vector.broadcast %cst_25 : f32 to vector<8x128xf32>
    %54 = arith.cmpf ogt, %52, %53 : vector<8x128xf32>
    %cst_26 = arith.constant 2.000000e+01 : f32
    %55 = vector.broadcast %cst_26 : f32 to vector<8x128xf32>
    %56 = arith.minimumf %52, %55 : vector<8x128xf32>
    %57 = math.exp %56 : vector<8x128xf32>
    %cst_27 = arith.constant 1.000000e+00 : f32
    %58 = vector.broadcast %cst_27 : f32 to vector<8x128xf32>
    %59 = arith.addf %58, %57 : vector<8x128xf32>
    %60 = math.log %59 : vector<8x128xf32>
    %cst_28 = arith.constant 1.000000e+00 : f32
    %61 = vector.broadcast %cst_28 : f32 to vector<8x128xf32>
    %62 = arith.divf %60, %61 : vector<8x128xf32>
    %63 = arith.select %54, %50, %62 : vector<8x128xi1>, vector<8x128xf32>
    %64 = arith.mulf %29, %12 : vector<8x128xf32>
    %65 = arith.mulf %23, %37 : vector<8x128xf32>
    %66 = arith.addf %64, %65 : vector<8x128xf32>
    %67 = arith.mulf %49, %13 : vector<8x128xf32>
    %68 = arith.mulf %43, %37 : vector<8x128xf32>
    %69 = arith.addf %67, %68 : vector<8x128xf32>
    %70 = vector.extract_strided_slice %10 {offsets = [0, 0], sizes = [8, 1], strides = [1, 1]} : vector<72x8xf32> to vector<8x1xf32>
    %71 = vector.extract_strided_slice %10 {offsets = [0, 1], sizes = [8, 1], strides = [1, 1]} : vector<72x8xf32> to vector<8x1xf32>
    %72 = arith.subf %66, %69 : vector<8x128xf32>
    %cst_29 = arith.constant 0.000000e+00 : f32
    %73 = vector.broadcast %cst_29 : f32 to vector<8x128xf32>
    %74 = arith.subf %73, %63 : vector<8x128xf32>
    %75 = vector.broadcast %70 : vector<8x1xf32> to vector<8x128xf32>
    %76 = arith.mulf %74, %75 : vector<8x128xf32>
    %77 = math.exp %76 : vector<8x128xf32>
    %78 = arith.mulf %72, %77 : vector<8x128xf32>
    %79 = arith.addf %69, %78 : vector<8x128xf32>
    %80 = math.tanh %79 : vector<8x128xf32>
    %81 = arith.mulf %35, %80 : vector<8x128xf32>
    %82 = arith.subf %66, %69 : vector<8x128xf32>
    %cst_30 = arith.constant 0.000000e+00 : f32
    %83 = vector.broadcast %cst_30 : f32 to vector<8x128xf32>
    %84 = arith.subf %83, %63 : vector<8x128xf32>
    %85 = vector.broadcast %71 : vector<8x1xf32> to vector<8x128xf32>
    %86 = arith.mulf %84, %85 : vector<8x128xf32>
    %87 = math.exp %86 : vector<8x128xf32>
    %88 = arith.mulf %82, %87 : vector<8x128xf32>
    %89 = arith.addf %69, %88 : vector<8x128xf32>
    %90 = math.tanh %89 : vector<8x128xf32>
    %91 = arith.mulf %35, %90 : vector<8x128xf32>
    %92 = arith.truncf %81 : vector<8x128xf32> to vector<8x128xbf16>
    %c0_31 = arith.constant 0 : index
    %c0_32 = arith.constant 0 : index
    %93 = vector.load %arg10[%c0_31, %c0_32] : memref<144x128xbf16, #tpu.memory_space<vmem>>, vector<8x128xbf16>
    tpu.vector_store %arg10[%c0_31, %c0_32], %92 {strides = array<i32>} : memref<144x128xbf16, #tpu.memory_space<vmem>>, vector<8x128xbf16>,
    %94 = arith.truncf %91 : vector<8x128xf32> to vector<8x128xbf16>
    %c72 = arith.constant 72 : index
    %c0_33 = arith.constant 0 : index
    %95 = vector.load %arg10[%c72, %c0_33] : memref<144x128xbf16, #tpu.memory_space<vmem>>, vector<8x128xbf16>
    tpu.vector_store %arg10[%c72, %c0_33], %94 {strides = array<i32>} : memref<144x128xbf16, #tpu.memory_space<vmem>>, vector<8x128xbf16>,
    %c8 = arith.constant 8 : index
    %c0_34 = arith.constant 0 : index
    %96 = vector.load %arg9[%c8, %c0_34] : memref<72x896xf32, #tpu.memory_space<vmem>>, vector<8x896xf32>
    %97 = arith.truncf %81 : vector<8x128xf32> to vector<8x128xbf16>
    %cst_35 = arith.constant dense<0.000000e+00> : vector<8x896xf32>
    %98 = tpu.matmul %97, %8, %cst_35 {dimension_numbers = #tpu.dot_dimension_numbers<[1], [0], [0], [1], [0, 0, 1, 1], [], []>} : vector<8x128xbf16>, vector<128x896xbf16>, vector<8x896xf32> -> vector<8x896xf32>
    %99 = arith.addf %96, %98 : vector<8x896xf32>
    %100 = vector.extract_strided_slice %99 {offsets = [0, 0], sizes = [8, 128], strides = [1, 1]} : vector<8x896xf32> to vector<8x128xf32>
    %101 = arith.negf %100 : vector<8x128xf32>
    %102 = math.exp %101 : vector<8x128xf32>
    %cst_36 = arith.constant 1.000000e+00 : f32
    %103 = vector.broadcast %cst_36 : f32 to vector<8x128xf32>
    %104 = arith.addf %103, %102 : vector<8x128xf32>
    %105 = arith.divf %103, %104 : vector<8x128xf32>
    %106 = vector.extract_strided_slice %99 {offsets = [0, 128], sizes = [8, 128], strides = [1, 1]} : vector<8x896xf32> to vector<8x128xf32>
    %107 = arith.negf %106 : vector<8x128xf32>
    %108 = math.exp %107 : vector<8x128xf32>
    %cst_37 = arith.constant 1.000000e+00 : f32
    %109 = vector.broadcast %cst_37 : f32 to vector<8x128xf32>
    %110 = arith.addf %109, %108 : vector<8x128xf32>
    %111 = arith.divf %109, %110 : vector<8x128xf32>
    %112 = vector.extract_strided_slice %99 {offsets = [0, 256], sizes = [8, 128], strides = [1, 1]} : vector<8x896xf32> to vector<8x128xf32>
    %113 = arith.negf %112 : vector<8x128xf32>
    %114 = math.exp %113 : vector<8x128xf32>
    %cst_38 = arith.constant 1.000000e+00 : f32
    %115 = vector.broadcast %cst_38 : f32 to vector<8x128xf32>
    %116 = arith.addf %115, %114 : vector<8x128xf32>
    %117 = arith.divf %115, %116 : vector<8x128xf32>
    %118 = vector.extract_strided_slice %99 {offsets = [0, 384], sizes = [8, 128], strides = [1, 1]} : vector<8x896xf32> to vector<8x128xf32>
    %119 = math.tanh %118 : vector<8x128xf32>
    %120 = vector.extract_strided_slice %99 {offsets = [0, 512], sizes = [8, 128], strides = [1, 1]} : vector<8x896xf32> to vector<8x128xf32>
    %121 = arith.negf %120 : vector<8x128xf32>
    %122 = math.exp %121 : vector<8x128xf32>
    %cst_39 = arith.constant 1.000000e+00 : f32
    %123 = vector.broadcast %cst_39 : f32 to vector<8x128xf32>
    %124 = arith.addf %123, %122 : vector<8x128xf32>
    %125 = arith.divf %123, %124 : vector<8x128xf32>
    %126 = vector.extract_strided_slice %99 {offsets = [0, 640], sizes = [8, 128], strides = [1, 1]} : vector<8x896xf32> to vector<8x128xf32>
    %127 = arith.negf %126 : vector<8x128xf32>
    %128 = math.exp %127 : vector<8x128xf32>
    %cst_40 = arith.constant 1.000000e+00 : f32
    %129 = vector.broadcast %cst_40 : f32 to vector<8x128xf32>
    %130 = arith.addf %129, %128 : vector<8x128xf32>
    %131 = arith.divf %129, %130 : vector<8x128xf32>
    %132 = vector.extract_strided_slice %99 {offsets = [0, 768], sizes = [8, 128], strides = [1, 1]} : vector<8x896xf32> to vector<8x128xf32>
    %cst_41 = arith.constant 1.000000e+00 : f32
    %133 = vector.broadcast %cst_41 : f32 to vector<8x128xf32>
    %134 = arith.mulf %133, %132 : vector<8x128xf32>
    %cst_42 = arith.constant 2.000000e+01 : f32
    %135 = vector.broadcast %cst_42 : f32 to vector<8x128xf32>
    %136 = arith.cmpf ogt, %134, %135 : vector<8x128xf32>
    %cst_43 = arith.constant 2.000000e+01 : f32
    %137 = vector.broadcast %cst_43 : f32 to vector<8x128xf32>
    %138 = arith.minimumf %134, %137 : vector<8x128xf32>
    %139 = math.exp %138 : vector<8x128xf32>
    %cst_44 = arith.constant 1.000000e+00 : f32
    %140 = vector.broadcast %cst_44 : f32 to vector<8x128xf32>
    %141 = arith.addf %140, %139 : vector<8x128xf32>
    %142 = math.log %141 : vector<8x128xf32>
    %cst_45 = arith.constant 1.000000e+00 : f32
    %143 = vector.broadcast %cst_45 : f32 to vector<8x128xf32>
    %144 = arith.divf %142, %143 : vector<8x128xf32>
    %145 = arith.select %136, %132, %144 : vector<8x128xi1>, vector<8x128xf32>
    %146 = arith.mulf %111, %79 : vector<8x128xf32>
    %147 = arith.mulf %105, %119 : vector<8x128xf32>
    %148 = arith.addf %146, %147 : vector<8x128xf32>
    %149 = arith.mulf %131, %69 : vector<8x128xf32>
    %150 = arith.mulf %125, %119 : vector<8x128xf32>
    %151 = arith.addf %149, %150 : vector<8x128xf32>
    %152 = vector.extract_strided_slice %10 {offsets = [8, 0], sizes = [8, 1], strides = [1, 1]} : vector<72x8xf32> to vector<8x1xf32>
    %153 = vector.extract_strided_slice %10 {offsets = [8, 1], sizes = [8, 1], strides = [1, 1]} : vector<72x8xf32> to vector<8x1xf32>
    %154 = arith.subf %148, %151 : vector<8x128xf32>
    %cst_46 = arith.constant 0.000000e+00 : f32
    %155 = vector.broadcast %cst_46 : f32 to vector<8x128xf32>
    %156 = arith.subf %155, %145 : vector<8x128xf32>
    %157 = vector.broadcast %152 : vector<8x1xf32> to vector<8x128xf32>
    %158 = arith.mulf %156, %157 : vector<8x128xf32>
    %159 = math.exp %158 : vector<8x128xf32>
    %160 = arith.mulf %154, %159 : vector<8x128xf32>
    %161 = arith.addf %151, %160 : vector<8x128xf32>
    %162 = math.tanh %161 : vector<8x128xf32>
    %163 = arith.mulf %117, %162 : vector<8x128xf32>
    %164 = arith.subf %148, %151 : vector<8x128xf32>
    %cst_47 = arith.constant 0.000000e+00 : f32
    %165 = vector.broadcast %cst_47 : f32 to vector<8x128xf32>
    %166 = arith.subf %165, %145 : vector<8x128xf32>
    %167 = vector.broadcast %153 : vector<8x1xf32> to vector<8x128xf32>
    %168 = arith.mulf %166, %167 : vector<8x128xf32>
    %169 = math.exp %168 : vector<8x128xf32>
    %170 = arith.mulf %164, %169 : vector<8x128xf32>
    %171 = arith.addf %151, %170 : vector<8x128xf32>
    %172 = math.tanh %171 : vector<8x128xf32>
    %173 = arith.mulf %117, %172 : vector<8x128xf32>
    %174 = arith.truncf %163 : vector<8x128xf32> to vector<8x128xbf16>
    %c8_48 = arith.constant 8 : index
    %c0_49 = arith.constant 0 : index
    %175 = vector.load %arg10[%c8_48, %c0_49] : memref<144x128xbf16, #tpu.memory_space<vmem>>, vector<8x128xbf16>
    tpu.vector_store %arg10[%c8_48, %c0_49], %174 {strides = array<i32>} : memref<144x128xbf16, #tpu.memory_space<vmem>>, vector<8x128xbf16>,
    %176 = arith.truncf %173 : vector<8x128xf32> to vector<8x128xbf16>
    %c80 = arith.constant 80 : index
    %c0_50 = arith.constant 0 : index
    %177 = vector.load %arg10[%c80, %c0_50] : memref<144x128xbf16, #tpu.memory_space<vmem>>, vector<8x128xbf16>
    tpu.vector_store %arg10[%c80, %c0_50], %176 {strides = array<i32>} : memref<144x128xbf16, #tpu.memory_space<vmem>>, vector<8x128xbf16>,
    %c16 = arith.constant 16 : index
    %c0_51 = arith.constant 0 : index
    %178 = vector.load %arg9[%c16, %c0_51] : memref<72x896xf32, #tpu.memory_space<vmem>>, vector<8x896xf32>
    %179 = arith.truncf %163 : vector<8x128xf32> to vector<8x128xbf16>
    %cst_52 = arith.constant dense<0.000000e+00> : vector<8x896xf32>
    %180 = tpu.matmul %179, %8, %cst_52 {dimension_numbers = #tpu.dot_dimension_numbers<[1], [0], [0], [1], [0, 0, 1, 1], [], []>} : vector<8x128xbf16>, vector<128x896xbf16>, vector<8x896xf32> -> vector<8x896xf32>
    %181 = arith.addf %178, %180 : vector<8x896xf32>
    %182 = vector.extract_strided_slice %181 {offsets = [0, 0], sizes = [8, 128], strides = [1, 1]} : vector<8x896xf32> to vector<8x128xf32>
    %183 = arith.negf %182 : vector<8x128xf32>
    %184 = math.exp %183 : vector<8x128xf32>
    %cst_53 = arith.constant 1.000000e+00 : f32
    %185 = vector.broadcast %cst_53 : f32 to vector<8x128xf32>
    %186 = arith.addf %185, %184 : vector<8x128xf32>
    %187 = arith.divf %185, %186 : vector<8x128xf32>
    %188 = vector.extract_strided_slice %181 {offsets = [0, 128], sizes = [8, 128], strides = [1, 1]} : vector<8x896xf32> to vector<8x128xf32>
    %189 = arith.negf %188 : vector<8x128xf32>
    %190 = math.exp %189 : vector<8x128xf32>
    %cst_54 = arith.constant 1.000000e+00 : f32
    %191 = vector.broadcast %cst_54 : f32 to vector<8x128xf32>
    %192 = arith.addf %191, %190 : vector<8x128xf32>
    %193 = arith.divf %191, %192 : vector<8x128xf32>
    %194 = vector.extract_strided_slice %181 {offsets = [0, 256], sizes = [8, 128], strides = [1, 1]} : vector<8x896xf32> to vector<8x128xf32>
    %195 = arith.negf %194 : vector<8x128xf32>
    %196 = math.exp %195 : vector<8x128xf32>
    %cst_55 = arith.constant 1.000000e+00 : f32
    %197 = vector.broadcast %cst_55 : f32 to vector<8x128xf32>
    %198 = arith.addf %197, %196 : vector<8x128xf32>
    %199 = arith.divf %197, %198 : vector<8x128xf32>
    %200 = vector.extract_strided_slice %181 {offsets = [0, 384], sizes = [8, 128], strides = [1, 1]} : vector<8x896xf32> to vector<8x128xf32>
    %201 = math.tanh %200 : vector<8x128xf32>
    %202 = vector.extract_strided_slice %181 {offsets = [0, 512], sizes = [8, 128], strides = [1, 1]} : vector<8x896xf32> to vector<8x128xf32>
    %203 = arith.negf %202 : vector<8x128xf32>
    %204 = math.exp %203 : vector<8x128xf32>
    %cst_56 = arith.constant 1.000000e+00 : f32
    %205 = vector.broadcast %cst_56 : f32 to vector<8x128xf32>
    %206 = arith.addf %205, %204 : vector<8x128xf32>
    %207 = arith.divf %205, %206 : vector<8x128xf32>
    %208 = vector.extract_strided_slice %181 {offsets = [0, 640], sizes = [8, 128], strides = [1, 1]} : vector<8x896xf32> to vector<8x128xf32>
    %209 = arith.negf %208 : vector<8x128xf32>
    %210 = math.exp %209 : vector<8x128xf32>
    %cst_57 = arith.constant 1.000000e+00 : f32
    %211 = vector.broadcast %cst_57 : f32 to vector<8x128xf32>
    %212 = arith.addf %211, %210 : vector<8x128xf32>
    %213 = arith.divf %211, %212 : vector<8x128xf32>
    %214 = vector.extract_strided_slice %181 {offsets = [0, 768], sizes = [8, 128], strides = [1, 1]} : vector<8x896xf32> to vector<8x128xf32>
    %cst_58 = arith.constant 1.000000e+00 : f32
    %215 = vector.broadcast %cst_58 : f32 to vector<8x128xf32>
    %216 = arith.mulf %215, %214 : vector<8x128xf32>
    %cst_59 = arith.constant 2.000000e+01 : f32
    %217 = vector.broadcast %cst_59 : f32 to vector<8x128xf32>
    %218 = arith.cmpf ogt, %216, %217 : vector<8x128xf32>
    %cst_60 = arith.constant 2.000000e+01 : f32
    %219 = vector.broadcast %cst_60 : f32 to vector<8x128xf32>
    %220 = arith.minimumf %216, %219 : vector<8x128xf32>
    %221 = math.exp %220 : vector<8x128xf32>
    %cst_61 = arith.constant 1.000000e+00 : f32
    %222 = vector.broadcast %cst_61 : f32 to vector<8x128xf32>
    %223 = arith.addf %222, %221 : vector<8x128xf32>
    %224 = math.log %223 : vector<8x128xf32>
    %cst_62 = arith.constant 1.000000e+00 : f32
    %225 = vector.broadcast %cst_62 : f32 to vector<8x128xf32>
    %226 = arith.divf %224, %225 : vector<8x128xf32>
    %227 = arith.select %218, %214, %226 : vector<8x128xi1>, vector<8x128xf32>
    %228 = arith.mulf %193, %161 : vector<8x128xf32>
    %229 = arith.mulf %187, %201 : vector<8x128xf32>
    %230 = arith.addf %228, %229 : vector<8x128xf32>
    %231 = arith.mulf %213, %151 : vector<8x128xf32>
    %232 = arith.mulf %207, %201 : vector<8x128xf32>
    %233 = arith.addf %231, %232 : vector<8x128xf32>
    %234 = vector.extract_strided_slice %10 {offsets = [16, 0], sizes = [8, 1], strides = [1, 1]} : vector<72x8xf32> to vector<8x1xf32>
    %235 = vector.extract_strided_slice %10 {offsets = [16, 1], sizes = [8, 1], strides = [1, 1]} : vector<72x8xf32> to vector<8x1xf32>
    %236 = arith.subf %230, %233 : vector<8x128xf32>
    %cst_63 = arith.constant 0.000000e+00 : f32
    %237 = vector.broadcast %cst_63 : f32 to vector<8x128xf32>
    %238 = arith.subf %237, %227 : vector<8x128xf32>
    %239 = vector.broadcast %234 : vector<8x1xf32> to vector<8x128xf32>
    %240 = arith.mulf %238, %239 : vector<8x128xf32>
    %241 = math.exp %240 : vector<8x128xf32>
    %242 = arith.mulf %236, %241 : vector<8x128xf32>
    %243 = arith.addf %233, %242 : vector<8x128xf32>
    %244 = math.tanh %243 : vector<8x128xf32>
    %245 = arith.mulf %199, %244 : vector<8x128xf32>
    %246 = arith.subf %230, %233 : vector<8x128xf32>
    %cst_64 = arith.constant 0.000000e+00 : f32
    %247 = vector.broadcast %cst_64 : f32 to vector<8x128xf32>
    %248 = arith.subf %247, %227 : vector<8x128xf32>
    %249 = vector.broadcast %235 : vector<8x1xf32> to vector<8x128xf32>
    %250 = arith.mulf %248, %249 : vector<8x128xf32>
    %251 = math.exp %250 : vector<8x128xf32>
    %252 = arith.mulf %246, %251 : vector<8x128xf32>
    %253 = arith.addf %233, %252 : vector<8x128xf32>
    %254 = math.tanh %253 : vector<8x128xf32>
    %255 = arith.mulf %199, %254 : vector<8x128xf32>
    %256 = arith.truncf %245 : vector<8x128xf32> to vector<8x128xbf16>
    %c16_65 = arith.constant 16 : index
    %c0_66 = arith.constant 0 : index
    %257 = vector.load %arg10[%c16_65, %c0_66] : memref<144x128xbf16, #tpu.memory_space<vmem>>, vector<8x128xbf16>
    tpu.vector_store %arg10[%c16_65, %c0_66], %256 {strides = array<i32>} : memref<144x128xbf16, #tpu.memory_space<vmem>>, vector<8x128xbf16>,
    %258 = arith.truncf %255 : vector<8x128xf32> to vector<8x128xbf16>
    %c88 = arith.constant 88 : index
    %c0_67 = arith.constant 0 : index
    %259 = vector.load %arg10[%c88, %c0_67] : memref<144x128xbf16, #tpu.memory_space<vmem>>, vector<8x128xbf16>
    tpu.vector_store %arg10[%c88, %c0_67], %258 {strides = array<i32>} : memref<144x128xbf16, #tpu.memory_space<vmem>>, vector<8x128xbf16>,
    %c24 = arith.constant 24 : index
    %c0_68 = arith.constant 0 : index
    %260 = vector.load %arg9[%c24, %c0_68] : memref<72x896xf32, #tpu.memory_space<vmem>>, vector<8x896xf32>
    %261 = arith.truncf %245 : vector<8x128xf32> to vector<8x128xbf16>
    %cst_69 = arith.constant dense<0.000000e+00> : vector<8x896xf32>
    %262 = tpu.matmul %261, %8, %cst_69 {dimension_numbers = #tpu.dot_dimension_numbers<[1], [0], [0], [1], [0, 0, 1, 1], [], []>} : vector<8x128xbf16>, vector<128x896xbf16>, vector<8x896xf32> -> vector<8x896xf32>
    %263 = arith.addf %260, %262 : vector<8x896xf32>
    %264 = vector.extract_strided_slice %263 {offsets = [0, 0], sizes = [8, 128], strides = [1, 1]} : vector<8x896xf32> to vector<8x128xf32>
    %265 = arith.negf %264 : vector<8x128xf32>
    %266 = math.exp %265 : vector<8x128xf32>
    %cst_70 = arith.constant 1.000000e+00 : f32
    %267 = vector.broadcast %cst_70 : f32 to vector<8x128xf32>
    %268 = arith.addf %267, %266 : vector<8x128xf32>
    %269 = arith.divf %267, %268 : vector<8x128xf32>
    %270 = vector.extract_strided_slice %263 {offsets = [0, 128], sizes = [8, 128], strides = [1, 1]} : vector<8x896xf32> to vector<8x128xf32>
    %271 = arith.negf %270 : vector<8x128xf32>
    %272 = math.exp %271 : vector<8x128xf32>
    %cst_71 = arith.constant 1.000000e+00 : f32
    %273 = vector.broadcast %cst_71 : f32 to vector<8x128xf32>
    %274 = arith.addf %273, %272 : vector<8x128xf32>
    %275 = arith.divf %273, %274 : vector<8x128xf32>
    %276 = vector.extract_strided_slice %263 {offsets = [0, 256], sizes = [8, 128], strides = [1, 1]} : vector<8x896xf32> to vector<8x128xf32>
    %277 = arith.negf %276 : vector<8x128xf32>
    %278 = math.exp %277 : vector<8x128xf32>
    %cst_72 = arith.constant 1.000000e+00 : f32
    %279 = vector.broadcast %cst_72 : f32 to vector<8x128xf32>
    %280 = arith.addf %279, %278 : vector<8x128xf32>
    %281 = arith.divf %279, %280 : vector<8x128xf32>
    %282 = vector.extract_strided_slice %263 {offsets = [0, 384], sizes = [8, 128], strides = [1, 1]} : vector<8x896xf32> to vector<8x128xf32>
    %283 = math.tanh %282 : vector<8x128xf32>
    %284 = vector.extract_strided_slice %263 {offsets = [0, 512], sizes = [8, 128], strides = [1, 1]} : vector<8x896xf32> to vector<8x128xf32>
    %285 = arith.negf %284 : vector<8x128xf32>
    %286 = math.exp %285 : vector<8x128xf32>
    %cst_73 = arith.constant 1.000000e+00 : f32
    %287 = vector.broadcast %cst_73 : f32 to vector<8x128xf32>
    %288 = arith.addf %287, %286 : vector<8x128xf32>
    %289 = arith.divf %287, %288 : vector<8x128xf32>
    %290 = vector.extract_strided_slice %263 {offsets = [0, 640], sizes = [8, 128], strides = [1, 1]} : vector<8x896xf32> to vector<8x128xf32>
    %291 = arith.negf %290 : vector<8x128xf32>
    %292 = math.exp %291 : vector<8x128xf32>
    %cst_74 = arith.constant 1.000000e+00 : f32
    %293 = vector.broadcast %cst_74 : f32 to vector<8x128xf32>
    %294 = arith.addf %293, %292 : vector<8x128xf32>
    %295 = arith.divf %293, %294 : vector<8x128xf32>
    %296 = vector.extract_strided_slice %263 {offsets = [0, 768], sizes = [8, 128], strides = [1, 1]} : vector<8x896xf32> to vector<8x128xf32>
    %cst_75 = arith.constant 1.000000e+00 : f32
    %297 = vector.broadcast %cst_75 : f32 to vector<8x128xf32>
    %298 = arith.mulf %297, %296 : vector<8x128xf32>
    %cst_76 = arith.constant 2.000000e+01 : f32
    %299 = vector.broadcast %cst_76 : f32 to vector<8x128xf32>
    %300 = arith.cmpf ogt, %298, %299 : vector<8x128xf32>
    %cst_77 = arith.constant 2.000000e+01 : f32
    %301 = vector.broadcast %cst_77 : f32 to vector<8x128xf32>
    %302 = arith.minimumf %298, %301 : vector<8x128xf32>
    %303 = math.exp %302 : vector<8x128xf32>
    %cst_78 = arith.constant 1.000000e+00 : f32
    %304 = vector.broadcast %cst_78 : f32 to vector<8x128xf32>
    %305 = arith.addf %304, %303 : vector<8x128xf32>
    %306 = math.log %305 : vector<8x128xf32>
    %cst_79 = arith.constant 1.000000e+00 : f32
    %307 = vector.broadcast %cst_79 : f32 to vector<8x128xf32>
    %308 = arith.divf %306, %307 : vector<8x128xf32>
    %309 = arith.select %300, %296, %308 : vector<8x128xi1>, vector<8x128xf32>
    %310 = arith.mulf %275, %243 : vector<8x128xf32>
    %311 = arith.mulf %269, %283 : vector<8x128xf32>
    %312 = arith.addf %310, %311 : vector<8x128xf32>
    %313 = arith.mulf %295, %233 : vector<8x128xf32>
    %314 = arith.mulf %289, %283 : vector<8x128xf32>
    %315 = arith.addf %313, %314 : vector<8x128xf32>
    %316 = vector.extract_strided_slice %10 {offsets = [24, 0], sizes = [8, 1], strides = [1, 1]} : vector<72x8xf32> to vector<8x1xf32>
    %317 = vector.extract_strided_slice %10 {offsets = [24, 1], sizes = [8, 1], strides = [1, 1]} : vector<72x8xf32> to vector<8x1xf32>
    %318 = arith.subf %312, %315 : vector<8x128xf32>
    %cst_80 = arith.constant 0.000000e+00 : f32
    %319 = vector.broadcast %cst_80 : f32 to vector<8x128xf32>
    %320 = arith.subf %319, %309 : vector<8x128xf32>
    %321 = vector.broadcast %316 : vector<8x1xf32> to vector<8x128xf32>
    %322 = arith.mulf %320, %321 : vector<8x128xf32>
    %323 = math.exp %322 : vector<8x128xf32>
    %324 = arith.mulf %318, %323 : vector<8x128xf32>
    %325 = arith.addf %315, %324 : vector<8x128xf32>
    %326 = math.tanh %325 : vector<8x128xf32>
    %327 = arith.mulf %281, %326 : vector<8x128xf32>
    %328 = arith.subf %312, %315 : vector<8x128xf32>
    %cst_81 = arith.constant 0.000000e+00 : f32
    %329 = vector.broadcast %cst_81 : f32 to vector<8x128xf32>
    %330 = arith.subf %329, %309 : vector<8x128xf32>
    %331 = vector.broadcast %317 : vector<8x1xf32> to vector<8x128xf32>
    %332 = arith.mulf %330, %331 : vector<8x128xf32>
    %333 = math.exp %332 : vector<8x128xf32>
    %334 = arith.mulf %328, %333 : vector<8x128xf32>
    %335 = arith.addf %315, %334 : vector<8x128xf32>
    %336 = math.tanh %335 : vector<8x128xf32>
    %337 = arith.mulf %281, %336 : vector<8x128xf32>
    %338 = arith.truncf %327 : vector<8x128xf32> to vector<8x128xbf16>
    %c24_82 = arith.constant 24 : index
    %c0_83 = arith.constant 0 : index
    %339 = vector.load %arg10[%c24_82, %c0_83] : memref<144x128xbf16, #tpu.memory_space<vmem>>, vector<8x128xbf16>
    tpu.vector_store %arg10[%c24_82, %c0_83], %338 {strides = array<i32>} : memref<144x128xbf16, #tpu.memory_space<vmem>>, vector<8x128xbf16>,
    %340 = arith.truncf %337 : vector<8x128xf32> to vector<8x128xbf16>
    %c96 = arith.constant 96 : index
    %c0_84 = arith.constant 0 : index
    %341 = vector.load %arg10[%c96, %c0_84] : memref<144x128xbf16, #tpu.memory_space<vmem>>, vector<8x128xbf16>
    tpu.vector_store %arg10[%c96, %c0_84], %340 {strides = array<i32>} : memref<144x128xbf16, #tpu.memory_space<vmem>>, vector<8x128xbf16>,
    %c32 = arith.constant 32 : index
    %c0_85 = arith.constant 0 : index
    %342 = vector.load %arg9[%c32, %c0_85] : memref<72x896xf32, #tpu.memory_space<vmem>>, vector<8x896xf32>
    %343 = arith.truncf %327 : vector<8x128xf32> to vector<8x128xbf16>
    %cst_86 = arith.constant dense<0.000000e+00> : vector<8x896xf32>
    %344 = tpu.matmul %343, %8, %cst_86 {dimension_numbers = #tpu.dot_dimension_numbers<[1], [0], [0], [1], [0, 0, 1, 1], [], []>} : vector<8x128xbf16>, vector<128x896xbf16>, vector<8x896xf32> -> vector<8x896xf32>
    %345 = arith.addf %342, %344 : vector<8x896xf32>
    %346 = vector.extract_strided_slice %345 {offsets = [0, 0], sizes = [8, 128], strides = [1, 1]} : vector<8x896xf32> to vector<8x128xf32>
    %347 = arith.negf %346 : vector<8x128xf32>
    %348 = math.exp %347 : vector<8x128xf32>
    %cst_87 = arith.constant 1.000000e+00 : f32
    %349 = vector.broadcast %cst_87 : f32 to vector<8x128xf32>
    %350 = arith.addf %349, %348 : vector<8x128xf32>
    %351 = arith.divf %349, %350 : vector<8x128xf32>
    %352 = vector.extract_strided_slice %345 {offsets = [0, 128], sizes = [8, 128], strides = [1, 1]} : vector<8x896xf32> to vector<8x128xf32>
    %353 = arith.negf %352 : vector<8x128xf32>
    %354 = math.exp %353 : vector<8x128xf32>
    %cst_88 = arith.constant 1.000000e+00 : f32
    %355 = vector.broadcast %cst_88 : f32 to vector<8x128xf32>
    %356 = arith.addf %355, %354 : vector<8x128xf32>
    %357 = arith.divf %355, %356 : vector<8x128xf32>
    %358 = vector.extract_strided_slice %345 {offsets = [0, 256], sizes = [8, 128], strides = [1, 1]} : vector<8x896xf32> to vector<8x128xf32>
    %359 = arith.negf %358 : vector<8x128xf32>
    %360 = math.exp %359 : vector<8x128xf32>
    %cst_89 = arith.constant 1.000000e+00 : f32
    %361 = vector.broadcast %cst_89 : f32 to vector<8x128xf32>
    %362 = arith.addf %361, %360 : vector<8x128xf32>
    %363 = arith.divf %361, %362 : vector<8x128xf32>
    %364 = vector.extract_strided_slice %345 {offsets = [0, 384], sizes = [8, 128], strides = [1, 1]} : vector<8x896xf32> to vector<8x128xf32>
    %365 = math.tanh %364 : vector<8x128xf32>
    %366 = vector.extract_strided_slice %345 {offsets = [0, 512], sizes = [8, 128], strides = [1, 1]} : vector<8x896xf32> to vector<8x128xf32>
    %367 = arith.negf %366 : vector<8x128xf32>
    %368 = math.exp %367 : vector<8x128xf32>
    %cst_90 = arith.constant 1.000000e+00 : f32
    %369 = vector.broadcast %cst_90 : f32 to vector<8x128xf32>
    %370 = arith.addf %369, %368 : vector<8x128xf32>
    %371 = arith.divf %369, %370 : vector<8x128xf32>
    %372 = vector.extract_strided_slice %345 {offsets = [0, 640], sizes = [8, 128], strides = [1, 1]} : vector<8x896xf32> to vector<8x128xf32>
    %373 = arith.negf %372 : vector<8x128xf32>
    %374 = math.exp %373 : vector<8x128xf32>
    %cst_91 = arith.constant 1.000000e+00 : f32
    %375 = vector.broadcast %cst_91 : f32 to vector<8x128xf32>
    %376 = arith.addf %375, %374 : vector<8x128xf32>
    %377 = arith.divf %375, %376 : vector<8x128xf32>
    %378 = vector.extract_strided_slice %345 {offsets = [0, 768], sizes = [8, 128], strides = [1, 1]} : vector<8x896xf32> to vector<8x128xf32>
    %cst_92 = arith.constant 1.000000e+00 : f32
    %379 = vector.broadcast %cst_92 : f32 to vector<8x128xf32>
    %380 = arith.mulf %379, %378 : vector<8x128xf32>
    %cst_93 = arith.constant 2.000000e+01 : f32
    %381 = vector.broadcast %cst_93 : f32 to vector<8x128xf32>
    %382 = arith.cmpf ogt, %380, %381 : vector<8x128xf32>
    %cst_94 = arith.constant 2.000000e+01 : f32
    %383 = vector.broadcast %cst_94 : f32 to vector<8x128xf32>
    %384 = arith.minimumf %380, %383 : vector<8x128xf32>
    %385 = math.exp %384 : vector<8x128xf32>
    %cst_95 = arith.constant 1.000000e+00 : f32
    %386 = vector.broadcast %cst_95 : f32 to vector<8x128xf32>
    %387 = arith.addf %386, %385 : vector<8x128xf32>
    %388 = math.log %387 : vector<8x128xf32>
    %cst_96 = arith.constant 1.000000e+00 : f32
    %389 = vector.broadcast %cst_96 : f32 to vector<8x128xf32>
    %390 = arith.divf %388, %389 : vector<8x128xf32>
    %391 = arith.select %382, %378, %390 : vector<8x128xi1>, vector<8x128xf32>
    %392 = arith.mulf %357, %325 : vector<8x128xf32>
    %393 = arith.mulf %351, %365 : vector<8x128xf32>
    %394 = arith.addf %392, %393 : vector<8x128xf32>
    %395 = arith.mulf %377, %315 : vector<8x128xf32>
    %396 = arith.mulf %371, %365 : vector<8x128xf32>
    %397 = arith.addf %395, %396 : vector<8x128xf32>
    %398 = vector.extract_strided_slice %10 {offsets = [32, 0], sizes = [8, 1], strides = [1, 1]} : vector<72x8xf32> to vector<8x1xf32>
    %399 = vector.extract_strided_slice %10 {offsets = [32, 1], sizes = [8, 1], strides = [1, 1]} : vector<72x8xf32> to vector<8x1xf32>
    %400 = arith.subf %394, %397 : vector<8x128xf32>
    %cst_97 = arith.constant 0.000000e+00 : f32
    %401 = vector.broadcast %cst_97 : f32 to vector<8x128xf32>
    %402 = arith.subf %401, %391 : vector<8x128xf32>
    %403 = vector.broadcast %398 : vector<8x1xf32> to vector<8x128xf32>
    %404 = arith.mulf %402, %403 : vector<8x128xf32>
    %405 = math.exp %404 : vector<8x128xf32>
    %406 = arith.mulf %400, %405 : vector<8x128xf32>
    %407 = arith.addf %397, %406 : vector<8x128xf32>
    %408 = math.tanh %407 : vector<8x128xf32>
    %409 = arith.mulf %363, %408 : vector<8x128xf32>
    %410 = arith.subf %394, %397 : vector<8x128xf32>
    %cst_98 = arith.constant 0.000000e+00 : f32
    %411 = vector.broadcast %cst_98 : f32 to vector<8x128xf32>
    %412 = arith.subf %411, %391 : vector<8x128xf32>
    %413 = vector.broadcast %399 : vector<8x1xf32> to vector<8x128xf32>
    %414 = arith.mulf %412, %413 : vector<8x128xf32>
    %415 = math.exp %414 : vector<8x128xf32>
    %416 = arith.mulf %410, %415 : vector<8x128xf32>
    %417 = arith.addf %397, %416 : vector<8x128xf32>
    %418 = math.tanh %417 : vector<8x128xf32>
    %419 = arith.mulf %363, %418 : vector<8x128xf32>
    %420 = arith.truncf %409 : vector<8x128xf32> to vector<8x128xbf16>
    %c32_99 = arith.constant 32 : index
    %c0_100 = arith.constant 0 : index
    %421 = vector.load %arg10[%c32_99, %c0_100] : memref<144x128xbf16, #tpu.memory_space<vmem>>, vector<8x128xbf16>
    tpu.vector_store %arg10[%c32_99, %c0_100], %420 {strides = array<i32>} : memref<144x128xbf16, #tpu.memory_space<vmem>>, vector<8x128xbf16>,
    %422 = arith.truncf %419 : vector<8x128xf32> to vector<8x128xbf16>
    %c104 = arith.constant 104 : index
    %c0_101 = arith.constant 0 : index
    %423 = vector.load %arg10[%c104, %c0_101] : memref<144x128xbf16, #tpu.memory_space<vmem>>, vector<8x128xbf16>
    tpu.vector_store %arg10[%c104, %c0_101], %422 {strides = array<i32>} : memref<144x128xbf16, #tpu.memory_space<vmem>>, vector<8x128xbf16>,
    %c40 = arith.constant 40 : index
    %c0_102 = arith.constant 0 : index
    %424 = vector.load %arg9[%c40, %c0_102] : memref<72x896xf32, #tpu.memory_space<vmem>>, vector<8x896xf32>
    %425 = arith.truncf %409 : vector<8x128xf32> to vector<8x128xbf16>
    %cst_103 = arith.constant dense<0.000000e+00> : vector<8x896xf32>
    %426 = tpu.matmul %425, %8, %cst_103 {dimension_numbers = #tpu.dot_dimension_numbers<[1], [0], [0], [1], [0, 0, 1, 1], [], []>} : vector<8x128xbf16>, vector<128x896xbf16>, vector<8x896xf32> -> vector<8x896xf32>
    %427 = arith.addf %424, %426 : vector<8x896xf32>
    %428 = vector.extract_strided_slice %427 {offsets = [0, 0], sizes = [8, 128], strides = [1, 1]} : vector<8x896xf32> to vector<8x128xf32>
    %429 = arith.negf %428 : vector<8x128xf32>
    %430 = math.exp %429 : vector<8x128xf32>
    %cst_104 = arith.constant 1.000000e+00 : f32
    %431 = vector.broadcast %cst_104 : f32 to vector<8x128xf32>
    %432 = arith.addf %431, %430 : vector<8x128xf32>
    %433 = arith.divf %431, %432 : vector<8x128xf32>
    %434 = vector.extract_strided_slice %427 {offsets = [0, 128], sizes = [8, 128], strides = [1, 1]} : vector<8x896xf32> to vector<8x128xf32>
    %435 = arith.negf %434 : vector<8x128xf32>
    %436 = math.exp %435 : vector<8x128xf32>
    %cst_105 = arith.constant 1.000000e+00 : f32
    %437 = vector.broadcast %cst_105 : f32 to vector<8x128xf32>
    %438 = arith.addf %437, %436 : vector<8x128xf32>
    %439 = arith.divf %437, %438 : vector<8x128xf32>
    %440 = vector.extract_strided_slice %427 {offsets = [0, 256], sizes = [8, 128], strides = [1, 1]} : vector<8x896xf32> to vector<8x128xf32>
    %441 = arith.negf %440 : vector<8x128xf32>
    %442 = math.exp %441 : vector<8x128xf32>
    %cst_106 = arith.constant 1.000000e+00 : f32
    %443 = vector.broadcast %cst_106 : f32 to vector<8x128xf32>
    %444 = arith.addf %443, %442 : vector<8x128xf32>
    %445 = arith.divf %443, %444 : vector<8x128xf32>
    %446 = vector.extract_strided_slice %427 {offsets = [0, 384], sizes = [8, 128], strides = [1, 1]} : vector<8x896xf32> to vector<8x128xf32>
    %447 = math.tanh %446 : vector<8x128xf32>
    %448 = vector.extract_strided_slice %427 {offsets = [0, 512], sizes = [8, 128], strides = [1, 1]} : vector<8x896xf32> to vector<8x128xf32>
    %449 = arith.negf %448 : vector<8x128xf32>
    %450 = math.exp %449 : vector<8x128xf32>
    %cst_107 = arith.constant 1.000000e+00 : f32
    %451 = vector.broadcast %cst_107 : f32 to vector<8x128xf32>
    %452 = arith.addf %451, %450 : vector<8x128xf32>
    %453 = arith.divf %451, %452 : vector<8x128xf32>
    %454 = vector.extract_strided_slice %427 {offsets = [0, 640], sizes = [8, 128], strides = [1, 1]} : vector<8x896xf32> to vector<8x128xf32>
    %455 = arith.negf %454 : vector<8x128xf32>
    %456 = math.exp %455 : vector<8x128xf32>
    %cst_108 = arith.constant 1.000000e+00 : f32
    %457 = vector.broadcast %cst_108 : f32 to vector<8x128xf32>
    %458 = arith.addf %457, %456 : vector<8x128xf32>
    %459 = arith.divf %457, %458 : vector<8x128xf32>
    %460 = vector.extract_strided_slice %427 {offsets = [0, 768], sizes = [8, 128], strides = [1, 1]} : vector<8x896xf32> to vector<8x128xf32>
    %cst_109 = arith.constant 1.000000e+00 : f32
    %461 = vector.broadcast %cst_109 : f32 to vector<8x128xf32>
    %462 = arith.mulf %461, %460 : vector<8x128xf32>
    %cst_110 = arith.constant 2.000000e+01 : f32
    %463 = vector.broadcast %cst_110 : f32 to vector<8x128xf32>
    %464 = arith.cmpf ogt, %462, %463 : vector<8x128xf32>
    %cst_111 = arith.constant 2.000000e+01 : f32
    %465 = vector.broadcast %cst_111 : f32 to vector<8x128xf32>
    %466 = arith.minimumf %462, %465 : vector<8x128xf32>
    %467 = math.exp %466 : vector<8x128xf32>
    %cst_112 = arith.constant 1.000000e+00 : f32
    %468 = vector.broadcast %cst_112 : f32 to vector<8x128xf32>
    %469 = arith.addf %468, %467 : vector<8x128xf32>
    %470 = math.log %469 : vector<8x128xf32>
    %cst_113 = arith.constant 1.000000e+00 : f32
    %471 = vector.broadcast %cst_113 : f32 to vector<8x128xf32>
    %472 = arith.divf %470, %471 : vector<8x128xf32>
    %473 = arith.select %464, %460, %472 : vector<8x128xi1>, vector<8x128xf32>
    %474 = arith.mulf %439, %407 : vector<8x128xf32>
    %475 = arith.mulf %433, %447 : vector<8x128xf32>
    %476 = arith.addf %474, %475 : vector<8x128xf32>
    %477 = arith.mulf %459, %397 : vector<8x128xf32>
    %478 = arith.mulf %453, %447 : vector<8x128xf32>
    %479 = arith.addf %477, %478 : vector<8x128xf32>
    %480 = vector.extract_strided_slice %10 {offsets = [40, 0], sizes = [8, 1], strides = [1, 1]} : vector<72x8xf32> to vector<8x1xf32>
    %481 = vector.extract_strided_slice %10 {offsets = [40, 1], sizes = [8, 1], strides = [1, 1]} : vector<72x8xf32> to vector<8x1xf32>
    %482 = arith.subf %476, %479 : vector<8x128xf32>
    %cst_114 = arith.constant 0.000000e+00 : f32
    %483 = vector.broadcast %cst_114 : f32 to vector<8x128xf32>
    %484 = arith.subf %483, %473 : vector<8x128xf32>
    %485 = vector.broadcast %480 : vector<8x1xf32> to vector<8x128xf32>
    %486 = arith.mulf %484, %485 : vector<8x128xf32>
    %487 = math.exp %486 : vector<8x128xf32>
    %488 = arith.mulf %482, %487 : vector<8x128xf32>
    %489 = arith.addf %479, %488 : vector<8x128xf32>
    %490 = math.tanh %489 : vector<8x128xf32>
    %491 = arith.mulf %445, %490 : vector<8x128xf32>
    %492 = arith.subf %476, %479 : vector<8x128xf32>
    %cst_115 = arith.constant 0.000000e+00 : f32
    %493 = vector.broadcast %cst_115 : f32 to vector<8x128xf32>
    %494 = arith.subf %493, %473 : vector<8x128xf32>
    %495 = vector.broadcast %481 : vector<8x1xf32> to vector<8x128xf32>
    %496 = arith.mulf %494, %495 : vector<8x128xf32>
    %497 = math.exp %496 : vector<8x128xf32>
    %498 = arith.mulf %492, %497 : vector<8x128xf32>
    %499 = arith.addf %479, %498 : vector<8x128xf32>
    %500 = math.tanh %499 : vector<8x128xf32>
    %501 = arith.mulf %445, %500 : vector<8x128xf32>
    %502 = arith.truncf %491 : vector<8x128xf32> to vector<8x128xbf16>
    %c40_116 = arith.constant 40 : index
    %c0_117 = arith.constant 0 : index
    %503 = vector.load %arg10[%c40_116, %c0_117] : memref<144x128xbf16, #tpu.memory_space<vmem>>, vector<8x128xbf16>
    tpu.vector_store %arg10[%c40_116, %c0_117], %502 {strides = array<i32>} : memref<144x128xbf16, #tpu.memory_space<vmem>>, vector<8x128xbf16>,
    %504 = arith.truncf %501 : vector<8x128xf32> to vector<8x128xbf16>
    %c112 = arith.constant 112 : index
    %c0_118 = arith.constant 0 : index
    %505 = vector.load %arg10[%c112, %c0_118] : memref<144x128xbf16, #tpu.memory_space<vmem>>, vector<8x128xbf16>
    tpu.vector_store %arg10[%c112, %c0_118], %504 {strides = array<i32>} : memref<144x128xbf16, #tpu.memory_space<vmem>>, vector<8x128xbf16>,
    %c48 = arith.constant 48 : index
    %c0_119 = arith.constant 0 : index
    %506 = vector.load %arg9[%c48, %c0_119] : memref<72x896xf32, #tpu.memory_space<vmem>>, vector<8x896xf32>
    %507 = arith.truncf %491 : vector<8x128xf32> to vector<8x128xbf16>
    %cst_120 = arith.constant dense<0.000000e+00> : vector<8x896xf32>
    %508 = tpu.matmul %507, %8, %cst_120 {dimension_numbers = #tpu.dot_dimension_numbers<[1], [0], [0], [1], [0, 0, 1, 1], [], []>} : vector<8x128xbf16>, vector<128x896xbf16>, vector<8x896xf32> -> vector<8x896xf32>
    %509 = arith.addf %506, %508 : vector<8x896xf32>
    %510 = vector.extract_strided_slice %509 {offsets = [0, 0], sizes = [8, 128], strides = [1, 1]} : vector<8x896xf32> to vector<8x128xf32>
    %511 = arith.negf %510 : vector<8x128xf32>
    %512 = math.exp %511 : vector<8x128xf32>
    %cst_121 = arith.constant 1.000000e+00 : f32
    %513 = vector.broadcast %cst_121 : f32 to vector<8x128xf32>
    %514 = arith.addf %513, %512 : vector<8x128xf32>
    %515 = arith.divf %513, %514 : vector<8x128xf32>
    %516 = vector.extract_strided_slice %509 {offsets = [0, 128], sizes = [8, 128], strides = [1, 1]} : vector<8x896xf32> to vector<8x128xf32>
    %517 = arith.negf %516 : vector<8x128xf32>
    %518 = math.exp %517 : vector<8x128xf32>
    %cst_122 = arith.constant 1.000000e+00 : f32
    %519 = vector.broadcast %cst_122 : f32 to vector<8x128xf32>
    %520 = arith.addf %519, %518 : vector<8x128xf32>
    %521 = arith.divf %519, %520 : vector<8x128xf32>
    %522 = vector.extract_strided_slice %509 {offsets = [0, 256], sizes = [8, 128], strides = [1, 1]} : vector<8x896xf32> to vector<8x128xf32>
    %523 = arith.negf %522 : vector<8x128xf32>
    %524 = math.exp %523 : vector<8x128xf32>
    %cst_123 = arith.constant 1.000000e+00 : f32
    %525 = vector.broadcast %cst_123 : f32 to vector<8x128xf32>
    %526 = arith.addf %525, %524 : vector<8x128xf32>
    %527 = arith.divf %525, %526 : vector<8x128xf32>
    %528 = vector.extract_strided_slice %509 {offsets = [0, 384], sizes = [8, 128], strides = [1, 1]} : vector<8x896xf32> to vector<8x128xf32>
    %529 = math.tanh %528 : vector<8x128xf32>
    %530 = vector.extract_strided_slice %509 {offsets = [0, 512], sizes = [8, 128], strides = [1, 1]} : vector<8x896xf32> to vector<8x128xf32>
    %531 = arith.negf %530 : vector<8x128xf32>
    %532 = math.exp %531 : vector<8x128xf32>
    %cst_124 = arith.constant 1.000000e+00 : f32
    %533 = vector.broadcast %cst_124 : f32 to vector<8x128xf32>
    %534 = arith.addf %533, %532 : vector<8x128xf32>
    %535 = arith.divf %533, %534 : vector<8x128xf32>
    %536 = vector.extract_strided_slice %509 {offsets = [0, 640], sizes = [8, 128], strides = [1, 1]} : vector<8x896xf32> to vector<8x128xf32>
    %537 = arith.negf %536 : vector<8x128xf32>
    %538 = math.exp %537 : vector<8x128xf32>
    %cst_125 = arith.constant 1.000000e+00 : f32
    %539 = vector.broadcast %cst_125 : f32 to vector<8x128xf32>
    %540 = arith.addf %539, %538 : vector<8x128xf32>
    %541 = arith.divf %539, %540 : vector<8x128xf32>
    %542 = vector.extract_strided_slice %509 {offsets = [0, 768], sizes = [8, 128], strides = [1, 1]} : vector<8x896xf32> to vector<8x128xf32>
    %cst_126 = arith.constant 1.000000e+00 : f32
    %543 = vector.broadcast %cst_126 : f32 to vector<8x128xf32>
    %544 = arith.mulf %543, %542 : vector<8x128xf32>
    %cst_127 = arith.constant 2.000000e+01 : f32
    %545 = vector.broadcast %cst_127 : f32 to vector<8x128xf32>
    %546 = arith.cmpf ogt, %544, %545 : vector<8x128xf32>
    %cst_128 = arith.constant 2.000000e+01 : f32
    %547 = vector.broadcast %cst_128 : f32 to vector<8x128xf32>
    %548 = arith.minimumf %544, %547 : vector<8x128xf32>
    %549 = math.exp %548 : vector<8x128xf32>
    %cst_129 = arith.constant 1.000000e+00 : f32
    %550 = vector.broadcast %cst_129 : f32 to vector<8x128xf32>
    %551 = arith.addf %550, %549 : vector<8x128xf32>
    %552 = math.log %551 : vector<8x128xf32>
    %cst_130 = arith.constant 1.000000e+00 : f32
    %553 = vector.broadcast %cst_130 : f32 to vector<8x128xf32>
    %554 = arith.divf %552, %553 : vector<8x128xf32>
    %555 = arith.select %546, %542, %554 : vector<8x128xi1>, vector<8x128xf32>
    %556 = arith.mulf %521, %489 : vector<8x128xf32>
    %557 = arith.mulf %515, %529 : vector<8x128xf32>
    %558 = arith.addf %556, %557 : vector<8x128xf32>
    %559 = arith.mulf %541, %479 : vector<8x128xf32>
    %560 = arith.mulf %535, %529 : vector<8x128xf32>
    %561 = arith.addf %559, %560 : vector<8x128xf32>
    %562 = vector.extract_strided_slice %10 {offsets = [48, 0], sizes = [8, 1], strides = [1, 1]} : vector<72x8xf32> to vector<8x1xf32>
    %563 = vector.extract_strided_slice %10 {offsets = [48, 1], sizes = [8, 1], strides = [1, 1]} : vector<72x8xf32> to vector<8x1xf32>
    %564 = arith.subf %558, %561 : vector<8x128xf32>
    %cst_131 = arith.constant 0.000000e+00 : f32
    %565 = vector.broadcast %cst_131 : f32 to vector<8x128xf32>
    %566 = arith.subf %565, %555 : vector<8x128xf32>
    %567 = vector.broadcast %562 : vector<8x1xf32> to vector<8x128xf32>
    %568 = arith.mulf %566, %567 : vector<8x128xf32>
    %569 = math.exp %568 : vector<8x128xf32>
    %570 = arith.mulf %564, %569 : vector<8x128xf32>
    %571 = arith.addf %561, %570 : vector<8x128xf32>
    %572 = math.tanh %571 : vector<8x128xf32>
    %573 = arith.mulf %527, %572 : vector<8x128xf32>
    %574 = arith.subf %558, %561 : vector<8x128xf32>
    %cst_132 = arith.constant 0.000000e+00 : f32
    %575 = vector.broadcast %cst_132 : f32 to vector<8x128xf32>
    %576 = arith.subf %575, %555 : vector<8x128xf32>
    %577 = vector.broadcast %563 : vector<8x1xf32> to vector<8x128xf32>
    %578 = arith.mulf %576, %577 : vector<8x128xf32>
    %579 = math.exp %578 : vector<8x128xf32>
    %580 = arith.mulf %574, %579 : vector<8x128xf32>
    %581 = arith.addf %561, %580 : vector<8x128xf32>
    %582 = math.tanh %581 : vector<8x128xf32>
    %583 = arith.mulf %527, %582 : vector<8x128xf32>
    %584 = arith.truncf %573 : vector<8x128xf32> to vector<8x128xbf16>
    %c48_133 = arith.constant 48 : index
    %c0_134 = arith.constant 0 : index
    %585 = vector.load %arg10[%c48_133, %c0_134] : memref<144x128xbf16, #tpu.memory_space<vmem>>, vector<8x128xbf16>
    tpu.vector_store %arg10[%c48_133, %c0_134], %584 {strides = array<i32>} : memref<144x128xbf16, #tpu.memory_space<vmem>>, vector<8x128xbf16>,
    %586 = arith.truncf %583 : vector<8x128xf32> to vector<8x128xbf16>
    %c120 = arith.constant 120 : index
    %c0_135 = arith.constant 0 : index
    %587 = vector.load %arg10[%c120, %c0_135] : memref<144x128xbf16, #tpu.memory_space<vmem>>, vector<8x128xbf16>
    tpu.vector_store %arg10[%c120, %c0_135], %586 {strides = array<i32>} : memref<144x128xbf16, #tpu.memory_space<vmem>>, vector<8x128xbf16>,
    %c56 = arith.constant 56 : index
    %c0_136 = arith.constant 0 : index
    %588 = vector.load %arg9[%c56, %c0_136] : memref<72x896xf32, #tpu.memory_space<vmem>>, vector<8x896xf32>
    %589 = arith.truncf %573 : vector<8x128xf32> to vector<8x128xbf16>
    %cst_137 = arith.constant dense<0.000000e+00> : vector<8x896xf32>
    %590 = tpu.matmul %589, %8, %cst_137 {dimension_numbers = #tpu.dot_dimension_numbers<[1], [0], [0], [1], [0, 0, 1, 1], [], []>} : vector<8x128xbf16>, vector<128x896xbf16>, vector<8x896xf32> -> vector<8x896xf32>
    %591 = arith.addf %588, %590 : vector<8x896xf32>
    %592 = vector.extract_strided_slice %591 {offsets = [0, 0], sizes = [8, 128], strides = [1, 1]} : vector<8x896xf32> to vector<8x128xf32>
    %593 = arith.negf %592 : vector<8x128xf32>
    %594 = math.exp %593 : vector<8x128xf32>
    %cst_138 = arith.constant 1.000000e+00 : f32
    %595 = vector.broadcast %cst_138 : f32 to vector<8x128xf32>
    %596 = arith.addf %595, %594 : vector<8x128xf32>
    %597 = arith.divf %595, %596 : vector<8x128xf32>
    %598 = vector.extract_strided_slice %591 {offsets = [0, 128], sizes = [8, 128], strides = [1, 1]} : vector<8x896xf32> to vector<8x128xf32>
    %599 = arith.negf %598 : vector<8x128xf32>
    %600 = math.exp %599 : vector<8x128xf32>
    %cst_139 = arith.constant 1.000000e+00 : f32
    %601 = vector.broadcast %cst_139 : f32 to vector<8x128xf32>
    %602 = arith.addf %601, %600 : vector<8x128xf32>
    %603 = arith.divf %601, %602 : vector<8x128xf32>
    %604 = vector.extract_strided_slice %591 {offsets = [0, 256], sizes = [8, 128], strides = [1, 1]} : vector<8x896xf32> to vector<8x128xf32>
    %605 = arith.negf %604 : vector<8x128xf32>
    %606 = math.exp %605 : vector<8x128xf32>
    %cst_140 = arith.constant 1.000000e+00 : f32
    %607 = vector.broadcast %cst_140 : f32 to vector<8x128xf32>
    %608 = arith.addf %607, %606 : vector<8x128xf32>
    %609 = arith.divf %607, %608 : vector<8x128xf32>
    %610 = vector.extract_strided_slice %591 {offsets = [0, 384], sizes = [8, 128], strides = [1, 1]} : vector<8x896xf32> to vector<8x128xf32>
    %611 = math.tanh %610 : vector<8x128xf32>
    %612 = vector.extract_strided_slice %591 {offsets = [0, 512], sizes = [8, 128], strides = [1, 1]} : vector<8x896xf32> to vector<8x128xf32>
    %613 = arith.negf %612 : vector<8x128xf32>
    %614 = math.exp %613 : vector<8x128xf32>
    %cst_141 = arith.constant 1.000000e+00 : f32
    %615 = vector.broadcast %cst_141 : f32 to vector<8x128xf32>
    %616 = arith.addf %615, %614 : vector<8x128xf32>
    %617 = arith.divf %615, %616 : vector<8x128xf32>
    %618 = vector.extract_strided_slice %591 {offsets = [0, 640], sizes = [8, 128], strides = [1, 1]} : vector<8x896xf32> to vector<8x128xf32>
    %619 = arith.negf %618 : vector<8x128xf32>
    %620 = math.exp %619 : vector<8x128xf32>
    %cst_142 = arith.constant 1.000000e+00 : f32
    %621 = vector.broadcast %cst_142 : f32 to vector<8x128xf32>
    %622 = arith.addf %621, %620 : vector<8x128xf32>
    %623 = arith.divf %621, %622 : vector<8x128xf32>
    %624 = vector.extract_strided_slice %591 {offsets = [0, 768], sizes = [8, 128], strides = [1, 1]} : vector<8x896xf32> to vector<8x128xf32>
    %cst_143 = arith.constant 1.000000e+00 : f32
    %625 = vector.broadcast %cst_143 : f32 to vector<8x128xf32>
    %626 = arith.mulf %625, %624 : vector<8x128xf32>
    %cst_144 = arith.constant 2.000000e+01 : f32
    %627 = vector.broadcast %cst_144 : f32 to vector<8x128xf32>
    %628 = arith.cmpf ogt, %626, %627 : vector<8x128xf32>
    %cst_145 = arith.constant 2.000000e+01 : f32
    %629 = vector.broadcast %cst_145 : f32 to vector<8x128xf32>
    %630 = arith.minimumf %626, %629 : vector<8x128xf32>
    %631 = math.exp %630 : vector<8x128xf32>
    %cst_146 = arith.constant 1.000000e+00 : f32
    %632 = vector.broadcast %cst_146 : f32 to vector<8x128xf32>
    %633 = arith.addf %632, %631 : vector<8x128xf32>
    %634 = math.log %633 : vector<8x128xf32>
    %cst_147 = arith.constant 1.000000e+00 : f32
    %635 = vector.broadcast %cst_147 : f32 to vector<8x128xf32>
    %636 = arith.divf %634, %635 : vector<8x128xf32>
    %637 = arith.select %628, %624, %636 : vector<8x128xi1>, vector<8x128xf32>
    %638 = arith.mulf %603, %571 : vector<8x128xf32>
    %639 = arith.mulf %597, %611 : vector<8x128xf32>
    %640 = arith.addf %638, %639 : vector<8x128xf32>
    %641 = arith.mulf %623, %561 : vector<8x128xf32>
    %642 = arith.mulf %617, %611 : vector<8x128xf32>
    %643 = arith.addf %641, %642 : vector<8x128xf32>
    %644 = vector.extract_strided_slice %10 {offsets = [56, 0], sizes = [8, 1], strides = [1, 1]} : vector<72x8xf32> to vector<8x1xf32>
    %645 = vector.extract_strided_slice %10 {offsets = [56, 1], sizes = [8, 1], strides = [1, 1]} : vector<72x8xf32> to vector<8x1xf32>
    %646 = arith.subf %640, %643 : vector<8x128xf32>
    %cst_148 = arith.constant 0.000000e+00 : f32
    %647 = vector.broadcast %cst_148 : f32 to vector<8x128xf32>
    %648 = arith.subf %647, %637 : vector<8x128xf32>
    %649 = vector.broadcast %644 : vector<8x1xf32> to vector<8x128xf32>
    %650 = arith.mulf %648, %649 : vector<8x128xf32>
    %651 = math.exp %650 : vector<8x128xf32>
    %652 = arith.mulf %646, %651 : vector<8x128xf32>
    %653 = arith.addf %643, %652 : vector<8x128xf32>
    %654 = math.tanh %653 : vector<8x128xf32>
    %655 = arith.mulf %609, %654 : vector<8x128xf32>
    %656 = arith.subf %640, %643 : vector<8x128xf32>
    %cst_149 = arith.constant 0.000000e+00 : f32
    %657 = vector.broadcast %cst_149 : f32 to vector<8x128xf32>
    %658 = arith.subf %657, %637 : vector<8x128xf32>
    %659 = vector.broadcast %645 : vector<8x1xf32> to vector<8x128xf32>
    %660 = arith.mulf %658, %659 : vector<8x128xf32>
    %661 = math.exp %660 : vector<8x128xf32>
    %662 = arith.mulf %656, %661 : vector<8x128xf32>
    %663 = arith.addf %643, %662 : vector<8x128xf32>
    %664 = math.tanh %663 : vector<8x128xf32>
    %665 = arith.mulf %609, %664 : vector<8x128xf32>
    %666 = arith.truncf %655 : vector<8x128xf32> to vector<8x128xbf16>
    %c56_150 = arith.constant 56 : index
    %c0_151 = arith.constant 0 : index
    %667 = vector.load %arg10[%c56_150, %c0_151] : memref<144x128xbf16, #tpu.memory_space<vmem>>, vector<8x128xbf16>
    tpu.vector_store %arg10[%c56_150, %c0_151], %666 {strides = array<i32>} : memref<144x128xbf16, #tpu.memory_space<vmem>>, vector<8x128xbf16>,
    %668 = arith.truncf %665 : vector<8x128xf32> to vector<8x128xbf16>
    %c128 = arith.constant 128 : index
    %c0_152 = arith.constant 0 : index
    %669 = vector.load %arg10[%c128, %c0_152] : memref<144x128xbf16, #tpu.memory_space<vmem>>, vector<8x128xbf16>
    tpu.vector_store %arg10[%c128, %c0_152], %668 {strides = array<i32>} : memref<144x128xbf16, #tpu.memory_space<vmem>>, vector<8x128xbf16>,
    %c64 = arith.constant 64 : index
    %c0_153 = arith.constant 0 : index
    %670 = vector.load %arg9[%c64, %c0_153] : memref<72x896xf32, #tpu.memory_space<vmem>>, vector<8x896xf32>
    %671 = arith.truncf %655 : vector<8x128xf32> to vector<8x128xbf16>
    %cst_154 = arith.constant dense<0.000000e+00> : vector<8x896xf32>
    %672 = tpu.matmul %671, %8, %cst_154 {dimension_numbers = #tpu.dot_dimension_numbers<[1], [0], [0], [1], [0, 0, 1, 1], [], []>} : vector<8x128xbf16>, vector<128x896xbf16>, vector<8x896xf32> -> vector<8x896xf32>
    %673 = arith.addf %670, %672 : vector<8x896xf32>
    %674 = vector.extract_strided_slice %673 {offsets = [0, 0], sizes = [8, 128], strides = [1, 1]} : vector<8x896xf32> to vector<8x128xf32>
    %675 = arith.negf %674 : vector<8x128xf32>
    %676 = math.exp %675 : vector<8x128xf32>
    %cst_155 = arith.constant 1.000000e+00 : f32
    %677 = vector.broadcast %cst_155 : f32 to vector<8x128xf32>
    %678 = arith.addf %677, %676 : vector<8x128xf32>
    %679 = arith.divf %677, %678 : vector<8x128xf32>
    %680 = vector.extract_strided_slice %673 {offsets = [0, 128], sizes = [8, 128], strides = [1, 1]} : vector<8x896xf32> to vector<8x128xf32>
    %681 = arith.negf %680 : vector<8x128xf32>
    %682 = math.exp %681 : vector<8x128xf32>
    %cst_156 = arith.constant 1.000000e+00 : f32
    %683 = vector.broadcast %cst_156 : f32 to vector<8x128xf32>
    %684 = arith.addf %683, %682 : vector<8x128xf32>
    %685 = arith.divf %683, %684 : vector<8x128xf32>
    %686 = vector.extract_strided_slice %673 {offsets = [0, 256], sizes = [8, 128], strides = [1, 1]} : vector<8x896xf32> to vector<8x128xf32>
    %687 = arith.negf %686 : vector<8x128xf32>
    %688 = math.exp %687 : vector<8x128xf32>
    %cst_157 = arith.constant 1.000000e+00 : f32
    %689 = vector.broadcast %cst_157 : f32 to vector<8x128xf32>
    %690 = arith.addf %689, %688 : vector<8x128xf32>
    %691 = arith.divf %689, %690 : vector<8x128xf32>
    %692 = vector.extract_strided_slice %673 {offsets = [0, 384], sizes = [8, 128], strides = [1, 1]} : vector<8x896xf32> to vector<8x128xf32>
    %693 = math.tanh %692 : vector<8x128xf32>
    %694 = vector.extract_strided_slice %673 {offsets = [0, 512], sizes = [8, 128], strides = [1, 1]} : vector<8x896xf32> to vector<8x128xf32>
    %695 = arith.negf %694 : vector<8x128xf32>
    %696 = math.exp %695 : vector<8x128xf32>
    %cst_158 = arith.constant 1.000000e+00 : f32
    %697 = vector.broadcast %cst_158 : f32 to vector<8x128xf32>
    %698 = arith.addf %697, %696 : vector<8x128xf32>
    %699 = arith.divf %697, %698 : vector<8x128xf32>
    %700 = vector.extract_strided_slice %673 {offsets = [0, 640], sizes = [8, 128], strides = [1, 1]} : vector<8x896xf32> to vector<8x128xf32>
    %701 = arith.negf %700 : vector<8x128xf32>
    %702 = math.exp %701 : vector<8x128xf32>
    %cst_159 = arith.constant 1.000000e+00 : f32
    %703 = vector.broadcast %cst_159 : f32 to vector<8x128xf32>
    %704 = arith.addf %703, %702 : vector<8x128xf32>
    %705 = arith.divf %703, %704 : vector<8x128xf32>
    %706 = vector.extract_strided_slice %673 {offsets = [0, 768], sizes = [8, 128], strides = [1, 1]} : vector<8x896xf32> to vector<8x128xf32>
    %cst_160 = arith.constant 1.000000e+00 : f32
    %707 = vector.broadcast %cst_160 : f32 to vector<8x128xf32>
    %708 = arith.mulf %707, %706 : vector<8x128xf32>
    %cst_161 = arith.constant 2.000000e+01 : f32
    %709 = vector.broadcast %cst_161 : f32 to vector<8x128xf32>
    %710 = arith.cmpf ogt, %708, %709 : vector<8x128xf32>
    %cst_162 = arith.constant 2.000000e+01 : f32
    %711 = vector.broadcast %cst_162 : f32 to vector<8x128xf32>
    %712 = arith.minimumf %708, %711 : vector<8x128xf32>
    %713 = math.exp %712 : vector<8x128xf32>
    %cst_163 = arith.constant 1.000000e+00 : f32
    %714 = vector.broadcast %cst_163 : f32 to vector<8x128xf32>
    %715 = arith.addf %714, %713 : vector<8x128xf32>
    %716 = math.log %715 : vector<8x128xf32>
    %cst_164 = arith.constant 1.000000e+00 : f32
    %717 = vector.broadcast %cst_164 : f32 to vector<8x128xf32>
    %718 = arith.divf %716, %717 : vector<8x128xf32>
    %719 = arith.select %710, %706, %718 : vector<8x128xi1>, vector<8x128xf32>
    %720 = arith.mulf %685, %653 : vector<8x128xf32>
    %721 = arith.mulf %679, %693 : vector<8x128xf32>
    %722 = arith.addf %720, %721 : vector<8x128xf32>
    %723 = arith.mulf %705, %643 : vector<8x128xf32>
    %724 = arith.mulf %699, %693 : vector<8x128xf32>
    %725 = arith.addf %723, %724 : vector<8x128xf32>
    %726 = vector.extract_strided_slice %10 {offsets = [64, 0], sizes = [8, 1], strides = [1, 1]} : vector<72x8xf32> to vector<8x1xf32>
    %727 = vector.extract_strided_slice %10 {offsets = [64, 1], sizes = [8, 1], strides = [1, 1]} : vector<72x8xf32> to vector<8x1xf32>
    %728 = arith.subf %722, %725 : vector<8x128xf32>
    %cst_165 = arith.constant 0.000000e+00 : f32
    %729 = vector.broadcast %cst_165 : f32 to vector<8x128xf32>
    %730 = arith.subf %729, %719 : vector<8x128xf32>
    %731 = vector.broadcast %726 : vector<8x1xf32> to vector<8x128xf32>
    %732 = arith.mulf %730, %731 : vector<8x128xf32>
    %733 = math.exp %732 : vector<8x128xf32>
    %734 = arith.mulf %728, %733 : vector<8x128xf32>
    %735 = arith.addf %725, %734 : vector<8x128xf32>
    %736 = math.tanh %735 : vector<8x128xf32>
    %737 = arith.mulf %691, %736 : vector<8x128xf32>
    %738 = arith.subf %722, %725 : vector<8x128xf32>
    %cst_166 = arith.constant 0.000000e+00 : f32
    %739 = vector.broadcast %cst_166 : f32 to vector<8x128xf32>
    %740 = arith.subf %739, %719 : vector<8x128xf32>
    %741 = vector.broadcast %727 : vector<8x1xf32> to vector<8x128xf32>
    %742 = arith.mulf %740, %741 : vector<8x128xf32>
    %743 = math.exp %742 : vector<8x128xf32>
    %744 = arith.mulf %738, %743 : vector<8x128xf32>
    %745 = arith.addf %725, %744 : vector<8x128xf32>
    %746 = math.tanh %745 : vector<8x128xf32>
    %747 = arith.mulf %691, %746 : vector<8x128xf32>
    %748 = arith.truncf %737 : vector<8x128xf32> to vector<8x128xbf16>
    %c64_167 = arith.constant 64 : index
    %c0_168 = arith.constant 0 : index
    %749 = vector.load %arg10[%c64_167, %c0_168] : memref<144x128xbf16, #tpu.memory_space<vmem>>, vector<8x128xbf16>
    tpu.vector_store %arg10[%c64_167, %c0_168], %748 {strides = array<i32>} : memref<144x128xbf16, #tpu.memory_space<vmem>>, vector<8x128xbf16>,
    %750 = arith.truncf %747 : vector<8x128xf32> to vector<8x128xbf16>
    %c136 = arith.constant 136 : index
    %c0_169 = arith.constant 0 : index
    %751 = vector.load %arg10[%c136, %c0_169] : memref<144x128xbf16, #tpu.memory_space<vmem>>, vector<8x128xbf16>
    tpu.vector_store %arg10[%c136, %c0_169], %750 {strides = array<i32>} : memref<144x128xbf16, #tpu.memory_space<vmem>>, vector<8x128xbf16>,
    %c0_170 = arith.constant 0 : index
    %c0_171 = arith.constant 0 : index
    %752 = vector.load %arg10[%c0_170, %c0_171] : memref<144x128xbf16, #tpu.memory_space<vmem>>, vector<144x128xbf16>
    %c0_172 = arith.constant 0 : index
    %c0_173 = arith.constant 0 : index
    %753 = vector.load %arg6[%c0_172, %c0_173] : memref<128x128xbf16, #tpu.memory_space<vmem>>, vector<128x128xbf16>
    %cst_174 = arith.constant dense<0.000000e+00> : vector<144x128xf32>
    %754 = tpu.matmul %752, %753, %cst_174 {dimension_numbers = #tpu.dot_dimension_numbers<[1], [0], [0], [1], [0, 0, 1, 1], [], []>} : vector<144x128xbf16>, vector<128x128xbf16>, vector<144x128xf32> -> vector<144x128xf32>
    %cst_175 = arith.constant 1.000000e+00 : f32
    %755 = vector.broadcast %cst_175 : f32 to vector<144x128xf32>
    %756 = arith.mulf %755, %754 : vector<144x128xf32>
    %cst_176 = arith.constant 2.000000e+01 : f32
    %757 = vector.broadcast %cst_176 : f32 to vector<144x128xf32>
    %758 = arith.cmpf ogt, %756, %757 : vector<144x128xf32>
    %cst_177 = arith.constant 2.000000e+01 : f32
    %759 = vector.broadcast %cst_177 : f32 to vector<144x128xf32>
    %760 = arith.minimumf %756, %759 : vector<144x128xf32>
    %761 = math.exp %760 : vector<144x128xf32>
    %cst_178 = arith.constant 1.000000e+00 : f32
    %762 = vector.broadcast %cst_178 : f32 to vector<144x128xf32>
    %763 = arith.addf %762, %761 : vector<144x128xf32>
    %764 = math.log %763 : vector<144x128xf32>
    %cst_179 = arith.constant 1.000000e+00 : f32
    %765 = vector.broadcast %cst_179 : f32 to vector<144x128xf32>
    %766 = arith.divf %764, %765 : vector<144x128xf32>
    %767 = arith.select %758, %754, %766 : vector<144x128xi1>, vector<144x128xf32>
    %768 = vector.extract_strided_slice %767 {offsets = [0, 0], sizes = [72, 128], strides = [1, 1]} : vector<144x128xf32> to vector<72x128xf32>
    %769 = vector.extract_strided_slice %767 {offsets = [72, 0], sizes = [72, 128], strides = [1, 1]} : vector<144x128xf32> to vector<72x128xf32>
    %770 = arith.truncf %769 : vector<72x128xf32> to vector<72x128xbf16>
    %c0_180 = arith.constant 0 : index
    %c0_181 = arith.constant 0 : index
    %c0_182 = arith.constant 0 : index
    %771 = vector.load %arg7[%c0_180, %c0_181, %c0_182] : memref<1x72x128xbf16, #tpu.memory_space<vmem>>, vector<1x72x128xbf16>
    %772 = vector.shape_cast %771 : vector<1x72x128xbf16> to vector<72x128xbf16>
    %773 = vector.shape_cast %770 : vector<72x128xbf16> to vector<1x72x128xbf16>
    tpu.vector_store %arg7[%c0_180, %c0_181, %c0_182], %773 {strides = array<i32>} : memref<1x72x128xbf16, #tpu.memory_space<vmem>>, vector<1x72x128xbf16>,
    %774 = vector.extract_strided_slice %10 {offsets = [0, 2], sizes = [72, 1], strides = [1, 1]} : vector<72x8xf32> to vector<72x1xf32>
    %775 = vector.extract_strided_slice %10 {offsets = [0, 3], sizes = [72, 1], strides = [1, 1]} : vector<72x8xf32> to vector<72x1xf32>
    %776 = vector.extract_strided_slice %10 {offsets = [0, 4], sizes = [72, 1], strides = [1, 1]} : vector<72x8xf32> to vector<72x1xf32>
    %777 = arith.fptosi %776 : vector<72x1xf32> to vector<72x1xi32>
    %778 = tpu.iota {dimensions = array<i32: 1>} : vector<72x128xi32>
    %cst_183 = arith.constant 2.22044605E-16 : f32
    %779 = vector.broadcast %cst_183 : f32 to vector<72x128xf32>
    %780 = arith.addf %768, %779 : vector<72x128xf32>
    %781 = math.log %780 : vector<72x128xf32>
    %782 = vector.broadcast %777 : vector<72x1xi32> to vector<72x128xi32>
    %783 = arith.cmpi eq, %778, %782 : vector<72x128xi32>
    %cst_184 = arith.constant 0.000000e+00 : f32
    %784 = vector.broadcast %cst_184 : f32 to vector<72x128xf32>
    %785 = arith.select %783, %781, %784 : vector<72x128xi1>, vector<72x128xf32>
    %cst_185 = arith.constant dense<0.000000e+00> : vector<72xf32>
    %786 = vector.multi_reduction <add>, %785, %cst_185 [1] : vector<72x128xf32> to vector<72xf32>
    %787 = vector.shape_cast %786 : vector<72xf32> to vector<72x1xf32>
    %c5_i32 = arith.constant 5 : i32
    %788 = vector.broadcast %c5_i32 : i32 to vector<72x128xi32>
    %789 = arith.cmpi slt, %778, %788 : vector<72x128xi32>
    %cst_186 = arith.constant 0.000000e+00 : f32
    %790 = vector.broadcast %cst_186 : f32 to vector<72x128xf32>
    %791 = arith.select %789, %769, %790 : vector<72x128xi1>, vector<72x128xf32>
    %cst_187 = arith.constant dense<0.000000e+00> : vector<72xf32>
    %792 = vector.multi_reduction <add>, %791, %cst_187 [1] : vector<72x128xf32> to vector<72xf32>
    %793 = vector.shape_cast %792 : vector<72xf32> to vector<72x1xf32>
    %794 = arith.mulf %787, %774 : vector<72x1xf32>
    %795 = arith.mulf %793, %775 : vector<72x1xf32>
    %796 = arith.subf %794, %795 : vector<72x1xf32>
    %cst_188 = arith.constant dense<0.000000e+00> : vector<1xf32>
    %797 = vector.multi_reduction <add>, %796, %cst_188 [0] : vector<72x1xf32> to vector<1xf32>
    %798 = vector.shape_cast %797 : vector<1xf32> to vector<1x1xf32>
    %cst_189 = arith.constant 0.000000e+00 : f32
    %799 = vector.broadcast %cst_189 : f32 to vector<1x1xf32>
    %800 = arith.subf %799, %798 : vector<1x1xf32>
    %cst_190 = arith.constant dense<0.000000e+00> : vector<1xf32>
    %801 = vector.multi_reduction <add>, %774, %cst_190 [0] : vector<72x1xf32> to vector<1xf32>
    %802 = vector.shape_cast %801 : vector<1xf32> to vector<1x1xf32>
    %803 = tpu.iota {dimensions = array<i32: 1>} : vector<8x128xi32>
    %c0_i32 = arith.constant 0 : i32
    %804 = vector.broadcast %c0_i32 : i32 to vector<8x128xi32>
    %805 = arith.cmpi eq, %803, %804 : vector<8x128xi32>
    %c1_i32 = arith.constant 1 : i32
    %806 = vector.broadcast %c1_i32 : i32 to vector<8x128xi32>
    %807 = arith.cmpi eq, %803, %806 : vector<8x128xi32>
    %cst_191 = arith.constant 0.000000e+00 : f32
    %808 = vector.shape_cast %802 : vector<1x1xf32> to vector<1x1xf32>
    %809 = vector.broadcast %808 : vector<1x1xf32> to vector<8x128xf32>
    %810 = vector.broadcast %cst_191 : f32 to vector<8x128xf32>
    %811 = arith.select %807, %809, %810 : vector<8x128xi1>, vector<8x128xf32>
    %812 = vector.shape_cast %800 : vector<1x1xf32> to vector<1x1xf32>
    %813 = vector.broadcast %812 : vector<1x1xf32> to vector<8x128xf32>
    %814 = arith.select %805, %813, %811 : vector<8x128xi1>, vector<8x128xf32>
    %c0_192 = arith.constant 0 : index
    %c0_193 = arith.constant 0 : index
    %c0_194 = arith.constant 0 : index
    %815 = vector.load %arg8[%c0_192, %c0_193, %c0_194] : memref<1x8x128xf32, #tpu.memory_space<vmem>>, vector<1x8x128xf32>
    %816 = vector.shape_cast %815 : vector<1x8x128xf32> to vector<8x128xf32>
    %817 = vector.shape_cast %814 : vector<8x128xf32> to vector<1x8x128xf32>
    tpu.vector_store %arg8[%c0_192, %c0_193, %c0_194], %817 {strides = array<i32>} : memref<1x8x128xf32, #tpu.memory_space<vmem>>, vector<1x8x128xf32>,
    return
  }
  func.func @transform_0(%arg0: i32) -> (i32, i32, i32) {
    %c0_i32 = arith.constant 0 : i32
    %c0_i32_0 = arith.constant 0 : i32
    %c0_i32_1 = arith.constant 0 : i32
    return %arg0, %c0_i32, %c0_i32_0 : i32, i32, i32
  }
  func.func @transform_1(%arg0: i32) -> (i32, i32, i32) {
    %c0_i32 = arith.constant 0 : i32
    %c0_i32_0 = arith.constant 0 : i32
    %c0_i32_1 = arith.constant 0 : i32
    return %arg0, %c0_i32, %c0_i32_0 : i32, i32, i32
  }
  func.func @transform_2(%arg0: i32) -> (i32, i32) {
    %c0_i32 = arith.constant 0 : i32
    %c0_i32_0 = arith.constant 0 : i32
    %c0_i32_1 = arith.constant 0 : i32
    return %c0_i32, %c0_i32_0 : i32, i32
  }
  func.func @transform_3(%arg0: i32) -> (i32, i32) {
    %c0_i32 = arith.constant 0 : i32
    %c0_i32_0 = arith.constant 0 : i32
    %c0_i32_1 = arith.constant 0 : i32
    return %c0_i32, %c0_i32_0 : i32, i32
  }
  func.func @transform_4(%arg0: i32) -> (i32, i32) {
    %c0_i32 = arith.constant 0 : i32
    %c0_i32_0 = arith.constant 0 : i32
    %c0_i32_1 = arith.constant 0 : i32
    return %c0_i32, %c0_i32_0 : i32, i32
  }
  func.func @transform_5(%arg0: i32) -> (i32, i32) {
    %c0_i32 = arith.constant 0 : i32
    %c0_i32_0 = arith.constant 0 : i32
    %c0_i32_1 = arith.constant 0 : i32
    return %c0_i32, %c0_i32_0 : i32, i32
  }
  func.func @transform_6(%arg0: i32) -> (i32, i32, i32) {
    %c0_i32 = arith.constant 0 : i32
    %c0_i32_0 = arith.constant 0 : i32
    %c0_i32_1 = arith.constant 0 : i32
    return %arg0, %c0_i32, %c0_i32_0 : i32, i32, i32
  }
  func.func @transform_7(%arg0: i32) -> (i32, i32, i32) {
    %c0_i32 = arith.constant 0 : i32
    %c0_i32_0 = arith.constant 0 : i32
    %c0_i32_1 = arith.constant 0 : i32
    return %arg0, %c0_i32, %c0_i32_0 : i32, i32, i32
  }
}

</mosaic_0001>

<bundles_post_ra>
// kernel: tpu_custom_call.1
= control target key start
LH: loop header
LB: loop body
LE: loop exit
PB: predicated region body
PF: predicated region fallthrough
CT: control target
= control target key end

     0   :  { %13 = vsyncpa [#allocation5], 0  ;;  %s7499_s0 = inlined_call_operand.hbm [shape: bf16[1,72,128], index: 0, kind: input, shape index: {}]   ;;  %s7500_s1 = inlined_call_operand.vmem [shape: f32[1,72,8], index: 1, kind: input, shape index: {}]   ;;  %s7501_s2 = inlined_call_operand.hbm [shape: bf16[128,896], index: 2, kind: input, shape index: {}]   ;;  %s7502_s3 = inlined_call_operand.hbm [shape: bf16[128,896], index: 3, kind: input, shape index: {}]   ;;  %s7503_s4 = inlined_call_operand.vmem [shape: f32[1,896], index: 4, kind: input, shape index: {}]   ;;  %s7504_s5 = inlined_call_operand.vmem [shape: bf16[128,128], index: 5, kind: input, shape index: {}]   ;;  %s7505_s6 = inlined_call_operand.hbm [shape: bf16[1,72,128], index: 6, kind: output, shape index: {0}]   ;;  %s7506_s7 = inlined_call_operand.hbm [shape: f32[1,8,128], index: 7, kind: output, shape index: {1}]  }
   0x1   :  { %14 = vsyncpa [#allocation8], 0 }
   0x2   :  { %15 = vsyncpa [#allocation6], 0 }
   0x3   :  { %16 = vsyncpa [#allocation12], 0  ;;  %s5677_s24 = smov [#allocation7]   ;;  %s5559_s28 = scalar_lea.hbm %s7501_s2, 7168 }
   0x4   :  { %s36_s25 = sshll.u32 %s5677_s24, 4  ;;  %p5560_p0 = scmp.ne.s32.totalorder %s7501_s2, %s5559_s28  ;;  %s37_s25 = int_to_ptr.vmem [resolvable:$true] %s36_s25 }
   0x5   :  { %p5563_p1 = scmp.lt.u32.totalorder %s5559_s28, %s7501_s2 }
   0x7   :  { %p5565_p2 = pnand %p5563_p1, %p5560_p0 }
   0x9   :  { %5568 = shalt.err (!%p5565_p2)
}
   0xa   :  { %s5569_s10 = scalar_lea.vmem %s37_s25, 7168  ;;  %p5574_p4 = scmp.lt.s32.totalorder %s37_s25, %s37_s25 }
   0xb   :  { %p5570_p3 = scmp.ne.s32.totalorder %s37_s25, %s5569_s10  ;;  %p5575_p5 = scmp.lt.s32.totalorder %s5569_s10, %s5569_s10 }
   0xd   :  { %p5576_p6 = por %p5575_p5, %p5574_p4 }
   0xf   :  { %p5577_p7 = pnand %p5576_p6, %p5570_p3 }
  0x11   :  { %5580 = shalt.err (!%p5577_p7)
}
  0x12   :  { %s5678_s11 = smov 448   ;;  %s5679_s12 = smov 28  }
  0x13   :  { %42 = dma.hbm_to_vmem [thread:$0]  %s7501_s2, 7168, %s37_s25, [#allocation8], %s5678_s11, %s5678_s11, %s5679_s12  }
  0x14   :  { %s5680_s15 = smov [#allocation4]   ;;  %s5581_s19 = scalar_lea.hbm %s7499_s0, 576 }
  0x15   :  { %s22_s16 = sshll.u32 %s5680_s15, 4  ;;  %p5582_p8 = scmp.ne.s32.totalorder %s7499_s0, %s5581_s19  ;;  %s23_s16 = int_to_ptr.vmem [resolvable:$true] %s22_s16 }
  0x16   :  { %p5585_p9 = scmp.lt.u32.totalorder %s5581_s19, %s7499_s0 }
  0x18   :  { %p5587_p10 = pnand %p5585_p9, %p5582_p8 }
  0x1a   :  { %5590 = shalt.err (!%p5587_p10)
}
  0x1b   :  { %s5591_s24 = scalar_lea.vmem %s23_s16, 576  ;;  %p5596_p12 = scmp.lt.s32.totalorder %s23_s16, %s23_s16 }
  0x1c   :  { %p5592_p11 = scmp.ne.s32.totalorder %s23_s16, %s5591_s24  ;;  %p5597_p13 = scmp.lt.s32.totalorder %s5591_s24, %s5591_s24 }
  0x1e   :  { %p5598_p0 = por %p5597_p13, %p5596_p12 }
  0x20   :  { %p5599_p1 = pnand %p5598_p0, %p5592_p11 }
  0x22   :  { %5602 = shalt.err (!%p5599_p1)
}
  0x23   :  { %s5681_s2 = smov 64   ;;  %s5682_s25 = smov 4  }
  0x24   :  { %28 = dma.hbm_to_vmem [thread:$0]  %s7499_s0, 576, %s23_s16, [#allocation5], %s5681_s2, %s5681_s2, %s5682_s25  }
  0x25   :  { %s5683_s28 = smov [#allocation9]   ;;  %s5603_s9 = scalar_lea.hbm %s7502_s3, 7168 }
  0x26   :  { %s48_s29 = sshll.u32 %s5683_s28, 4  ;;  %p5604_p2 = scmp.ne.s32.totalorder %s7502_s3, %s5603_s9  ;;  %s49_s29 = int_to_ptr.vmem [resolvable:$true] %s48_s29 }
  0x27   :  { %p5607_p3 = scmp.lt.u32.totalorder %s5603_s9, %s7502_s3 }
  0x29   :  { %p5609_p4 = pnand %p5607_p3, %p5604_p2 }
  0x2b   :  { %5612 = shalt.err (!%p5609_p4)
}
  0x2c   :  { %s5613_s17 = scalar_lea.vmem %s49_s29, 7168  ;;  %p5618_p6 = scmp.lt.s32.totalorder %s49_s29, %s49_s29 }
  0x2d   :  { %p5614_p5 = scmp.ne.s32.totalorder %s49_s29, %s5613_s17  ;;  %p5619_p7 = scmp.lt.s32.totalorder %s5613_s17, %s5613_s17 }
  0x2f   :  { %p5620_p8 = por %p5619_p7, %p5618_p6 }
  0x31   :  { %p5621_p9 = pnand %p5620_p8, %p5614_p5 }
  0x33   :  { %5624 = shalt.err (!%p5621_p9)
}
  0x34   :  { %54 = dma.hbm_to_vmem [thread:$0]  %s7502_s3, 7168, %s49_s29, [#allocation8], %s5678_s11, %s5678_s11, %s5679_s12  }
  0x35   :  { %5669 = dma.done.wait [#allocation5], 576  }
  0x36   :  { %5670 = vsyncadd [#allocation5], 4294966720 }
  0x37   :  { %5671 = dma.done.wait [#allocation8], 14336  }
  0x38   :  { %5672 = vsyncadd [#allocation8], 4294952960  ;;  %v7509_v0 = vmov 0   ;;  %v4828_v1 = vld [vmem:[#allocation7 + $0x4] ss:$28 sps:$4 sm:$0xff]   ;;  %v5812_v51 = vld [vmem:[#allocation4 + $0x10] sm:$0xff]  }
  0x39   :  { %527 = vmatprep.mubr.bf16.mxu1 %v7509_v0  ;;  %689 = vmatprep.mubr.bf16.mxu0 %v7509_v0  ;;  %v4830_v2 = vld [vmem:[#allocation7 + $0x14] ss:$28 sps:$4 sm:$0xff]   ;;  %v4832_v3 = vld [vmem:[#allocation7] ss:$28 sps:$4 sm:$0xff]   ;;  %v4836_v6 = vld [vmem:[#allocation7 + $0x4c] ss:$28 sps:$4 sm:$0xff]  }
  0x3a   :  { %4820 = vset.pattern.permute.xlu0 %v7509_v0  ;;  %4821 = vset.pattern.permute.xlu1 %v7509_v0  ;;  %v4833_v4 = vld [vmem:[#allocation7 + $0x10] ss:$28 sps:$4 sm:$0xff]   ;;  %v4834_v5 = vld [vmem:[#allocation7 + $0x3c] ss:$28 sps:$4 sm:$0xff]   ;;  %v4839_v8 = vld [vmem:[#allocation7 + $0x48] ss:$28 sps:$4 sm:$0xff]  }
  0x3b   :  { %495 = vmatprep.subr.bf16.mxu1 %v4828_v1  ;;  %657 = vmatprep.subr.bf16.mxu0 %v4830_v2  ;;  %v4838_v7 = vld [vmem:[#allocation7 + $0x38] ss:$28 sps:$4 sm:$0xff]   ;;  %v4842_v10 = vld [vmem:[#allocation7 + $0x84] ss:$28 sps:$4 sm:$0xff]   ;;  %v4844_v11 = vld [vmem:[#allocation7 + $0x70] ss:$28 sps:$4 sm:$0xff]  }
  0x3c   :  { %496 = vmatpush1.bf16.msra.mxu1 %v4832_v3  ;;  %658 = vmatpush1.bf16.msra.mxu0 %v4833_v4  ;;  %v4840_v9 = vld [vmem:[#allocation7 + $0x74] ss:$28 sps:$4 sm:$0xff]   ;;  %v4845_v12 = vld [vmem:[#allocation7 + $0x80] ss:$28 sps:$4 sm:$0xff]   ;;  %v4846_v13 = vld [vmem:[#allocation7 + $0xac] ss:$28 sps:$4 sm:$0xff]  }
  0x3d   :  { %497 = vmatprep.subr.bf16.mxu1 %v4834_v5  ;;  %659 = vmatprep.subr.bf16.mxu0 %v4836_v6  ;;  %v4848_v14 = vld [vmem:[#allocation7 + $0xbc] ss:$28 sps:$4 sm:$0xff]   ;;  %v4850_v15 = vld [vmem:[#allocation7 + $0xa8] ss:$28 sps:$4 sm:$0xff]   ;;  %v4854_v18 = vld [vmem:[#allocation7 + $0xf4] ss:$28 sps:$4 sm:$0xff]  }
  0x3e   :  { %v4851_v16 = vld [vmem:[#allocation7 + $0xb8] ss:$28 sps:$4 sm:$0xff]   ;;  %v4852_v17 = vld [vmem:[#allocation7 + $0xe4] ss:$28 sps:$4 sm:$0xff]   ;;  %v4857_v20 = vld [vmem:[#allocation7 + $0xf0] ss:$28 sps:$4 sm:$0xff]  }
  0x3f   :  { %v4856_v19 = vld [vmem:[#allocation7 + $0xe0] ss:$28 sps:$4 sm:$0xff]   ;;  %v4860_v22 = vld [vmem:[#allocation7 + $0x12c] ss:$28 sps:$4 sm:$0xff]   ;;  %v4862_v23 = vld [vmem:[#allocation7 + $0x118] ss:$28 sps:$4 sm:$0xff]  }
  0x40   :  { %498 = vmatpush1.bf16.msra.mxu1 %v4838_v7  ;;  %660 = vmatpush1.bf16.msra.mxu0 %v4839_v8  ;;  %v4858_v21 = vld [vmem:[#allocation7 + $0x11c] ss:$28 sps:$4 sm:$0xff]   ;;  %v4863_v24 = vld [vmem:[#allocation7 + $0x128] ss:$28 sps:$4 sm:$0xff]   ;;  %v4864_v25 = vld [vmem:[#allocation7 + $0x154] ss:$28 sps:$4 sm:$0xff]  }
  0x41   :  { %499 = vmatprep.subr.bf16.mxu1 %v4840_v9  ;;  %661 = vmatprep.subr.bf16.mxu0 %v4842_v10  ;;  %v4866_v26 = vld [vmem:[#allocation7 + $0x164] ss:$28 sps:$4 sm:$0xff]   ;;  %v4868_v27 = vld [vmem:[#allocation7 + $0x150] ss:$28 sps:$4 sm:$0xff]   ;;  %v4872_v30 = vld [vmem:[#allocation7 + $0x19c] ss:$28 sps:$4 sm:$0xff]  }
  0x42   :  { %v4869_v28 = vld [vmem:[#allocation7 + $0x160] ss:$28 sps:$4 sm:$0xff]   ;;  %v4870_v29 = vld [vmem:[#allocation7 + $0x18c] ss:$28 sps:$4 sm:$0xff]   ;;  %v4875_v32 = vld [vmem:[#allocation7 + $0x198] ss:$28 sps:$4 sm:$0xff]  }
  0x43   :  { %v4874_v31 = vld [vmem:[#allocation7 + $0x188] ss:$28 sps:$4 sm:$0xff]   ;;  %v5784_v35 = vld [vmem:[#allocation4] sm:$0xff]   ;;  %v5796_v42 = vld [vmem:[#allocation9 + $0x38] ss:$28 sps:$4 sm:$0xff]   ;;  %v7511_v8 = vmov 0.0  }
  0x44   :  { %500 = vmatpush1.bf16.msra.mxu1 %v4844_v11  ;;  %662 = vmatpush1.bf16.msra.mxu0 %v4845_v12  ;;  %v4879_v33 = vld [vmem:[#allocation7 + $0xc] ss:$28 sps:$4 sm:$0xff]   ;;  %v5782_v34 = vld [vmem:[#allocation9 + $0x4] ss:$28 sps:$4 sm:$0xff]   ;;  %v5791_v39 = vld [vmem:[#allocation9 + $0x3c] ss:$28 sps:$4 sm:$0xff]  }
  0x45   :  { %501 = vmatprep.subr.bf16.mxu1 %v4846_v13  ;;  %663 = vmatprep.subr.bf16.mxu0 %v4848_v14  ;;  %v4877_v36 = vld [vmem:[#allocation7 + $0x8] ss:$28 sps:$4 sm:$0xff]   ;;  %v5787_v38 = vld [vmem:[#allocation9] ss:$28 sps:$4 sm:$0xff]   ;;  %v4887_v44 = vld [vmem:[#allocation7 + $0x78] ss:$28 sps:$4 sm:$0xff]  }
  0x46   :  { %v4882_v37 = vld [vmem:[#allocation7 + $0x44] ss:$28 sps:$4 sm:$0xff]   ;;  %v4889_v41 = vld [vmem:[#allocation7 + $0x7c] ss:$28 sps:$4 sm:$0xff]   ;;  %v4895_v45 = vld [vmem:[#allocation7 + $0xb4] ss:$28 sps:$4 sm:$0xff]  }
  0x47   :  { %v4880_v40 = vld [vmem:[#allocation7 + $0x40] ss:$28 sps:$4 sm:$0xff]   ;;  %v5798_v43 = vld [vmem:[#allocation4 + $0x8] sm:$0xff]   ;;  %v5802_v46 = vld [vmem:[#allocation9 + $0x74] ss:$28 sps:$4 sm:$0xff]   ;;  %vm5686_vm0 = vmmov 0  }
  0x48   :  { %502 = vmatpush1.bf16.msra.mxu1 %v4850_v15  ;;  %664 = vmatpush1.bf16.msra.mxu0 %v4851_v16  ;;  %v5806_v47 = vld [vmem:[#allocation9 + $0x70] ss:$28 sps:$4 sm:$0xff]   ;;  %v4900_v52 = vld [vmem:[#allocation7 + $0xe8] ss:$28 sps:$4 sm:$0xff]   ;;  %v4909_v55 = vld [vmem:[#allocation7 + $0x120] ss:$28 sps:$4 sm:$0xff]  }
  0x49   :  { %503 = vmatprep.subr.bf16.mxu1 %v4852_v17  ;;  %665 = vmatprep.subr.bf16.mxu0 %v4854_v18  ;;  %v4893_v48 = vld [vmem:[#allocation7 + $0xb0] ss:$28 sps:$4 sm:$0xff]   ;;  %v5817_v53 = vld [vmem:[#allocation9 + $0xa8] ss:$28 sps:$4 sm:$0xff]   ;;  %v5823_v57 = vld [vmem:[#allocation9 + $0xe0] ss:$28 sps:$4 sm:$0xff]  }
  0x4a   :  { %v5809_v49 = vld [vmem:[#allocation9 + $0xac] ss:$28 sps:$4 sm:$0xff]   ;;  %v5819_v54 = vld [vmem:[#allocation9 + $0xe4] ss:$28 sps:$4 sm:$0xff]   ;;  %v5826_v58 = vld [vmem:[#allocation9 + $0x11c] ss:$28 sps:$4 sm:$0xff]  }
  0x4b   :  { %v4902_v50 = vld [vmem:[#allocation7 + $0xec] ss:$28 sps:$4 sm:$0xff]   ;;  %v4911_v56 = vld [vmem:[#allocation7 + $0x124] ss:$28 sps:$4 sm:$0xff]   ;;  %v4918_v59 = vld [vmem:[#allocation7 + $0x15c] ss:$28 sps:$4 sm:$0xff]  }
  0x4c   :  { %504 = vmatpush1.bf16.msra.mxu1 %v4856_v19  ;;  %666 = vmatpush1.bf16.msra.mxu0 %v4857_v20  ;;  %v5831_v60 = vld [vmem:[#allocation4 + $0x18] sm:$0xff]   ;;  %v5843_v2 = vld [vmem:[#allocation9 + $0x150] ss:$28 sps:$4 sm:$0xff]   ;;  %v5849_v5 = vld [vmem:[#allocation4 + $0x20] ss:$0 sps:$4 sm:$0xff]   ;;  %s5689_s20 = smov 127  }
  0x4d   :  { %505 = vmatprep.subr.bf16.mxu1 %v4858_v21  ;;  %667 = vmatprep.subr.bf16.mxu0 %v4860_v22  ;;  %v5833_v61 = vld [vmem:[#allocation9 + $0x118] ss:$28 sps:$4 sm:$0xff]   ;;  %v4923_v3 = vld [vmem:[#allocation7 + $0x190] ss:$28 sps:$4 sm:$0xff]   ;;  %v5852_v6 = vld [vmem:[#allocation9 + $0x188] ss:$28 sps:$4 sm:$0xff]  }
  0x4e   :  { %v4916_v62 = vld [vmem:[#allocation7 + $0x158] ss:$28 sps:$4 sm:$0xff]   ;;  %v5846_v4 = vld [vmem:[#allocation9 + $0x18c] ss:$28 sps:$4 sm:$0xff]   ;;  %v5876_v14 = vld [vmem:[#allocation9 + $0x84] ss:$28 sps:$4 sm:$0xff]  }
  0x4f   :  { %v5837_v63 = vld [vmem:[#allocation9 + $0x154] ss:$28 sps:$4 sm:$0xff]   ;;  %v5866_v11 = vld [vmem:[#allocation9 + $0x4c] ss:$28 sps:$4 sm:$0xff]   ;;  %v5881_v16 = vld [vmem:[#allocation9 + $0x80] ss:$28 sps:$4 sm:$0xff]  }
  0x50   :  { %506 = vmatpush1.bf16.msra.mxu1 %v4862_v23  ;;  %668 = vmatpush1.bf16.msra.mxu0 %v4863_v24  ;;  %v4925_v1 = vld [vmem:[#allocation7 + $0x194] ss:$28 sps:$4 sm:$0xff]   ;;  %v5873_v13 = vld [vmem:[#allocation9 + $0x48] ss:$28 sps:$4 sm:$0xff]   ;;  %v5884_v17 = vld [vmem:[#allocation9 + $0xbc] ss:$28 sps:$4 sm:$0xff]  }
  0x51   :  { %507 = vmatprep.subr.bf16.mxu1 %v4864_v25  ;;  %669 = vmatprep.subr.bf16.mxu0 %v4866_v26  ;;  %v5855_v7 = vld [vmem:[#allocation9 + $0x14] ss:$28 sps:$4 sm:$0xff]   ;;  %v4931_v15 = vld [vmem:[#allocation7 + $0x88] ss:$28 sps:$4 sm:$0xff]   ;;  %v4932_v18 = vld [vmem:[#allocation7 + $0xc0] ss:$28 sps:$4 sm:$0xff]  }
  0x52   :  { %v4929_v9 = vld [vmem:[#allocation7 + $0x18] ss:$28 sps:$4 sm:$0xff]   ;;  %v5864_v10 = vld [vmem:[#allocation9 + $0x10] ss:$28 sps:$4 sm:$0xff]   ;;  %v5906_v25 = vld [vmem:[#allocation9 + $0x128] ss:$28 sps:$4 sm:$0xff]  }
  0x53   :  { %v4930_v12 = vld [vmem:[#allocation7 + $0x50] ss:$28 sps:$4 sm:$0xff]   ;;  %v5888_v19 = vld [vmem:[#allocation9 + $0xb8] ss:$28 sps:$4 sm:$0xff]   ;;  %v5909_v26 = vld [vmem:[#allocation9 + $0x164] ss:$28 sps:$4 sm:$0xff]  }
  0x54   :  { %508 = vmatpush1.bf16.msra.mxu1 %v4868_v27  ;;  %670 = vmatpush1.bf16.msra.mxu0 %v4869_v28  ;;  %v5890_v20 = vld [vmem:[#allocation9 + $0xf4] ss:$28 sps:$4 sm:$0xff]   ;;  %v5900_v23 = vld [vmem:[#allocation9 + $0x12c] ss:$28 sps:$4 sm:$0xff]   ;;  %v5913_v28 = vld [vmem:[#allocation9 + $0x160] ss:$28 sps:$4 sm:$0xff]  }
  0x55   :  { %509 = vmatprep.subr.bf16.mxu1 %v4870_v29  ;;  %671 = vmatprep.subr.bf16.mxu0 %v4872_v30  ;;  %v4933_v21 = vld [vmem:[#allocation7 + $0xf8] ss:$28 sps:$4 sm:$0xff]   ;;  %v5895_v22 = vld [vmem:[#allocation9 + $0xf0] ss:$28 sps:$4 sm:$0xff]   ;;  %v4941_v27 = vld [vmem:[#allocation7 + $0x168] ss:$28 sps:$4 sm:$0xff]  }
  0x56   :  { %v4936_v24 = vld [vmem:[#allocation7 + $0x130] ss:$28 sps:$4 sm:$0xff]   ;;  %v5916_v29 = vld [vmem:[#allocation9 + $0x19c] ss:$28 sps:$4 sm:$0xff]   ;;  %s5691_s17 = smov [#allocation10]  }
  0x57   :  { %v4945_v30 = vld [vmem:[#allocation7 + $0x1a0] ss:$28 sps:$4 sm:$0xff]  }
  0x58   :  { %510 = vmatpush1.bf16.msra.mxu1 %v4874_v31  ;;  %672 = vmatpush1.bf16.msra.mxu0 %v4875_v32  ;;  %v5921_v31 = vld [vmem:[#allocation9 + $0xc] ss:$28 sps:$4 sm:$0xff]   ;;  %v5924_v32 = vld [vmem:[#allocation9 + $0x198] ss:$28 sps:$4 sm:$0xff]  }
  0x59   :  { %576 = vmatprep.subr.bf16.mxu1 %v4879_v33  ;;  %1241 = vmatprep.subr.bf16.mxu0 %v5782_v34  ;;  %v5937_v33 = vld [vmem:[#allocation9 + $0x8] ss:$28 sps:$4 sm:$0xff]  }
  0x5b   :  { %528 = vmatmul.mubr.bf16.vlgmr.msra.gmra.mrb[0].mxu1 %v5784_v35  ;;  %690 = vmatmul.mubr.bf16.vlgmr.msra.gmra.mrb[0].mxu0 %v5784_v35 }
  0x5c   :  { %577 = vmatpush1.bf16.msra.mxu1 %v4877_v36  ;;  %537 = vmatprep.mubr.bf16.mxu1 %v7509_v0  ;;  %v5939_v36 = vld [vmem:[#allocation9 + $0x44] ss:$28 sps:$4 sm:$0xff]  }
  0x5d   :  { %578 = vmatprep.subr.bf16.mxu1 %v4882_v37  ;;  %699 = vmatprep.mubr.bf16.mxu0 %v7509_v0  ;;  %v5950_v37 = vld [vmem:[#allocation9 + $0x7c] ss:$28 sps:$4 sm:$0xff]  }
  0x5e   :  { %1242 = vmatpush1.bf16.msra.mxu0 %v5787_v38 }
  0x5f   :  { %1243 = vmatprep.subr.bf16.mxu0 %v5791_v39 }
  0x60   :  { %579 = vmatpush1.bf16.msra.mxu1 %v4880_v40  ;;  %v5969_v40 = vld [vmem:[#allocation9 + $0xec] ss:$28 sps:$4 sm:$0xff]  }
  0x61   :  { %580 = vmatprep.subr.bf16.mxu1 %v4889_v41  ;;  %v5974_v41 = vld [vmem:[#allocation9 + $0xe8] ss:$28 sps:$4 sm:$0xff]  }
  0x62   :  { %1244 = vmatpush1.bf16.msra.mxu0 %v5796_v42 }
  0x63   :  { %538 = vmatmul.mubr.bf16.gmra.mrb[4].mxu1 %v5798_v43  ;;  %700 = vmatmul.mubr.bf16.gmra.mrb[4].mxu0 %v5798_v43 }
  0x64   :  { %581 = vmatpush1.bf16.msra.mxu1 %v4887_v44  ;;  %547 = vmatprep.mubr.bf16.mxu1 %v7509_v0  ;;  %v5988_v44 = vld [vmem:[#allocation9 + $0x15c] ss:$28 sps:$4 sm:$0xff]  }
  0x65   :  { %582 = vmatprep.subr.bf16.mxu1 %v4895_v45  ;;  %709 = vmatprep.mubr.bf16.mxu0 %v7509_v0  ;;  %v5993_v45 = vld [vmem:[#allocation9 + $0x158] ss:$28 sps:$4 sm:$0xff]  }
  0x66   :  { %1245 = vmatprep.subr.bf16.mxu0 %v5802_v46 }
  0x67   :  { %1246 = vmatpush1.bf16.msra.mxu0 %v5806_v47 }
  0x68   :  { %583 = vmatpush1.bf16.msra.mxu1 %v4893_v48  ;;  %1247 = vmatprep.subr.bf16.mxu0 %v5809_v49  ;;  %v6011_v48 = vld [vmem:[#allocation9 + $0x18] ss:$28 sps:$4 sm:$0xff]  }
  0x69   :  { %584 = vmatprep.subr.bf16.mxu1 %v4902_v50  ;;  %v6021_v50 = vld [vmem:[#allocation9 + $0x88] ss:$28 sps:$4 sm:$0xff]  }
  0x6b   :  { %548 = vmatmul.mubr.bf16.gmra.mrb[8].mxu1 %v5812_v51  ;;  %710 = vmatmul.mubr.bf16.gmra.mrb[8].mxu0 %v5812_v51 }
  0x6c   :  { %585 = vmatpush1.bf16.msra.mxu1 %v4900_v52  ;;  %1248 = vmatpush1.bf16.msra.mxu0 %v5817_v53  ;;  %v6028_v52 = vld [vmem:[#allocation9 + $0xc0] ss:$28 sps:$4 sm:$0xff]  }
  0x6d   :  { %557 = vmatprep.mubr.bf16.mxu1 %v7509_v0  ;;  %719 = vmatprep.mubr.bf16.mxu0 %v7509_v0 }
  0x6e   :  { %1249 = vmatprep.subr.bf16.mxu0 %v5819_v54  ;;  %586 = vmatprep.subr.bf16.mxu1 %v4911_v56  ;;  %v6045_v56 = vld [vmem:[#allocation9 + $0x130] ss:$28 sps:$4 sm:$0xff]  }
  0x70   :  { %1250 = vmatpush1.bf16.msra.mxu0 %v5823_v57  ;;  %587 = vmatpush1.bf16.msra.mxu1 %v4909_v55  ;;  %v6040_v55 = vld [vmem:[%s7500_s1 + $0x20] sm:$0xff] }
  0x71   :  { %1251 = vmatprep.subr.bf16.mxu0 %v5826_v58  ;;  %588 = vmatprep.subr.bf16.mxu1 %v4918_v59  ;;  %7575 = vst [vmem:[#allocation17_spill] sm:$0xff] %v6040_v55  ;;  %v7508_v59 = vmov 1  }
  0x73   :  { %558 = vmatmul.mubr.bf16.gmra.mrb[12].mxu1 %v5831_v60  ;;  %720 = vmatmul.mubr.bf16.gmra.mrb[12].mxu0 %v5831_v60 }
  0x74   :  { %1252 = vmatpush1.bf16.msra.mxu0 %v5833_v61  ;;  %567 = vmatprep.mubr.bf16.mxu1 %v7509_v0 }
  0x75   :  { %589 = vmatpush1.bf16.msra.mxu1 %v4916_v62  ;;  %729 = vmatprep.mubr.bf16.mxu0 %v7509_v0 }
  0x76   :  { %1253 = vmatprep.subr.bf16.mxu0 %v5837_v63  ;;  %590 = vmatprep.subr.bf16.mxu1 %v4925_v1  ;;  %v6090_v1 = vld [vmem:[%s7503_s4] sm:$0xff] }
  0x78   :  { %1254 = vmatpush1.bf16.msra.mxu0 %v5843_v2 }
  0x79   :  { %591 = vmatpush1.bf16.msra.mxu1 %v4923_v3  ;;  %1255 = vmatprep.subr.bf16.mxu0 %v5846_v4 }
  0x7a   :  { %4497 = vmatprep.subr.bf16.mxu1 %v7511_v8 }
  0x7b   :  { %568 = vmatmul.mubr.bf16.gmra.mrb[16].mxu1 %v5849_v5  ;;  %730 = vmatmul.mubr.bf16.gmra.mrb[16].mxu0 %v5849_v5 }
  0x7c   :  { %1256 = vmatpush1.bf16.msra.mxu0 %v5852_v6  ;;  %608 = vmatprep.mubr.bf16.mxu1 %v7509_v0 }
  0x7d   :  { %1273 = vmatprep.mubr.bf16.mxu0 %v7509_v0  ;;  %1323 = vmatprep.subr.bf16.mxu0 %v5855_v7 }
  0x83   :  { %609 = vmatmul.mubr.bf16.vlgmr.msra.gmra.mrb[20].mxu1 %v5784_v35  ;;  %1274 = vmatmul.mubr.bf16.vlgmr.msra.gmra.mrb[20].mxu0 %v7509_v0 }
  0x84   :  { %4498 = vmatpush3.bf16.msra.mxu1 %v4929_v9  ;;  %618 = vmatprep.mubr.bf16.mxu1 %v7509_v0 }
  0x85   :  { %4499 = vmatprep.subr.bf16.mxu1 %v7511_v8  ;;  %1324 = vmatpush1.bf16.msra.mxu0 %v5864_v10 }
  0x86   :  { %1325 = vmatprep.subr.bf16.mxu0 %v5866_v11  ;;  %1355 = vmatprep.mubr.bf16.mxu0 %v7509_v0 }
  0x88   :  { %4500 = vmatpush3.bf16.msra.mxu1 %v4930_v12 }
  0x89   :  { %4501 = vmatprep.subr.bf16.mxu1 %v7511_v8  ;;  %1326 = vmatpush1.bf16.msra.mxu0 %v5873_v13 }
  0x8a   :  { %1327 = vmatprep.subr.bf16.mxu0 %v5876_v14 }
  0x8b   :  { %619 = vmatmul.mubr.bf16.gmra.mrb[24].mxu1 %v5798_v43 }
  0x8c   :  { %4502 = vmatpush3.bf16.msra.mxu1 %v4931_v15  ;;  %628 = vmatprep.mubr.bf16.mxu1 %v7509_v0 }
  0x8d   :  { %4503 = vmatprep.subr.bf16.mxu1 %v7511_v8  ;;  %1328 = vmatpush1.bf16.msra.mxu0 %v5881_v16 }
  0x8e   :  { %1329 = vmatprep.subr.bf16.mxu0 %v5884_v17 }
  0x90   :  { %4504 = vmatpush3.bf16.msra.mxu1 %v4932_v18 }
  0x91   :  { %4505 = vmatprep.subr.bf16.mxu1 %v7511_v8  ;;  %1330 = vmatpush1.bf16.msra.mxu0 %v5888_v19 }
  0x92   :  { %1331 = vmatprep.subr.bf16.mxu0 %v5890_v20 }
  0x93   :  { %629 = vmatmul.mubr.bf16.gmra.mrb[28].mxu1 %v5812_v51 }
  0x94   :  { %4506 = vmatpush3.bf16.msra.mxu1 %v4933_v21  ;;  %638 = vmatprep.mubr.bf16.mxu1 %v7509_v0 }
  0x95   :  { %4507 = vmatprep.subr.bf16.mxu1 %v7511_v8  ;;  %1332 = vmatpush1.bf16.msra.mxu0 %v5895_v22 }
  0x96   :  { %1333 = vmatprep.subr.bf16.mxu0 %v5900_v23 }
  0x98   :  { %4508 = vmatpush3.bf16.msra.mxu1 %v4936_v24 }
  0x99   :  { %4509 = vmatprep.subr.bf16.mxu1 %v7511_v8  ;;  %1334 = vmatpush1.bf16.msra.mxu0 %v5906_v25 }
  0x9a   :  { %1335 = vmatprep.subr.bf16.mxu0 %v5909_v26 }
  0x9b   :  { %639 = vmatmul.mubr.bf16.gmra.mrb[32].mxu1 %v5831_v60 }
  0x9c   :  { %648 = vmatprep.mubr.bf16.mxu1 %v7509_v0  ;;  %4510 = vmatpush3.bf16.msra.mxu1 %v4941_v27 }
  0x9d   :  { %4511 = vmatprep.subr.bf16.mxu1 %v7511_v8  ;;  %1336 = vmatpush1.bf16.msra.mxu0 %v5913_v28 }
  0x9e   :  { %1337 = vmatprep.subr.bf16.mxu0 %v5916_v29 }
  0xa0   :  { %4512 = vmatpush3.bf16.msra.mxu1 %v4945_v30 }
  0xa1   :  { %1282 = vmatprep.subr.bf16.mxu1 %v5921_v31  ;;  %1338 = vmatpush1.bf16.msra.mxu0 %v5924_v32 }
  0xa2   :  { %1495 = vmatprep.subr.bf16.mxu0 %v5782_v34  ;;  %v5945_v34 = vld [vmem:[#allocation9 + $0x40] ss:$28 sps:$4 sm:$0xff]  }
  0xa3   :  { %649 = vmatmul.mubr.bf16.gmra.mrb[36].mxu1 %v5849_v5 }
  0xa4   :  { %4513 = vmatprep.mubr.msk.bf16.mxu1 %vm5686_vm0, %v7511_v8  ;;  %1356 = vmatmul.mubr.bf16.vlgmr.msra.gmra.mrb[24].mxu0 %v7509_v0 }
  0xa5   :  { %1496 = vmatpush1.bf16.msra.mxu0 %v5787_v38  ;;  %1527 = vmatprep.mubr.bf16.mxu0 %v7509_v0  ;;  %v5955_v38 = vld [vmem:[#allocation9 + $0x78] ss:$28 sps:$4 sm:$0xff]  }
  0xa6   :  { %1497 = vmatprep.subr.bf16.mxu0 %v5791_v39  ;;  %v5966_v39 = vld [vmem:[#allocation9 + $0xb0] ss:$28 sps:$4 sm:$0xff]  }
  0xa9   :  { %1498 = vmatpush1.bf16.msra.mxu0 %v5796_v42  ;;  %v5977_v42 = vld [vmem:[#allocation9 + $0x124] ss:$28 sps:$4 sm:$0xff]  }
  0xaa   :  { %1499 = vmatprep.subr.bf16.mxu0 %v5802_v46  ;;  %v5996_v46 = vld [vmem:[#allocation9 + $0x194] ss:$28 sps:$4 sm:$0xff]  }
  0xab   :  { %4514 = vmatmul.mubr.bf16.vlgmr.msra.gmra.mrb[40].mxu1 %v5784_v35  ;;  %v5958_v35 = vld [vmem:[#allocation9 + $0xb4] ss:$28 sps:$4 sm:$0xff]  }
  0xac   :  { %1283 = vmatpush1.bf16.msra.mxu1 %v5937_v33  ;;  %4517 = vmatprep.mubr.msk.bf16.mxu1 %vm5686_vm0, %v7511_v8 }
  0xad   :  { %1284 = vmatprep.subr.bf16.mxu1 %v5939_v36  ;;  %1500 = vmatpush1.bf16.msra.mxu0 %v5806_v47  ;;  %v6004_v47 = vld [vmem:[#allocation9 + $0x190] ss:$28 sps:$4 sm:$0xff]  }
  0xae   :  { %1501 = vmatprep.subr.bf16.mxu0 %v5809_v49  ;;  %v6015_v49 = vld [vmem:[#allocation9 + $0x50] ss:$28 sps:$4 sm:$0xff]  }
  0xb0   :  { %1285 = vmatpush1.bf16.msra.mxu1 %v5945_v34 }
  0xb1   :  { %1286 = vmatprep.subr.bf16.mxu1 %v5950_v37  ;;  %1502 = vmatpush1.bf16.msra.mxu0 %v5817_v53  ;;  %v938_v53 = vld [vmem:[%s7500_s1 + $0x8] sm:$0xff] }
  0xb2   :  { %1503 = vmatprep.subr.bf16.mxu0 %v5819_v54  ;;  %v6035_v54 = vld [vmem:[#allocation9 + $0xf8] ss:$28 sps:$4 sm:$0xff]  }
  0xb3   :  { %4518 = vmatmul.mubr.bf16.gmra.mrb[44].mxu1 %v5798_v43  ;;  %v5985_v43 = vld [vmem:[#allocation9 + $0x120] ss:$28 sps:$4 sm:$0xff]  }
  0xb4   :  { %1287 = vmatpush1.bf16.msra.mxu1 %v5955_v38  ;;  %4521 = vmatprep.mubr.msk.bf16.mxu1 %vm5686_vm0, %v7511_v8 }
  0xb5   :  { %1288 = vmatprep.subr.bf16.mxu1 %v5958_v35  ;;  %1504 = vmatpush1.bf16.msra.mxu0 %v5823_v57  ;;  %v6050_v57 = vld [vmem:[%s7500_s1 + $0x30] sm:$0xff] }
  0xb6   :  { %1505 = vmatprep.subr.bf16.mxu0 %v5826_v58  ;;  %7576 = vst [vmem:[#allocation18_spill] sm:$0xff] %v6050_v57  ;;  %v6055_v58 = vld [vmem:[#allocation9 + $0x168] ss:$28 sps:$4 sm:$0xff]  }
  0xb8   :  { %1289 = vmatpush1.bf16.msra.mxu1 %v5966_v39 }
  0xb9   :  { %1290 = vmatprep.subr.bf16.mxu1 %v5969_v40  ;;  %1506 = vmatpush1.bf16.msra.mxu0 %v5833_v61  ;;  %v7507_v61 = vlaneseq }
  0xba   :  { %1507 = vmatprep.subr.bf16.mxu0 %v5837_v63 }
  0xbb   :  { %4522 = vmatmul.mubr.bf16.gmra.mrb[48].mxu1 %v5812_v51  ;;  %v937_v51 = vld [vmem:[%s7500_s1] sm:$0xff]  ;;  %v6084_v62 = vshrl.u32 %v7507_v61, 7 }
  0xbc   :  { %1291 = vmatpush1.bf16.msra.mxu1 %v5974_v41  ;;  %4525 = vmatprep.mubr.msk.bf16.mxu1 %vm5686_vm0, %v7511_v8 }
  0xbd   :  { %1292 = vmatprep.subr.bf16.mxu1 %v5977_v42  ;;  %1508 = vmatpush1.bf16.msra.mxu0 %v5843_v2  ;;  %v146_v63 = vsub.s32 0, %v6084_v62  ;;  %v150_v2 = vsub.s32 1, %v6084_v62 }
  0xbe   :  { %1509 = vmatprep.subr.bf16.mxu0 %v5846_v4  ;;  %1460 = vperm.xlu0 %4820, %v937_v51  }
  0xbf   :  { %v151_v9 = vrot.slane %v6090_v1, %v150_v2 }
  0xc0   :  { %1293 = vmatpush1.bf16.msra.mxu1 %v5985_v43 }
  0xc1   :  { %1294 = vmatprep.subr.bf16.mxu1 %v5988_v44  ;;  %1510 = vmatpush1.bf16.msra.mxu0 %v5852_v6 }
  0xc2   :  { %1577 = vmatprep.subr.bf16.mxu0 %v5855_v7  ;;  %1714 = vperm.xlu0 %4820, %v938_v53  }
  0xc3   :  { %4526 = vmatmul.mubr.bf16.gmra.mrb[52].mxu1 %v5831_v60  ;;  %v6060_v60 = vld [vmem:[#allocation9 + $0x1a0] ss:$28 sps:$4 sm:$0xff]  }
  0xc4   :  { %4529 = vmatprep.mubr.msk.bf16.mxu1 %vm5686_vm0, %v7511_v8  ;;  %1295 = vmatpush1.bf16.msra.mxu1 %v5993_v45 }
  0xc5   :  { %1296 = vmatprep.subr.bf16.mxu1 %v5996_v46 }
  0xc6   :  { %2476 = vperm.xlu0 %4820, %v6040_v55  }
  0xc8   :  { %1297 = vmatpush1.bf16.msra.mxu1 %v6004_v47 }
  0xc9   :  { %4533 = vmatprep.subr.bf16.mxu1 %v7511_v8 }
  0xca   :  { %2984 = vperm.xlu0 %4820, %v6050_v57  }
  0xcb   :  { %4530 = vmatmul.mubr.bf16.gmra.mrb[56].mxu1 %v5849_v5  ;;  %v147_v5 = vrot.slane %v6090_v1, %v146_v63 }
  0xcc   :  { %1314 = vmatprep.mubr.bf16.mxu1 %v7509_v0 }
  0xce   :  { %4822 = vset.pattern.permute.xlu0 %v7508_v59 }
  0xcf   :  { %1471 = vperm.xlu0 %4822, %v937_v51  }
  0xd3   :  { %1315 = vmatmul.mubr.bf16.vlgmr.msra.gmra.mrb[60].mxu1 %v7509_v0  ;;  %1725 = vperm.xlu0 %4822, %v938_v53  }
  0xd4   :  { %4534 = vmatpush3.bf16.msra.mxu1 %v6011_v48  ;;  %4549 = vmatprep.mubr.msk.bf16.mxu1 %vm5686_vm0, %v7511_v8 }
  0xd5   :  { %4535 = vmatprep.subr.bf16.mxu1 %v7511_v8 }
  0xd8   :  { %4536 = vmatpush3.bf16.msra.mxu1 %v6015_v49 }
  0xd9   :  { %4537 = vmatprep.subr.bf16.mxu1 %v7511_v8 }
  0xdc   :  { %4538 = vmatpush3.bf16.msra.mxu1 %v6021_v50 }
  0xdd   :  { %4539 = vmatprep.subr.bf16.mxu1 %v7511_v8 }
  0xe0   :  { %4540 = vmatpush3.bf16.msra.mxu1 %v6028_v52 }
  0xe1   :  { %4541 = vmatprep.subr.bf16.mxu1 %v7511_v8 }
  0xe4   :  { %4542 = vmatpush3.bf16.msra.mxu1 %v6035_v54 }
  0xe5   :  { %4543 = vmatprep.subr.bf16.mxu1 %v7511_v8 }
  0xe8   :  { %4544 = vmatpush3.bf16.msra.mxu1 %v6045_v56 }
  0xe9   :  { %4545 = vmatprep.subr.bf16.mxu1 %v7511_v8 }
  0xec   :  { %4546 = vmatpush3.bf16.msra.mxu1 %v6055_v58 }
  0xed   :  { %4547 = vmatprep.subr.bf16.mxu1 %v7511_v8 }
  0xf0   :  { %4548 = vmatpush3.bf16.msra.mxu1 %v6060_v60 }
  0xf1   :  { %1536 = vmatprep.subr.bf16.mxu1 %v5921_v31 }
  0xf3   :  { %4550 = vmatmul.mubr.bf16.vlgmr.msra.gmra.mrb[64].mxu1 %v7509_v0 }
  0xf4   :  { %1537 = vmatpush1.bf16.msra.mxu1 %v5937_v33  ;;  %1568 = vmatprep.mubr.bf16.mxu1 %v7509_v0 }
  0xf5   :  { %1538 = vmatprep.subr.bf16.mxu1 %v5939_v36 }
  0xf8   :  { %1539 = vmatpush1.bf16.msra.mxu1 %v5945_v34 }
  0xf9   :  { %1540 = vmatprep.subr.bf16.mxu1 %v5950_v37 }
  0xfc   :  { %1541 = vmatpush1.bf16.msra.mxu1 %v5955_v38 }
  0xfd   :  { %1542 = vmatprep.subr.bf16.mxu1 %v5958_v35 }
 0x100   :  { %1543 = vmatpush1.bf16.msra.mxu1 %v5966_v39 }
 0x101   :  { %1544 = vmatprep.subr.bf16.mxu1 %v5969_v40 }
 0x104   :  { %1545 = vmatpush1.bf16.msra.mxu1 %v5974_v41 }
 0x105   :  { %1546 = vmatprep.subr.bf16.mxu1 %v5977_v42 }
 0x108   :  { %1547 = vmatpush1.bf16.msra.mxu1 %v5985_v43 }
 0x109   :  { %1548 = vmatprep.subr.bf16.mxu1 %v5988_v44 }
 0x10c   :  { %1549 = vmatpush1.bf16.msra.mxu1 %v5993_v45 }
 0x10d   :  { %1550 = vmatprep.subr.bf16.mxu1 %v5996_v46 }
 0x110   :  { %1551 = vmatpush1.bf16.msra.mxu1 %v6004_v47 }
 0x111   :  { %4553 = vmatprep.subr.bf16.mxu1 %v7511_v8 }
 0x12e   :  { %v529_v3 = vpop.f32.mrb[0].mxu1  ;;  %v6093_v4 = vpop.f32.mrb[0].mxu0 }
 0x12f   :  { %v531_v6 = vpop.f32.mrb[1].mxu1  ;;  %v6096_v7 = vpop.f32.mrb[1].mxu0 }
 0x130   :  { %v533_v12 = vpop.f32.mrb[2].mxu1  ;;  %v6099_v15 = vpop.f32.mrb[2].mxu0 }
 0x131   :  { %7577 = vst [vmem:[#allocation19_spill] sm:$0xff] %v6099_v15  ;;  %v6101_v18 = vadd.f32 %v533_v12, %v147_v5  ;;  %v535_v21 = vpop.f32.mrb[3].mxu1  ;;  %v6103_v24 = vpop.f32.mrb[3].mxu0 }
 0x132   :  { %7579 = vst [vmem:[#allocation21_spill] sm:$0xff] %v6103_v24  ;;  %v6105_v27 = vadd.f32 %v535_v21, %v151_v9 }
 0x133   :  { %7578 = vst [vmem:[#allocation20_spill] sm:$0xff] %v6101_v18 }
 0x134   :  { %7580 = vst [vmem:[#allocation22_spill] sm:$0xff] %v6105_v27 }
 0x136   :  { %v539_v30 = vpop.f32.mrb[4].mxu1  ;;  %v6107_v51 = vpop.f32.mrb[4].mxu0 }
 0x137   :  { %7581 = vst [vmem:[#allocation23_spill] sm:$0xff] %v6107_v51  ;;  %v6109_v53 = vadd.f32 %v539_v30, %v147_v5  ;;  %v541_v63 = vpop.f32.mrb[5].mxu1  ;;  %v6111_v61 = vpop.f32.mrb[5].mxu0 }
 0x138   :  { %7583 = vst [vmem:[#allocation25_spill] sm:$0xff] %v6111_v61  ;;  %v6113_v59 = vadd.f32 %v541_v63, %v151_v9  ;;  %v543_v2 = vpop.f32.mrb[6].mxu1  ;;  %v6115_v0 = vpop.f32.mrb[6].mxu0 }
 0x139   :  { %7582 = vst [vmem:[#allocation24_spill] sm:$0xff] %v6109_v53  ;;  %7585 = vst [vmem:[#allocation27_spill] sm:$0xff] %v6115_v0  ;;  %v6117_v12 = vadd.f32 %v543_v2, %v147_v5  ;;  %v545_v8 = vpop.f32.mrb[7].mxu1  ;;  %v6119_v57 = vpop.f32.mrb[7].mxu0 }
 0x13a   :  { %7584 = vst [vmem:[#allocation26_spill] sm:$0xff] %v6113_v59  ;;  %7587 = vst [vmem:[#allocation29_spill] sm:$0xff] %v6119_v57  ;;  %v6121_v21 = vadd.f32 %v545_v8, %v151_v9 }
 0x13b   :  { %7586 = vst [vmem:[#allocation28_spill] sm:$0xff] %v6117_v12 }
 0x13c   :  { %7588 = vst [vmem:[#allocation30_spill] sm:$0xff] %v6121_v21 }
 0x13e   :  { %v549_v55 = vpop.f32.mrb[8].mxu1  ;;  %v6123_v24 = vpop.f32.mrb[8].mxu0 }
 0x13f   :  { %7589 = vst [vmem:[#allocation31_spill] sm:$0xff] %v6123_v24  ;;  %v6125_v30 = vadd.f32 %v549_v55, %v147_v5  ;;  %v551_v51 = vpop.f32.mrb[9].mxu1  ;;  %v6127_v53 = vpop.f32.mrb[9].mxu0 }
 0x140   :  { %7591 = vst [vmem:[#allocation33_spill] sm:$0xff] %v6127_v53  ;;  %v6129_v63 = vadd.f32 %v551_v51, %v151_v9  ;;  %v553_v61 = vpop.f32.mrb[10].mxu1  ;;  %v6131_v59 = vpop.f32.mrb[10].mxu0 }
 0x141   :  { %7590 = vst [vmem:[#allocation32_spill] sm:$0xff] %v6125_v30  ;;  %7593 = vst [vmem:[#allocation35_spill] sm:$0xff] %v6131_v59  ;;  %v6133_v2 = vadd.f32 %v553_v61, %v147_v5  ;;  %v555_v0 = vpop.f32.mrb[11].mxu1  ;;  %v6135_v12 = vpop.f32.mrb[11].mxu0 }
 0x142   :  { %7592 = vst [vmem:[#allocation34_spill] sm:$0xff] %v6129_v63  ;;  %7595 = vst [vmem:[#allocation37_spill] sm:$0xff] %v6135_v12  ;;  %v6137_v8 = vadd.f32 %v555_v0, %v151_v9 }
 0x143   :  { %7594 = vst [vmem:[#allocation36_spill] sm:$0xff] %v6133_v2 }
 0x144   :  { %7596 = vst [vmem:[#allocation38_spill] sm:$0xff] %v6137_v8 }
 0x146   :  { %v559_v57 = vpop.f32.mrb[12].mxu1  ;;  %v6139_v21 = vpop.f32.mrb[12].mxu0 }
 0x147   :  { %7597 = vst [vmem:[#allocation39_spill] sm:$0xff] %v6139_v21  ;;  %v6141_v55 = vadd.f32 %v559_v57, %v147_v5  ;;  %v561_v24 = vpop.f32.mrb[13].mxu1  ;;  %v6143_v30 = vpop.f32.mrb[13].mxu0 }
 0x148   :  { %7599 = vst [vmem:[#allocation41_spill] sm:$0xff] %v6143_v30  ;;  %v6145_v51 = vadd.f32 %v561_v24, %v151_v9  ;;  %v563_v53 = vpop.f32.mrb[14].mxu1  ;;  %v6147_v63 = vpop.f32.mrb[14].mxu0  ;;  %v530_v24 = vadd.f32 %v529_v3, %v147_v5 }
 0x149   :  { %7598 = vst [vmem:[#allocation40_spill] sm:$0xff] %v6141_v55  ;;  %7601 = vst [vmem:[#allocation43_spill] sm:$0xff] %v6147_v63  ;;  %v6149_v61 = vadd.f32 %v563_v53, %v147_v5  ;;  %v565_v59 = vpop.f32.mrb[15].mxu1  ;;  %v6151_v2 = vpop.f32.mrb[15].mxu0 }
 0x14a   :  { %7600 = vst [vmem:[#allocation42_spill] sm:$0xff] %v6145_v51  ;;  %7603 = vst [vmem:[#allocation45_spill] sm:$0xff] %v6151_v2  ;;  %v6153_v0 = vadd.f32 %v565_v59, %v151_v9  ;;  %v532_v51 = vadd.f32 %v531_v6, %v151_v9 }
 0x14b   :  { %7602 = vst [vmem:[#allocation44_spill] sm:$0xff] %v6149_v61 }
 0x14c   :  { %7604 = vst [vmem:[#allocation46_spill] sm:$0xff] %v6153_v0 }
 0x14e   :  { %v569_v12 = vpop.f32.mrb[16].mxu1 }
 0x14f   :  { %v6155_v8 = vadd.f32 %v569_v12, %v147_v5  ;;  %v571_v57 = vpop.f32.mrb[17].mxu1 }
 0x150   :  { %v6157_v21 = vadd.f32 %v571_v57, %v151_v9  ;;  %v573_v55 = vpop.f32.mrb[18].mxu1 }
 0x151   :  { %7605 = vst [vmem:[#allocation47_spill] sm:$0xff] %v6155_v8  ;;  %v574_v30 = vpop.f32.mrb[19].mxu1 }
 0x152   :  { %7606 = vst [vmem:[#allocation48_spill] sm:$0xff] %v6157_v21 }
 0x156   :  { %v6159_v15 = vpop.f32.mrb[20].mxu1  ;;  %v1275_v63 = vpop.f32.mrb[20].mxu0 }
 0x157   :  { %v1404_v53 = vadd.f32 %v1275_v63, %v530_v24  ;;  %v6161_v61 = vpop.f32.mrb[21].mxu1  ;;  %v1277_v27 = vpop.f32.mrb[21].mxu0  ;;  %v162_v63 = vsub.s32 4, %v6084_v62 }
 0x158   :  { %v1405_v2 = vadd.f32 %v1277_v27, %v532_v51  ;;  %v6163_v59 = vpop.f32.mrb[22].mxu1  ;;  %v1279_v0 = vpop.f32.mrb[22].mxu0 }
 0x159   :  { %7607 = vst [vmem:[#allocation49_spill] sm:$0xff] %v6163_v59  ;;  %v6165_v12 = vpop.f32.mrb[23].mxu1  ;;  %v1280_v8 = vpop.f32.mrb[23].mxu0  ;;  %v6190_v24 = vrot.slane %v6090_v1, %v162_v63 }
 0x15a   :  { %7608 = vst [vmem:[#allocation50_spill] sm:$0xff] %v6165_v12  ;;  %v166_v8 = vsub.s32 5, %v6084_v62 }
 0x15b   :  { %7619 = vst [vmem:[#allocation61_spill] sm:$0xff] %v6190_v24 }
 0x15e   :  { %v6167_v57 = vpop.f32.mrb[24].mxu1 }
 0x15f   :  { %7609 = vst [vmem:[#allocation51_spill] sm:$0xff] %v6167_v57  ;;  %v6169_v55 = vpop.f32.mrb[25].mxu1 }
 0x160   :  { %7610 = vst [vmem:[#allocation52_spill] sm:$0xff] %v6169_v55  ;;  %v6171_v3 = vpop.f32.mrb[26].mxu1 }
 0x161   :  { %7611 = vst [vmem:[#allocation53_spill] sm:$0xff] %v6171_v3  ;;  %v6173_v5 = vpop.f32.mrb[27].mxu1 }
 0x162   :  { %7612 = vst [vmem:[#allocation54_spill] sm:$0xff] %v6173_v5 }
 0x166   :  { %v6175_v6 = vpop.f32.mrb[28].mxu1 }
 0x167   :  { %7613 = vst [vmem:[#allocation55_spill] sm:$0xff] %v6175_v6  ;;  %v6177_v9 = vpop.f32.mrb[29].mxu1  ;;  %v6195_v6 = vrot.slane %v6090_v1, %v166_v8 }
 0x168   :  { %7614 = vst [vmem:[#allocation56_spill] sm:$0xff] %v6177_v9  ;;  %v6179_v30 = vpop.f32.mrb[30].mxu1 }
 0x169   :  { %7615 = vst [vmem:[#allocation57_spill] sm:$0xff] %v6179_v30  ;;  %v6181_v27 = vpop.f32.mrb[31].mxu1  ;;  %7621 = vst [vmem:[#allocation63_spill] sm:$0xff] %v6195_v6  ;;  %v694_v30 = vadd.f32 %v6096_v7, %v6195_v6 }
 0x16a   :  { %7616 = vst [vmem:[#allocation58_spill] sm:$0xff] %v6181_v27  ;;  %v692_v27 = vadd.f32 %v6093_v4, %v6190_v24 }
 0x16e   :  { %v6185_v51 = vpop.f32.mrb[32].mxu1 }
 0x16f   :  { %7617 = vst [vmem:[#allocation59_spill] sm:$0xff] %v6185_v51  ;;  %v6187_v0 = vpop.f32.mrb[33].mxu1 }
 0x170   :  { %7618 = vst [vmem:[#allocation60_spill] sm:$0xff] %v6187_v0  ;;  %v6192_v21 = vpop.f32.mrb[34].mxu1 }
 0x171   :  { %7620 = vst [vmem:[#allocation62_spill] sm:$0xff] %v6192_v21  ;;  %v6197_v9 = vpop.f32.mrb[35].mxu1 }
 0x172   :  { %7622 = vst [vmem:[#allocation64_spill] sm:$0xff] %v6197_v9 }
 0x177   :  { %v1357_v5 = vpop.f32.mrb[24].mxu0 }
 0x178   :  { %v1408_v51 = vadd.f32 %v1357_v5, %v692_v27  ;;  %v1359_v3 = vpop.f32.mrb[25].mxu0  ;;  %v4292_v5 = vmul.f32 -1.442695, %v1404_v53 }
 0x179   :  { %v1409_v0 = vadd.f32 %v1359_v3, %v694_v30  ;;  %v1361_v55 = vpop.f32.mrb[26].mxu0 }
 0x17a   :  { %v1362_v63 = vpop.f32.mrb[27].mxu0  ;;  %v4293_v55 = vmul.f32 -1.442695, %v1405_v2  ;;  %v4295_v27 = vmul.f32 -1.442695, %v1408_v51  ;;  %5001 = vpow2.f32 %v4292_v5 }
 0x17b   :  { %v4296_v30 = vmul.f32 -1.442695, %v1409_v0 }
 0x17c   :  { %5003 = vpow2.f32 %v4293_v55 }
 0x17d   :  { %5005 = vpow2.f32 %v4296_v30 }
 0x17e   :  { %v772_v57 = vpop.f32.mrb[40].mxu1  ;;  %5007 = vpow2.f32 %v4295_v27 }
 0x17f   :  { %v4515_v18 = vpop.f32.mrb[41].mxu1 }
 0x180   :  { %v6203_v21 = vpop.f32.mrb[42].mxu1 }
 0x181   :  { %7623 = vst [vmem:[#allocation65_spill] sm:$0xff] %v6203_v21  ;;  %v4516_v8 = vpop.f32.mrb[43].mxu1 }
 0x186   :  { %v6205_v12 = vpop.f32.mrb[44].mxu1 }
 0x187   :  { %7624 = vst [vmem:[#allocation66_spill] sm:$0xff] %v6205_v12  ;;  %v4519_v9 = vpop.f32.mrb[45].mxu1 }
 0x188   :  { %v6207_v59 = vpop.f32.mrb[46].mxu1 }
 0x189   :  { %7625 = vst [vmem:[#allocation67_spill] sm:$0xff] %v6207_v59  ;;  %v4520_v4 = vpop.f32.mrb[47].mxu1 }
 0x18a   :  { %v154_v4 = vsub.s32 2, %v6084_v62 }
 0x18c   :  { %v6220_v2 = vrot.slane %v6090_v1, %v154_v4 }
 0x18e   :  { %v6209_v24 = vpop.f32.mrb[48].mxu1  ;;  %7630 = vst [vmem:[#allocation72_spill] sm:$0xff] %v6220_v2  ;;  %v611_v27 = vadd.f32 %v6159_v15, %v6220_v2 }
 0x18f   :  { %7626 = vst [vmem:[#allocation68_spill] sm:$0xff] %v6209_v24  ;;  %v4523_v7 = vpop.f32.mrb[49].mxu1 }
 0x190   :  { %v6211_v6 = vpop.f32.mrb[50].mxu1  ;;  %v158_v7 = vsub.s32 3, %v6084_v62 }
 0x191   :  { %7627 = vst [vmem:[#allocation69_spill] sm:$0xff] %v6211_v6  ;;  %v4524_v3 = vpop.f32.mrb[51].mxu1  ;;  %v5002_v6 = vpop.eup %5001 }
 0x192   :  { %v5004_v53 = vpop.eup %5003  ;;  %v1414_v0 = vadd.f32 1.0, %v5002_v6  ;;  %v6223_v5 = vrot.slane %v6090_v1, %v158_v7 }
 0x193   :  { %v5006_v3 = vpop.eup %5005  ;;  %v1420_v55 = vadd.f32 1.0, %v5004_v53 }
 0x194   :  { %v5008_v51 = vpop.eup %5007  ;;  %7631 = vst [vmem:[#allocation73_spill] sm:$0xff] %v6223_v5  ;;  %v1439_v30 = vadd.f32 1.0, %v5006_v3  ;;  %5009 = vrcp.f32 %v1414_v0 }
 0x195   :  { %5011 = vrcp.f32 %v1420_v55 }
 0x196   :  { %v6213_v18 = vpop.f32.mrb[52].mxu1  ;;  %5013 = vrcp.f32 %v1439_v30 }
 0x197   :  { %7628 = vst [vmem:[#allocation70_spill] sm:$0xff] %v6213_v18  ;;  %v4527_v63 = vpop.f32.mrb[53].mxu1 }
 0x198   :  { %v6215_v9 = vpop.f32.mrb[54].mxu1  ;;  %v1433_v63 = vadd.f32 1.0, %v5008_v51 }
 0x199   :  { %7629 = vst [vmem:[#allocation71_spill] sm:$0xff] %v6215_v9  ;;  %v4528_v8 = vpop.f32.mrb[55].mxu1 }
 0x19a   :  { %v613_v8 = vadd.f32 %v6161_v61, %v6223_v5  ;;  %5015 = vrcp.f32 %v1433_v63 }
 0x19e   :  { %v5010_v53 = vpop.eup %5009 }
 0x19f   :  { %v5012_v3 = vpop.eup %5011 }
 0x1a0   :  { %v5014_v59 = vpop.eup %5013  ;;  %v1450_v51 = vmul.f32 0.0, %v5012_v3 }
 0x1a1   :  { %v1453_v0 = vmul.f32 0.0, %v5014_v59  ;;  %v1461_v59 = vpop.permute.xlu0 %1460 }
 0x1a4   :  { %v5016_v12 = vpop.eup %5015 }
 0x1a6   :  { %v1316_v9 = vpop.f32.mrb[60].mxu1 }
 0x1a7   :  { %v1406_v18 = vadd.f32 %v1316_v9, %v611_v27  ;;  %v1318_v4 = vpop.f32.mrb[61].mxu1  ;;  %v170_v9 = vsub.s32 6, %v6084_v62 }
 0x1a8   :  { %v1407_v24 = vadd.f32 %v1318_v4, %v613_v8  ;;  %v1320_v6 = vpop.f32.mrb[62].mxu1 }
 0x1a9   :  { %v1321_v7 = vpop.f32.mrb[63].mxu1  ;;  %v6233_v55 = vrot.slane %v6090_v1, %v170_v9  ;;  %v4294_v3 = vmul.f32 -1.442695, %v1406_v18 }
 0x1aa   :  { %5017 = vtanh.f32 %v1407_v24 }
 0x1ab   :  { %7632 = vst [vmem:[#allocation74_spill] sm:$0xff] %v6233_v55  ;;  %v773_v30 = vadd.f32 %v772_v57, %v6233_v55 }
 0x1b4   :  { %v5018_v15 = vpop.eup %5017 }
 0x1b5   :  { %v1451_v21 = vmul.f32 %v5018_v15, %v5010_v53  ;;  %v1454_v2 = vmul.f32 %v5018_v15, %v5016_v12  ;;  %v6236_v12 = vpop.permute.xlu0 %1714 }
 0x1b7   :  { %v1452_v61 = vadd.f32 %v1451_v21, %v1450_v51  ;;  %v6229_v5 = vadd.f32 %v1454_v2, %v1453_v0 }
 0x1b9   :  { %v6238_v62 = vpop.permute.xlu0 %2476 }
 0x1ba   :  { %7633 = vst [vmem:[#allocation75_spill] sm:$0xff] %v6238_v62  ;;  %v7667_v62 = vld [vmem:[#allocation24_spill] sm:$0xff] }
 0x1bd   :  { %v6240_v1 = vpop.permute.xlu0 %2984 }
 0x1be   :  { %7634 = vst [vmem:[#allocation76_spill] sm:$0xff] %v6240_v1 }
 0x1c1   :  { %v1472_v51 = vpop.permute.xlu0 %1471 }
 0x1c6   :  { %v1398_v24 = vpop.f32.mrb[64].mxu1 }
 0x1c7   :  { %v1410_v27 = vadd.f32 %v1398_v24, %v773_v30  ;;  %v4551_v63 = vpop.f32.mrb[65].mxu1 }
 0x1c8   :  { %v1401_v8 = vpop.f32.mrb[66].mxu1 }
 0x1c9   :  { %v1443_v4 = vmin.f32 %v1410_v27, 20.0  ;;  %v4552_v6 = vpop.f32.mrb[67].mxu1  ;;  %vm1442_vm1 = vcmp.gt.f32.partialorder %v1410_v27, 20.0 }
 0x1cb   :  { %v1444_v7 = vmul.f32 1.442695, %v1443_v4  ;;  %v1456_v4 = vsub.f32 %v1452_v61, %v6229_v5 }
 0x1cd   :  { %5019 = vpow2.f32 %v1444_v7 }
 0x1d7   :  { %v5020_v21 = vpop.eup %5019 }
 0x1d8   :  { %v1446_v2 = vadd.f32 1.0, %v5020_v21 }
 0x1da   :  { %5021 = vlog2.f32 %v1446_v2 }
 0x1db   :  { %5023 = vpow2.f32 %v4294_v3 }
 0x1e4   :  { %v5022_v53 = vpop.eup %5021 }
 0x1e5   :  { %v1448_v57 = vmul.f32 0.6931472, %v5022_v53  ;;  %v5024_v8 = vpop.eup %5023 }
 0x1e6   :  { %v1426_v7 = vadd.f32 1.0, %v5024_v8 }
 0x1e7   :  { %v1449_v15 = vsel %vm1442_vm1, %v1410_v27, %v1448_v57 }
 0x1e8   :  { %v1457_v0 = vsub.f32 0.0, %v1449_v15 }
 0x1ea   :  { %v1463_v9 = vmul.f32 %v1461_v59, %v1457_v0  ;;  %v1474_v30 = vmul.f32 %v1472_v51, %v1457_v0 }
 0x1ec   :  { %v1464_v24 = vmul.f32 1.442695, %v1463_v9  ;;  %v1475_v63 = vmul.f32 1.442695, %v1474_v30  ;;  %v7635_v30 = vmov 0.0  }
 0x1ee   :  { %5025 = vpow2.f32 %v1464_v24  ;;  %v7636_v24 = vmov 0  }
 0x1ef   :  { %5027 = vpow2.f32 %v1475_v63 }
 0x1f0   :  { %5029 = vrcp.f32 %v1426_v7 }
 0x1f8   :  { %v5026_v6 = vpop.eup %5025 }
 0x1f9   :  { %v5028_v21 = vpop.eup %5027  ;;  %v1466_v2 = vmul.f32 %v5026_v6, %v1456_v4 }
 0x1fa   :  { %v1477_v53 = vmul.f32 %v5028_v21, %v1456_v4  ;;  %v5030_v59 = vpop.eup %5029 }
 0x1fb   :  { %v6244_v18 = vadd.f32 %v1466_v2, %v6229_v5 }
 0x1fc   :  { %v1478_v27 = vadd.f32 %v1477_v53, %v6229_v5 }
 0x1fd   :  { %5031 = vtanh.f32 %v6244_v18 }
 0x1fe   :  { %5033 = vtanh.f32 %v1478_v27  ;;  %v939_v27 = vld [vmem:[%s7500_s1 + $0x10] sm:$0xff] }
 0x1ff   :  { %1968 = vperm.xlu1 %4821, %v939_v27  }
 0x207   :  { %v5032_v57 = vpop.eup %5031 }
 0x208   :  { %v5034_v3 = vpop.eup %5033  ;;  %v1469_v15 = vmul.f32 %v5032_v57, %v5030_v59  ;;  %v942_v57 = vld [vmem:[%s7500_s1 + $0x28] sm:$0xff] }
 0x209   :  { %v1480_v51 = vmul.f32 %v5034_v3, %v5030_v59  ;;  %v940_v59 = vld [vmem:[%s7500_s1 + $0x18] sm:$0xff] }
 0x20a   :  { %v1481_v61 = vpack.c.bf16 %v1469_v15, %v1469_v15  ;;  %2233 = vperm.xlu0 %4822, %v940_v59   ;;  %2222 = vperm.xlu1 %4821, %v940_v59   ;;  %v944_v3 = vld [vmem:[%s7500_s1 + $0x38] sm:$0xff] }
 0x20b   :  { %v1483_v0 = vpack.c.bf16 %v1480_v51, %v1480_v51 }
 0x20c   :  { %1482 = vst [vmem:[#allocation3] sm:$0xf] %v1481_v61  ;;  %1528 = vmatmul.mubr.bf16.vlgmr.msra.gmra.mrb[28].mxu0 %v1481_v61  ;;  %1569 = vmatmul.mubr.bf16.vlgmr.msra.gmra.mrb[68].mxu1 %v1481_v61 }
 0x20d   :  { %v1485_v9 = vrot.slane %v1483_v0, 4  ;;  %1578 = vmatpush1.bf16.msra.mxu0 %v5864_v10  ;;  %4554 = vmatpush3.bf16.msra.mxu1 %v6011_v48  ;;  %v6281_v10 = vld [vmem:[#allocation9 + $0x4] ss:$28 sps:$4 sm:$0xff]  }
 0x20e   :  { %1579 = vmatprep.subr.bf16.mxu0 %v5866_v11  ;;  %4555 = vmatprep.subr.bf16.mxu1 %v7635_v30  ;;  %v6285_v11 = vld [vmem:[#allocation9] ss:$28 sps:$4 sm:$0xff]  }
 0x20f   :  { %1487 = vst [vmem:[#allocation3 + $0x20] sm:$0xf0] %v1485_v9  ;;  %1609 = vmatprep.mubr.bf16.mxu0 %v7636_v24  ;;  %4569 = vmatprep.mubr.msk.bf16.mxu1 %vm5686_vm0, %v7635_v30  ;;  %v945_v9 = vld [vmem:[%s7500_s1 + $0x40] sm:$0xff] }
 0x210   :  { %2741 = vperm.xlu0 %4822, %v942_v57   ;;  %2730 = vperm.xlu1 %4821, %v942_v57  }
 0x211   :  { %1580 = vmatpush1.bf16.msra.mxu0 %v5873_v13  ;;  %4556 = vmatpush3.bf16.msra.mxu1 %v6015_v49  ;;  %v6289_v13 = vld [vmem:[#allocation9 + $0x3c] ss:$28 sps:$4 sm:$0xff]  }
 0x212   :  { %1581 = vmatprep.subr.bf16.mxu0 %v5876_v14  ;;  %4557 = vmatprep.subr.bf16.mxu1 %v7635_v30  ;;  %v6295_v14 = vld [vmem:[#allocation9 + $0x38] ss:$28 sps:$4 sm:$0xff]  }
 0x214   :  { %3249 = vperm.xlu0 %4822, %v944_v3   ;;  %3238 = vperm.xlu1 %4821, %v944_v3  }
 0x215   :  { %1582 = vmatpush1.bf16.msra.mxu0 %v5881_v16  ;;  %4558 = vmatpush3.bf16.msra.mxu1 %v6021_v50  ;;  %v6299_v16 = vld [vmem:[#allocation9 + $0x74] ss:$28 sps:$4 sm:$0xff]  }
 0x216   :  { %1583 = vmatprep.subr.bf16.mxu0 %v5884_v17  ;;  %4559 = vmatprep.subr.bf16.mxu1 %v7635_v30  ;;  %v6303_v17 = vld [vmem:[#allocation9 + $0x70] ss:$28 sps:$4 sm:$0xff]  }
 0x218   :  { %3492 = vperm.xlu1 %4821, %v945_v9  }
 0x219   :  { %1584 = vmatpush1.bf16.msra.mxu0 %v5888_v19  ;;  %4560 = vmatpush3.bf16.msra.mxu1 %v6028_v52  ;;  %v6307_v19 = vld [vmem:[#allocation9 + $0xac] ss:$28 sps:$4 sm:$0xff]  }
 0x21a   :  { %1585 = vmatprep.subr.bf16.mxu0 %v5890_v20  ;;  %4561 = vmatprep.subr.bf16.mxu1 %v7635_v30  ;;  %v6311_v20 = vld [vmem:[#allocation9 + $0xa8] ss:$28 sps:$4 sm:$0xff]  }
 0x21d   :  { %1586 = vmatpush1.bf16.msra.mxu0 %v5895_v22  ;;  %4562 = vmatpush3.bf16.msra.mxu1 %v6035_v54  ;;  %v6315_v22 = vld [vmem:[#allocation9 + $0xe4] ss:$28 sps:$4 sm:$0xff]  }
 0x21e   :  { %1587 = vmatprep.subr.bf16.mxu0 %v5900_v23  ;;  %4563 = vmatprep.subr.bf16.mxu1 %v7635_v30  ;;  %v6319_v23 = vld [vmem:[#allocation9 + $0xe0] ss:$28 sps:$4 sm:$0xff]  }
 0x221   :  { %1588 = vmatpush1.bf16.msra.mxu0 %v5906_v25  ;;  %4564 = vmatpush3.bf16.msra.mxu1 %v6045_v56  ;;  %v6323_v25 = vld [vmem:[#allocation9 + $0x11c] ss:$28 sps:$4 sm:$0xff]  }
 0x222   :  { %1589 = vmatprep.subr.bf16.mxu0 %v5909_v26  ;;  %4565 = vmatprep.subr.bf16.mxu1 %v7635_v30  ;;  %7637 = vst [vmem:[#allocation77_spill] sm:$0xff] %v6323_v25  ;;  %v6327_v26 = vld [vmem:[#allocation9 + $0x118] ss:$28 sps:$4 sm:$0xff]  }
 0x223   :  { %7638 = vst [vmem:[#allocation78_spill] sm:$0xff] %v6327_v26 }
 0x225   :  { %1590 = vmatpush1.bf16.msra.mxu0 %v5913_v28  ;;  %4566 = vmatpush3.bf16.msra.mxu1 %v6055_v58  ;;  %v6331_v28 = vld [vmem:[#allocation9 + $0x154] ss:$28 sps:$4 sm:$0xff]  }
 0x226   :  { %1591 = vmatprep.subr.bf16.mxu0 %v5916_v29  ;;  %4567 = vmatprep.subr.bf16.mxu1 %v7635_v30  ;;  %7639 = vst [vmem:[#allocation79_spill] sm:$0xff] %v6331_v28  ;;  %v6335_v29 = vld [vmem:[#allocation9 + $0x150] ss:$28 sps:$4 sm:$0xff]  }
 0x227   :  { %7640 = vst [vmem:[#allocation80_spill] sm:$0xff] %v6335_v29 }
 0x229   :  { %1592 = vmatpush1.bf16.msra.mxu0 %v5924_v32  ;;  %4568 = vmatpush3.bf16.msra.mxu1 %v6060_v60  ;;  %v6343_v32 = vld [vmem:[#allocation9 + $0x188] ss:$28 sps:$4 sm:$0xff]  }
 0x22a   :  { %1749 = vmatprep.subr.bf16.mxu0 %v6281_v10  ;;  %1790 = vmatprep.subr.bf16.mxu1 %v5921_v31  ;;  %v6339_v31 = vld [vmem:[#allocation9 + $0x18c] ss:$28 sps:$4 sm:$0xff]   ;;  %7642 = vst [vmem:[#allocation82_spill] sm:$0xff] %v6343_v32 }
 0x22b   :  { %7641 = vst [vmem:[#allocation81_spill] sm:$0xff] %v6339_v31 }
 0x22c   :  { %1610 = vmatmul.mubr.bf16.vlgmr.msra.gmra.mrb[32].mxu0 %v1481_v61  ;;  %4570 = vmatmul.mubr.bf16.vlgmr.msra.gmra.mrb[72].mxu1 %v1481_v61 }
 0x22d   :  { %1750 = vmatpush1.bf16.msra.mxu0 %v6285_v11  ;;  %1791 = vmatpush1.bf16.msra.mxu1 %v5937_v33  ;;  %v6347_v33 = vld [vmem:[#allocation9 + $0x14] ss:$28 sps:$4 sm:$0xff]  }
 0x22e   :  { %1751 = vmatprep.subr.bf16.mxu0 %v6289_v13  ;;  %1792 = vmatprep.subr.bf16.mxu1 %v5939_v36  ;;  %7643 = vst [vmem:[#allocation83_spill] sm:$0xff] %v6347_v33  ;;  %v7644_v36 = vld [vmem:[#allocation72_spill] sm:$0xff] }
 0x22f   :  { %1781 = vmatprep.mubr.bf16.mxu0 %v7636_v24  ;;  %1822 = vmatprep.mubr.bf16.mxu1 %v7636_v24 }
 0x231   :  { %1752 = vmatpush1.bf16.msra.mxu0 %v6295_v14  ;;  %1793 = vmatpush1.bf16.msra.mxu1 %v5945_v34  ;;  %v7645_v34 = vld [vmem:[#allocation49_spill] sm:$0xff] }
 0x232   :  { %1753 = vmatprep.subr.bf16.mxu0 %v6299_v16  ;;  %1794 = vmatprep.subr.bf16.mxu1 %v5950_v37  ;;  %v615_v37 = vadd.f32 %v7645_v34, %v7644_v36 }
 0x235   :  { %1754 = vmatpush1.bf16.msra.mxu0 %v6303_v17  ;;  %1795 = vmatpush1.bf16.msra.mxu1 %v5955_v38  ;;  %v7646_v38 = vld [vmem:[#allocation73_spill] sm:$0xff] }
 0x236   :  { %1755 = vmatprep.subr.bf16.mxu0 %v6307_v19  ;;  %1796 = vmatprep.subr.bf16.mxu1 %v5958_v35  ;;  %v7647_v35 = vld [vmem:[#allocation50_spill] sm:$0xff] }
 0x239   :  { %1756 = vmatpush1.bf16.msra.mxu0 %v6311_v20  ;;  %1797 = vmatpush1.bf16.msra.mxu1 %v5966_v39  ;;  %v617_v39 = vadd.f32 %v7647_v35, %v7646_v38 }
 0x23a   :  { %1757 = vmatprep.subr.bf16.mxu0 %v6315_v22  ;;  %1798 = vmatprep.subr.bf16.mxu1 %v5969_v40 }
 0x23d   :  { %1758 = vmatpush1.bf16.msra.mxu0 %v6319_v23  ;;  %1799 = vmatpush1.bf16.msra.mxu1 %v5974_v41 }
 0x23e   :  { %1759 = vmatprep.subr.bf16.mxu0 %v6323_v25  ;;  %1800 = vmatprep.subr.bf16.mxu1 %v5977_v42  ;;  %v7648_v42 = vld [vmem:[#allocation20_spill] sm:$0xff] }
 0x241   :  { %1760 = vmatpush1.bf16.msra.mxu0 %v6327_v26  ;;  %1801 = vmatpush1.bf16.msra.mxu1 %v5985_v43 }
 0x242   :  { %1761 = vmatprep.subr.bf16.mxu0 %v6331_v28  ;;  %1802 = vmatprep.subr.bf16.mxu1 %v5988_v44 }
 0x245   :  { %1762 = vmatpush1.bf16.msra.mxu0 %v6335_v29  ;;  %1803 = vmatpush1.bf16.msra.mxu1 %v5993_v45 }
 0x246   :  { %1763 = vmatprep.subr.bf16.mxu0 %v6339_v31  ;;  %1804 = vmatprep.subr.bf16.mxu1 %v5996_v46 }
 0x249   :  { %1764 = vmatpush1.bf16.msra.mxu0 %v6343_v32  ;;  %1805 = vmatpush1.bf16.msra.mxu1 %v6004_v47  ;;  %v7649_v47 = vld [vmem:[#allocation22_spill] sm:$0xff] }
 0x24a   :  { %1831 = vmatprep.subr.bf16.mxu0 %v6347_v33  ;;  %4573 = vmatprep.subr.bf16.mxu1 %v7635_v30 }
 0x2df   :  { %v1529_v40 = vpop.f32.mrb[28].mxu0  ;;  %v1570_v41 = vpop.f32.mrb[68].mxu1 }
 0x2e0   :  { %v1658_v43 = vadd.f32 %v1529_v40, %v7648_v42  ;;  %v6356_v44 = vadd.f32 %v1570_v41, %v615_v37  ;;  %v1531_v45 = vpop.f32.mrb[29].mxu0  ;;  %v1572_v46 = vpop.f32.mrb[69].mxu1  ;;  %v7650_v37 = vmov 1   ;;  %v7651_v41 = vld [vmem:[#allocation61_spill] sm:$0xff]  ;;  %v7652_v42 = vld [vmem:[#allocation19_spill] sm:$0xff] }
 0x2e1   :  { %v1659_v63 = vadd.f32 %v1531_v45, %v7649_v47  ;;  %v1661_v8 = vadd.f32 %v1572_v46, %v617_v39  ;;  %v1533_v4 = vpop.f32.mrb[30].mxu0  ;;  %v1574_v6 = vpop.f32.mrb[70].mxu1  ;;  %4823 = vset.pattern.permute.xlu1 %v7650_v37  ;;  %v7653_v45 = vld [vmem:[#allocation65_spill] sm:$0xff] }
 0x2e2   :  { %v4297_v7 = vmul.f32 -1.442695, %v1658_v43  ;;  %v1534_v21 = vpop.f32.mrb[31].mxu0  ;;  %v1575_v2 = vpop.f32.mrb[71].mxu1  ;;  %1979 = vperm.xlu1 %4823, %v939_v27   ;;  %v696_v43 = vadd.f32 %v7652_v42, %v7651_v41  ;;  %v776_v46 = vadd.f32 %v7653_v45, %v6233_v55 }
 0x2e3   :  { %v4298_v53 = vmul.f32 -1.442695, %v1659_v63  ;;  %v7654_v63 = vld [vmem:[#allocation63_spill] sm:$0xff]  ;;  %v7656_v21 = vld [vmem:[#allocation17_spill] sm:$0xff] }
 0x2e4   :  { %5035 = vpow2.f32 %v4297_v7 }
 0x2e5   :  { %5037 = vpow2.f32 %v4298_v53 }
 0x2e6   :  { %5039 = vtanh.f32 %v1661_v8  ;;  %v7655_v8 = vld [vmem:[#allocation21_spill] sm:$0xff]  ;;  %2487 = vperm.xlu1 %4823, %v7656_v21  }
 0x2e7   :  { %v698_v4 = vadd.f32 %v7655_v8, %v7654_v63 }
 0x2ee   :  { %v5036_v15 = vpop.eup %5035 }
 0x2ef   :  { %v1668_v51 = vadd.f32 1.0, %v5036_v15  ;;  %v5038_v61 = vpop.eup %5037 }
 0x2f0   :  { %v1674_v0 = vadd.f32 1.0, %v5038_v61  ;;  %v5040_v34 = vpop.eup %5039 }
 0x2f1   :  { %5041 = vrcp.f32 %v1668_v51 }
 0x2f2   :  { %5043 = vrcp.f32 %v1674_v0 }
 0x2fb   :  { %v5042_v35 = vpop.eup %5041 }
 0x2fc   :  { %v1705_v39 = vmul.f32 %v5042_v35, %v5040_v34  ;;  %v5044_v40 = vpop.eup %5043 }
 0x2fd   :  { %v1704_v47 = vmul.f32 %v5044_v40, %v6244_v18  ;;  %v7657_v40 = vld [vmem:[#allocation18_spill] sm:$0xff] }
 0x2fe   :  { %2995 = vperm.xlu1 %4823, %v7657_v40  }
 0x2ff   :  { %v1611_v6 = vpop.f32.mrb[32].mxu0  ;;  %v1652_v7 = vpop.f32.mrb[72].mxu1  ;;  %v1706_v2 = vadd.f32 %v1705_v39, %v1704_v47 }
 0x300   :  { %v1662_v53 = vadd.f32 %v1611_v6, %v696_v43  ;;  %v1664_v27 = vadd.f32 %v1652_v7, %v776_v46  ;;  %v1613_v59 = vpop.f32.mrb[33].mxu0  ;;  %v4571_v57 = vpop.f32.mrb[73].mxu1 }
 0x301   :  { %v1663_v3 = vadd.f32 %v1613_v59, %v698_v4  ;;  %v1615_v15 = vpop.f32.mrb[34].mxu0  ;;  %v1655_v51 = vpop.f32.mrb[74].mxu1 }
 0x302   :  { %v4300_v61 = vmul.f32 -1.442695, %v1662_v53  ;;  %v1697_v0 = vmin.f32 %v1664_v27, 20.0  ;;  %v1616_v37 = vpop.f32.mrb[35].mxu0  ;;  %v4572_v35 = vpop.f32.mrb[75].mxu1  ;;  %3503 = vperm.xlu1 %4823, %v945_v9   ;;  %vm1696_vm2 = vcmp.gt.f32.partialorder %v1664_v27, 20.0 }
 0x303   :  { %v4301_v18 = vmul.f32 -1.442695, %v1663_v3  ;;  %v4299_v9 = vmul.f32 -1.442695, %v6356_v44  ;;  %v1726_v3 = vpop.permute.xlu0 %1725 }
 0x304   :  { %5045 = vpow2.f32 %v4300_v61  ;;  %v1698_v42 = vmul.f32 1.442695, %v1697_v0 }
 0x305   :  { %5047 = vpow2.f32 %v4301_v18 }
 0x306   :  { %5049 = vpow2.f32 %v1698_v42 }
 0x30e   :  { %v5046_v39 = vpop.eup %5045 }
 0x30f   :  { %v5048_v43 = vpop.eup %5047  ;;  %v1687_v45 = vadd.f32 1.0, %v5046_v39 }
 0x310   :  { %v5050_v46 = vpop.eup %5049  ;;  %v1693_v47 = vadd.f32 1.0, %v5048_v43 }
 0x311   :  { %5051 = vrcp.f32 %v1687_v45  ;;  %v1700_v8 = vadd.f32 1.0, %v5050_v46 }
 0x312   :  { %5053 = vrcp.f32 %v1693_v47 }
 0x313   :  { %5055 = vlog2.f32 %v1700_v8 }
 0x314   :  { %5057 = vpow2.f32 %v4299_v9  ;;  %v6418_v9 = vld [vmem:[#allocation9 + $0xbc] ss:$28 sps:$4 sm:$0xff]  }
 0x31b   :  { %v5052_v4 = vpop.eup %5051 }
 0x31c   :  { %v5054_v6 = vpop.eup %5053  ;;  %v1708_v7 = vmul.f32 %v5052_v4, %v5040_v34 }
 0x31d   :  { %v5056_v21 = vpop.eup %5055  ;;  %v1707_v53 = vmul.f32 %v5054_v6, %v6229_v5 }
 0x31e   :  { %v1702_v59 = vmul.f32 0.6931472, %v5056_v21  ;;  %v5058_v34 = vpop.eup %5057  ;;  %v6399_v21 = vld [vmem:[#allocation9 + $0x4c] ss:$28 sps:$4 sm:$0xff]  }
 0x31f   :  { %v6385_v57 = vadd.f32 %v1708_v7, %v1707_v53  ;;  %v1680_v40 = vadd.f32 1.0, %v5058_v34  ;;  %v6395_v7 = vld [vmem:[#allocation9 + $0x10] ss:$28 sps:$4 sm:$0xff]   ;;  %v6406_v53 = vld [vmem:[#allocation9 + $0x48] ss:$28 sps:$4 sm:$0xff]  }
 0x320   :  { %v1703_v15 = vsel %vm1696_vm2, %v1664_v27, %v1702_v59  ;;  %v6410_v59 = vld [vmem:[#allocation9 + $0x84] ss:$28 sps:$4 sm:$0xff]   ;;  %v6481_v34 = vld [vmem:[#allocation9 + $0x78] ss:$28 sps:$4 sm:$0xff]  }
 0x321   :  { %v1711_v51 = vsub.f32 0.0, %v1703_v15  ;;  %v1710_v5 = vsub.f32 %v1706_v2, %v6385_v57  ;;  %v6430_v15 = vld [vmem:[#allocation9 + $0xf0] ss:$28 sps:$4 sm:$0xff]  }
 0x323   :  { %v1717_v61 = vmul.f32 %v6236_v12, %v1711_v51  ;;  %v1728_v0 = vmul.f32 %v1726_v3, %v1711_v51  ;;  %v6422_v3 = vld [vmem:[#allocation9 + $0xb8] ss:$28 sps:$4 sm:$0xff]   ;;  %v6438_v51 = vld [vmem:[#allocation9 + $0x128] ss:$28 sps:$4 sm:$0xff]  }
 0x325   :  { %v1718_v37 = vmul.f32 1.442695, %v1717_v61  ;;  %v1729_v35 = vmul.f32 1.442695, %v1728_v0  ;;  %v6446_v61 = vld [vmem:[#allocation9 + $0x160] ss:$28 sps:$4 sm:$0xff]  }
 0x326   :  { %v6454_v0 = vld [vmem:[#allocation9 + $0x198] ss:$28 sps:$4 sm:$0xff]  }
 0x327   :  { %5059 = vpow2.f32 %v1718_v37  ;;  %v6467_v37 = vld [vmem:[#allocation9 + $0x44] ss:$28 sps:$4 sm:$0xff]  }
 0x328   :  { %5061 = vpow2.f32 %v1729_v35  ;;  %v6477_v35 = vld [vmem:[#allocation9 + $0x7c] ss:$28 sps:$4 sm:$0xff]  }
 0x329   :  { %5063 = vrcp.f32 %v1680_v40  ;;  %v6493_v40 = vld [vmem:[#allocation9 + $0xec] ss:$28 sps:$4 sm:$0xff]  }
 0x331   :  { %v5060_v18 = vpop.eup %5059 }
 0x332   :  { %v5062_v42 = vpop.eup %5061  ;;  %v1720_v39 = vmul.f32 %v5060_v18, %v1710_v5  ;;  %v6489_v18 = vld [vmem:[#allocation9 + $0xb0] ss:$28 sps:$4 sm:$0xff]  }
 0x333   :  { %v1731_v43 = vmul.f32 %v5062_v42, %v1710_v5  ;;  %v5064_v27 = vpop.eup %5063  ;;  %v6485_v5 = vld [vmem:[#allocation9 + $0xb4] ss:$28 sps:$4 sm:$0xff]   ;;  %v6497_v42 = vld [vmem:[#allocation9 + $0xe8] ss:$28 sps:$4 sm:$0xff]  }
 0x334   :  { %v6391_v44 = vadd.f32 %v1720_v39, %v6385_v57  ;;  %7658 = vst [vmem:[#allocation49_spill] sm:$0xff] %v6497_v42  ;;  %v6501_v39 = vld [vmem:[#allocation9 + $0x124] ss:$28 sps:$4 sm:$0xff]  }
 0x335   :  { %v1732_v12 = vadd.f32 %v1731_v43, %v6385_v57  ;;  %7659 = vst [vmem:[#allocation50_spill] sm:$0xff] %v6501_v39  ;;  %v6505_v43 = vld [vmem:[#allocation9 + $0x120] ss:$28 sps:$4 sm:$0xff]  }
 0x336   :  { %5065 = vtanh.f32 %v6391_v44  ;;  %7660 = vst [vmem:[#allocation20_spill] sm:$0xff] %v6505_v43 }
 0x337   :  { %5067 = vtanh.f32 %v1732_v12  ;;  %v6509_v12 = vld [vmem:[#allocation9 + $0x15c] ss:$28 sps:$4 sm:$0xff]  }
 0x338   :  { %7661 = vst [vmem:[#allocation22_spill] sm:$0xff] %v6509_v12 }
 0x340   :  { %v5066_v45 = vpop.eup %5065 }
 0x341   :  { %v5068_v46 = vpop.eup %5067  ;;  %v1723_v47 = vmul.f32 %v5066_v45, %v5064_v27  ;;  %v6517_v45 = vld [vmem:[#allocation9 + $0x194] ss:$28 sps:$4 sm:$0xff]  }
 0x342   :  { %v1734_v8 = vmul.f32 %v5068_v46, %v5064_v27  ;;  %v6513_v27 = vld [vmem:[#allocation9 + $0x158] ss:$28 sps:$4 sm:$0xff]   ;;  %7663 = vst [vmem:[#allocation65_spill] sm:$0xff] %v6517_v45  ;;  %v6521_v46 = vld [vmem:[#allocation9 + $0x190] ss:$28 sps:$4 sm:$0xff]  }
 0x343   :  { %v1735_v2 = vpack.c.bf16 %v1723_v47, %v1723_v47  ;;  %7662 = vst [vmem:[#allocation19_spill] sm:$0xff] %v6513_v27  ;;  %7664 = vst [vmem:[#allocation21_spill] sm:$0xff] %v6521_v46  ;;  %v7665_v47 = vld [vmem:[#allocation51_spill] sm:$0xff] }
 0x344   :  { %v1740_v4 = vpack.c.bf16 %v1734_v8, %v1734_v8  ;;  %v621_v8 = vadd.f32 %v7665_v47, %v7644_v36 }
 0x345   :  { %v1737_v6 = vrot.slane %v1735_v2, 4  ;;  %1782 = vmatmul.mubr.bf16.vlgmr.msra.gmra.mrb[36].mxu0 %v1735_v2  ;;  %1823 = vmatmul.mubr.bf16.vlgmr.msra.gmra.mrb[76].mxu1 %v1735_v2 }
 0x346   :  { %1741 = vst [vmem:[#allocation3 + $0x28] sm:$0xf] %v1740_v4  ;;  %1832 = vmatpush1.bf16.msra.mxu0 %v6395_v7  ;;  %4574 = vmatpush3.bf16.msra.mxu1 %v6011_v48  ;;  %v6414_v48 = vld [vmem:[#allocation9 + $0x80] ss:$28 sps:$4 sm:$0xff]  }
 0x347   :  { %1739 = vst [vmem:[#allocation3] sm:$0xf0] %v1737_v6  ;;  %1833 = vmatprep.subr.bf16.mxu0 %v6399_v21  ;;  %4575 = vmatprep.subr.bf16.mxu1 %v7635_v30 }
 0x348   :  { %1863 = vmatprep.mubr.bf16.mxu0 %v7636_v24  ;;  %4589 = vmatprep.mubr.msk.bf16.mxu1 %vm5686_vm0, %v7635_v30 }
 0x34a   :  { %1834 = vmatpush1.bf16.msra.mxu0 %v6406_v53  ;;  %4576 = vmatpush3.bf16.msra.mxu1 %v6015_v49  ;;  %v6426_v49 = vld [vmem:[#allocation9 + $0xf4] ss:$28 sps:$4 sm:$0xff]  }
 0x34b   :  { %1835 = vmatprep.subr.bf16.mxu0 %v6410_v59  ;;  %4577 = vmatprep.subr.bf16.mxu1 %v7635_v30 }
 0x34e   :  { %1836 = vmatpush1.bf16.msra.mxu0 %v6414_v48  ;;  %4578 = vmatpush3.bf16.msra.mxu1 %v6021_v50  ;;  %v6434_v50 = vld [vmem:[#allocation9 + $0x12c] ss:$28 sps:$4 sm:$0xff]  }
 0x34f   :  { %1837 = vmatprep.subr.bf16.mxu0 %v6418_v9  ;;  %4579 = vmatprep.subr.bf16.mxu1 %v7635_v30 }
 0x352   :  { %1838 = vmatpush1.bf16.msra.mxu0 %v6422_v3  ;;  %4580 = vmatpush3.bf16.msra.mxu1 %v6028_v52  ;;  %v6442_v52 = vld [vmem:[#allocation9 + $0x164] ss:$28 sps:$4 sm:$0xff]  }
 0x353   :  { %1839 = vmatprep.subr.bf16.mxu0 %v6426_v49  ;;  %4581 = vmatprep.subr.bf16.mxu1 %v7635_v30 }
 0x356   :  { %1840 = vmatpush1.bf16.msra.mxu0 %v6430_v15  ;;  %4582 = vmatpush3.bf16.msra.mxu1 %v6035_v54  ;;  %v6450_v54 = vld [vmem:[#allocation9 + $0x19c] ss:$28 sps:$4 sm:$0xff]  }
 0x357   :  { %1841 = vmatprep.subr.bf16.mxu0 %v6434_v50  ;;  %4583 = vmatprep.subr.bf16.mxu1 %v7635_v30 }
 0x35a   :  { %1842 = vmatpush1.bf16.msra.mxu0 %v6438_v51  ;;  %4584 = vmatpush3.bf16.msra.mxu1 %v6045_v56  ;;  %v6459_v56 = vld [vmem:[#allocation9 + $0xc] ss:$28 sps:$4 sm:$0xff]  }
 0x35b   :  { %1843 = vmatprep.subr.bf16.mxu0 %v6442_v52  ;;  %4585 = vmatprep.subr.bf16.mxu1 %v7635_v30 }
 0x35e   :  { %1844 = vmatpush1.bf16.msra.mxu0 %v6446_v61  ;;  %4586 = vmatpush3.bf16.msra.mxu1 %v6055_v58  ;;  %v6463_v58 = vld [vmem:[#allocation9 + $0x8] ss:$28 sps:$4 sm:$0xff]  }
 0x35f   :  { %1845 = vmatprep.subr.bf16.mxu0 %v6450_v54  ;;  %4587 = vmatprep.subr.bf16.mxu1 %v7635_v30 }
 0x362   :  { %1846 = vmatpush1.bf16.msra.mxu0 %v6454_v0  ;;  %4588 = vmatpush3.bf16.msra.mxu1 %v6060_v60  ;;  %v6473_v60 = vld [vmem:[#allocation9 + $0x40] ss:$28 sps:$4 sm:$0xff]  }
 0x363   :  { %2003 = vmatprep.subr.bf16.mxu0 %v6281_v10  ;;  %2044 = vmatprep.subr.bf16.mxu1 %v6459_v56 }
 0x365   :  { %1864 = vmatmul.mubr.bf16.vlgmr.msra.gmra.mrb[40].mxu0 %v1735_v2  ;;  %4590 = vmatmul.mubr.bf16.vlgmr.msra.gmra.mrb[80].mxu1 %v1735_v2  ;;  %v7666_v2 = vld [vmem:[#allocation52_spill] sm:$0xff] }
 0x366   :  { %2004 = vmatpush1.bf16.msra.mxu0 %v6285_v11  ;;  %2045 = vmatpush1.bf16.msra.mxu1 %v6463_v58  ;;  %v623_v4 = vadd.f32 %v7666_v2, %v7646_v38 }
 0x367   :  { %2005 = vmatprep.subr.bf16.mxu0 %v6289_v13  ;;  %2046 = vmatprep.subr.bf16.mxu1 %v6467_v37 }
 0x368   :  { %2035 = vmatprep.mubr.bf16.mxu0 %v7636_v24  ;;  %2076 = vmatprep.mubr.bf16.mxu1 %v7636_v24 }
 0x36a   :  { %2006 = vmatpush1.bf16.msra.mxu0 %v6295_v14  ;;  %2047 = vmatpush1.bf16.msra.mxu1 %v6473_v60 }
 0x36b   :  { %2007 = vmatprep.subr.bf16.mxu0 %v6299_v16  ;;  %2048 = vmatprep.subr.bf16.mxu1 %v6477_v35 }
 0x36e   :  { %2008 = vmatpush1.bf16.msra.mxu0 %v6303_v17  ;;  %2049 = vmatpush1.bf16.msra.mxu1 %v6481_v34 }
 0x36f   :  { %2009 = vmatprep.subr.bf16.mxu0 %v6307_v19  ;;  %2050 = vmatprep.subr.bf16.mxu1 %v6485_v5 }
 0x372   :  { %2010 = vmatpush1.bf16.msra.mxu0 %v6311_v20  ;;  %2051 = vmatpush1.bf16.msra.mxu1 %v6489_v18 }
 0x373   :  { %2011 = vmatprep.subr.bf16.mxu0 %v6315_v22  ;;  %2052 = vmatprep.subr.bf16.mxu1 %v6493_v40 }
 0x376   :  { %2012 = vmatpush1.bf16.msra.mxu0 %v6319_v23  ;;  %2053 = vmatpush1.bf16.msra.mxu1 %v6497_v42 }
 0x377   :  { %2013 = vmatprep.subr.bf16.mxu0 %v6323_v25  ;;  %2054 = vmatprep.subr.bf16.mxu1 %v6501_v39 }
 0x37a   :  { %2014 = vmatpush1.bf16.msra.mxu0 %v6327_v26  ;;  %2055 = vmatpush1.bf16.msra.mxu1 %v6505_v43 }
 0x37b   :  { %2015 = vmatprep.subr.bf16.mxu0 %v6331_v28  ;;  %2056 = vmatprep.subr.bf16.mxu1 %v6509_v12 }
 0x37e   :  { %2016 = vmatpush1.bf16.msra.mxu0 %v6335_v29  ;;  %2057 = vmatpush1.bf16.msra.mxu1 %v6513_v27  ;;  %v7668_v29 = vld [vmem:[#allocation26_spill] sm:$0xff] }
 0x37f   :  { %2017 = vmatprep.subr.bf16.mxu0 %v6339_v31  ;;  %2058 = vmatprep.subr.bf16.mxu1 %v6517_v45 }
 0x382   :  { %2018 = vmatpush1.bf16.msra.mxu0 %v6343_v32  ;;  %2059 = vmatpush1.bf16.msra.mxu1 %v6521_v46 }
 0x383   :  { %2085 = vmatprep.subr.bf16.mxu0 %v6347_v33  ;;  %4593 = vmatprep.subr.bf16.mxu1 %v7635_v30 }
 0x418   :  { %v1783_v6 = vpop.f32.mrb[36].mxu0  ;;  %v1824_v1 = vpop.f32.mrb[76].mxu1 }
 0x419   :  { %v1912_v45 = vadd.f32 %v1783_v6, %v7667_v62  ;;  %v6531_v31 = vadd.f32 %v1824_v1, %v621_v8  ;;  %v1785_v32 = vpop.f32.mrb[37].mxu0  ;;  %v1826_v27 = vpop.f32.mrb[77].mxu1 }
 0x41a   :  { %v1913_v46 = vadd.f32 %v1785_v32, %v7668_v29  ;;  %v1915_v12 = vadd.f32 %v1826_v27, %v623_v4  ;;  %v1787_v33 = vpop.f32.mrb[38].mxu0  ;;  %v1828_v28 = vpop.f32.mrb[78].mxu1  ;;  %v7669_v32 = vld [vmem:[#allocation23_spill] sm:$0xff]  ;;  %v7671_v27 = vld [vmem:[#allocation25_spill] sm:$0xff] }
 0x41b   :  { %v4302_v43 = vmul.f32 -1.442695, %v1912_v45  ;;  %v1788_v26 = vpop.f32.mrb[39].mxu0  ;;  %v1829_v39 = vpop.f32.mrb[79].mxu1  ;;  %v702_v28 = vadd.f32 %v7669_v32, %v7651_v41  ;;  %v704_v45 = vadd.f32 %v7671_v27, %v7654_v63 }
 0x41c   :  { %v4303_v47 = vmul.f32 -1.442695, %v1913_v46  ;;  %v7670_v26 = vld [vmem:[#allocation66_spill] sm:$0xff] }
 0x41d   :  { %5069 = vpow2.f32 %v4302_v43  ;;  %v781_v33 = vadd.f32 %v7670_v26, %v6233_v55  ;;  %v1969_v43 = vpop.permute.xlu1 %1968 }
 0x41e   :  { %5071 = vpow2.f32 %v4303_v47 }
 0x41f   :  { %5073 = vtanh.f32 %v1915_v12 }
 0x427   :  { %v5070_v2 = vpop.eup %5069 }
 0x428   :  { %v1922_v38 = vadd.f32 1.0, %v5070_v2  ;;  %v5072_v36 = vpop.eup %5071 }
 0x429   :  { %v1928_v62 = vadd.f32 1.0, %v5072_v36  ;;  %v5074_v1 = vpop.eup %5073 }
 0x42a   :  { %5075 = vrcp.f32 %v1922_v38 }
 0x42b   :  { %5077 = vrcp.f32 %v1928_v62 }
 0x434   :  { %v5076_v8 = vpop.eup %5075 }
 0x435   :  { %v1959_v6 = vmul.f32 %v5076_v8, %v5074_v1  ;;  %v5078_v29 = vpop.eup %5077 }
 0x436   :  { %v1958_v39 = vmul.f32 %v5078_v29, %v6391_v44  ;;  %v6541_v29 = vpop.permute.xlu1 %2222 }
 0x438   :  { %v1865_v12 = vpop.f32.mrb[40].mxu0  ;;  %v1906_v38 = vpop.f32.mrb[80].mxu1  ;;  %v1960_v36 = vadd.f32 %v1959_v6, %v1958_v39 }
 0x439   :  { %v1916_v46 = vadd.f32 %v1865_v12, %v702_v28  ;;  %v1918_v4 = vadd.f32 %v1906_v38, %v781_v33  ;;  %v1867_v47 = vpop.f32.mrb[41].mxu0  ;;  %v4591_v2 = vpop.f32.mrb[81].mxu1 }
 0x43a   :  { %v1917_v62 = vadd.f32 %v1867_v47, %v704_v45  ;;  %v1869_v8 = vpop.f32.mrb[42].mxu0  ;;  %v1909_v25 = vpop.f32.mrb[82].mxu1 }
 0x43b   :  { %v4305_v32 = vmul.f32 -1.442695, %v1916_v46  ;;  %v1951_v41 = vmin.f32 %v1918_v4, 20.0  ;;  %v1870_v42 = vpop.f32.mrb[43].mxu0  ;;  %v4592_v26 = vpop.f32.mrb[83].mxu1  ;;  %vm1950_vm3 = vcmp.gt.f32.partialorder %v1918_v4, 20.0 }
 0x43c   :  { %v4306_v55 = vmul.f32 -1.442695, %v1917_v62  ;;  %v6543_v6 = vpop.permute.xlu1 %2730  ;;  %v4304_v8 = vmul.f32 -1.442695, %v6531_v31 }
 0x43d   :  { %5079 = vpow2.f32 %v4305_v32  ;;  %v1952_v44 = vmul.f32 1.442695, %v1951_v41  ;;  %7672 = vst [vmem:[#allocation17_spill] sm:$0xff] %v6543_v6 }
 0x43e   :  { %5081 = vpow2.f32 %v4306_v55 }
 0x43f   :  { %5083 = vpow2.f32 %v1952_v44 }
 0x440   :  { %v6545_v42 = vpop.permute.xlu1 %3238 }
 0x441   :  { %7673 = vst [vmem:[#allocation18_spill] sm:$0xff] %v6545_v42 }
 0x444   :  { %v6547_v12 = vpop.permute.xlu1 %3492 }
 0x445   :  { %7674 = vst [vmem:[#allocation51_spill] sm:$0xff] %v6547_v12 }
 0x447   :  { %v5080_v27 = vpop.eup %5079 }
 0x448   :  { %v5082_v28 = vpop.eup %5081  ;;  %v1941_v33 = vadd.f32 1.0, %v5080_v27  ;;  %v1980_v26 = vpop.permute.xlu1 %1979 }
 0x449   :  { %v5084_v39 = vpop.eup %5083  ;;  %v1947_v45 = vadd.f32 1.0, %v5082_v28 }
 0x44a   :  { %5085 = vrcp.f32 %v1941_v33  ;;  %v1954_v25 = vadd.f32 1.0, %v5084_v39 }
 0x44b   :  { %5087 = vrcp.f32 %v1947_v45 }
 0x44c   :  { %5089 = vlog2.f32 %v1954_v25 }
 0x44d   :  { %5091 = vpow2.f32 %v4304_v8 }
 0x454   :  { %v5086_v41 = vpop.eup %5085 }
 0x455   :  { %v5088_v55 = vpop.eup %5087  ;;  %v1962_v38 = vmul.f32 %v5086_v41, %v5074_v1 }
 0x456   :  { %v5090_v46 = vpop.eup %5089  ;;  %v1961_v47 = vmul.f32 %v5088_v55, %v6385_v57 }
 0x457   :  { %v1956_v2 = vmul.f32 0.6931472, %v5090_v46  ;;  %v5092_v1 = vpop.eup %5091 }
 0x458   :  { %v6550_v62 = vadd.f32 %v1962_v38, %v1961_v47  ;;  %v1934_v25 = vadd.f32 1.0, %v5092_v1  ;;  %v6593_v1 = vld [vmem:[#allocation9 + $0x130] ss:$28 sps:$4 sm:$0xff]  }
 0x459   :  { %v1957_v32 = vsel %vm1950_vm3, %v1918_v4, %v1956_v2 }
 0x45a   :  { %v1965_v44 = vsub.f32 0.0, %v1957_v32  ;;  %v1964_v45 = vsub.f32 %v1960_v36, %v6550_v62 }
 0x45c   :  { %v1971_v27 = vmul.f32 %v1969_v43, %v1965_v44  ;;  %v1982_v28 = vmul.f32 %v1980_v26, %v1965_v44  ;;  %v6560_v44 = vld [vmem:[#allocation9 + $0x18] ss:$28 sps:$4 sm:$0xff]  }
 0x45e   :  { %v1972_v33 = vmul.f32 1.442695, %v1971_v27  ;;  %v1983_v39 = vmul.f32 1.442695, %v1982_v28  ;;  %v6569_v27 = vld [vmem:[#allocation9 + $0x50] ss:$28 sps:$4 sm:$0xff]  }
 0x45f   :  { %v6575_v28 = vld [vmem:[#allocation9 + $0x88] ss:$28 sps:$4 sm:$0xff]  }
 0x460   :  { %5093 = vpow2.f32 %v1972_v33  ;;  %v6581_v33 = vld [vmem:[#allocation9 + $0xc0] ss:$28 sps:$4 sm:$0xff]  }
 0x461   :  { %5095 = vpow2.f32 %v1983_v39  ;;  %v6587_v39 = vld [vmem:[#allocation9 + $0xf8] ss:$28 sps:$4 sm:$0xff]  }
 0x462   :  { %5097 = vrcp.f32 %v1934_v25  ;;  %v7684_v25 = vld [vmem:[#allocation81_spill] sm:$0xff] }
 0x46a   :  { %v5094_v57 = vpop.eup %5093 }
 0x46b   :  { %v5096_v41 = vpop.eup %5095  ;;  %v1974_v55 = vmul.f32 %v5094_v57, %v1964_v45  ;;  %v6605_v57 = vld [vmem:[#allocation9 + $0x1a0] ss:$28 sps:$4 sm:$0xff]  }
 0x46c   :  { %v1985_v38 = vmul.f32 %v5096_v41, %v1964_v45  ;;  %v5098_v4 = vpop.eup %5097  ;;  %v6599_v45 = vld [vmem:[#allocation9 + $0x168] ss:$28 sps:$4 sm:$0xff]   ;;  %v7686_v41 = vld [vmem:[#allocation82_spill] sm:$0xff] }
 0x46d   :  { %v6555_v31 = vadd.f32 %v1974_v55, %v6550_v62  ;;  %v7687_v55 = vld [vmem:[#allocation21_spill] sm:$0xff] }
 0x46e   :  { %v1986_v43 = vadd.f32 %v1985_v38, %v6550_v62  ;;  %v7688_v38 = vld [vmem:[#allocation83_spill] sm:$0xff] }
 0x46f   :  { %5099 = vtanh.f32 %v6555_v31 }
 0x470   :  { %5101 = vtanh.f32 %v1986_v43  ;;  %v7689_v43 = vld [vmem:[#allocation72_spill] sm:$0xff] }
 0x479   :  { %v5100_v46 = vpop.eup %5099 }
 0x47a   :  { %v5102_v47 = vpop.eup %5101  ;;  %v1977_v2 = vmul.f32 %v5100_v46, %v5098_v4 }
 0x47b   :  { %v1988_v8 = vmul.f32 %v5102_v47, %v5098_v4  ;;  %v7690_v4 = vld [vmem:[#allocation53_spill] sm:$0xff] }
 0x47c   :  { %v1989_v36 = vpack.c.bf16 %v1977_v2, %v1977_v2  ;;  %v625_v46 = vadd.f32 %v7690_v4, %v7689_v43  ;;  %v7691_v47 = vld [vmem:[#allocation73_spill] sm:$0xff]  ;;  %v7692_v2 = vld [vmem:[#allocation54_spill] sm:$0xff] }
 0x47d   :  { %v1991_v32 = vpack.c.bf16 %v1988_v8, %v1988_v8  ;;  %v627_v8 = vadd.f32 %v7692_v2, %v7691_v47 }
 0x47e   :  { %1990 = vst [vmem:[#allocation3 + $0x8] sm:$0xf] %v1989_v36  ;;  %2036 = vmatmul.mubr.bf16.vlgmr.msra.gmra.mrb[44].mxu0 %v1989_v36  ;;  %2077 = vmatmul.mubr.bf16.vlgmr.msra.gmra.mrb[84].mxu1 %v1989_v36 }
 0x47f   :  { %v1993_v26 = vrot.slane %v1991_v32, 4  ;;  %2086 = vmatpush1.bf16.msra.mxu0 %v6395_v7  ;;  %4594 = vmatpush3.bf16.msra.mxu1 %v6560_v44 }
 0x480   :  { %2087 = vmatprep.subr.bf16.mxu0 %v6399_v21  ;;  %4595 = vmatprep.subr.bf16.mxu1 %v7635_v30 }
 0x481   :  { %1995 = vst [vmem:[#allocation3 + $0x28] sm:$0xf0] %v1993_v26  ;;  %2117 = vmatprep.mubr.bf16.mxu0 %v7636_v24  ;;  %4609 = vmatprep.mubr.msk.bf16.mxu1 %vm5686_vm0, %v7635_v30  ;;  %v7693_v26 = vld [vmem:[#allocation28_spill] sm:$0xff] }
 0x483   :  { %2088 = vmatpush1.bf16.msra.mxu0 %v6406_v53  ;;  %4596 = vmatpush3.bf16.msra.mxu1 %v6569_v27 }
 0x484   :  { %2089 = vmatprep.subr.bf16.mxu0 %v6410_v59  ;;  %4597 = vmatprep.subr.bf16.mxu1 %v7635_v30 }
 0x487   :  { %2090 = vmatpush1.bf16.msra.mxu0 %v6414_v48  ;;  %4598 = vmatpush3.bf16.msra.mxu1 %v6575_v28 }
 0x488   :  { %2091 = vmatprep.subr.bf16.mxu0 %v6418_v9  ;;  %4599 = vmatprep.subr.bf16.mxu1 %v7635_v30 }
 0x48b   :  { %2092 = vmatpush1.bf16.msra.mxu0 %v6422_v3  ;;  %4600 = vmatpush3.bf16.msra.mxu1 %v6581_v33 }
 0x48c   :  { %2093 = vmatprep.subr.bf16.mxu0 %v6426_v49  ;;  %4601 = vmatprep.subr.bf16.mxu1 %v7635_v30 }
 0x48f   :  { %2094 = vmatpush1.bf16.msra.mxu0 %v6430_v15  ;;  %4602 = vmatpush3.bf16.msra.mxu1 %v6587_v39 }
 0x490   :  { %2095 = vmatprep.subr.bf16.mxu0 %v6434_v50  ;;  %4603 = vmatprep.subr.bf16.mxu1 %v7635_v30 }
 0x493   :  { %2096 = vmatpush1.bf16.msra.mxu0 %v6438_v51  ;;  %4604 = vmatpush3.bf16.msra.mxu1 %v6593_v1 }
 0x494   :  { %2097 = vmatprep.subr.bf16.mxu0 %v6442_v52  ;;  %4605 = vmatprep.subr.bf16.mxu1 %v7635_v30 }
 0x497   :  { %2098 = vmatpush1.bf16.msra.mxu0 %v6446_v61  ;;  %4606 = vmatpush3.bf16.msra.mxu1 %v6599_v45 }
 0x498   :  { %2099 = vmatprep.subr.bf16.mxu0 %v6450_v54  ;;  %4607 = vmatprep.subr.bf16.mxu1 %v7635_v30 }
 0x49b   :  { %2100 = vmatpush1.bf16.msra.mxu0 %v6454_v0  ;;  %4608 = vmatpush3.bf16.msra.mxu1 %v6605_v57 }
 0x49c   :  { %2257 = vmatprep.subr.bf16.mxu0 %v6281_v10  ;;  %2298 = vmatprep.subr.bf16.mxu1 %v6459_v56  ;;  %v7675_v10 = vld [vmem:[#allocation49_spill] sm:$0xff] }
 0x49e   :  { %2118 = vmatmul.mubr.bf16.vlgmr.msra.gmra.mrb[48].mxu0 %v1989_v36  ;;  %4610 = vmatmul.mubr.bf16.vlgmr.msra.gmra.mrb[88].mxu1 %v1989_v36 }
 0x49f   :  { %2258 = vmatpush1.bf16.msra.mxu0 %v6285_v11  ;;  %2299 = vmatpush1.bf16.msra.mxu1 %v6463_v58  ;;  %v7676_v11 = vld [vmem:[#allocation77_spill] sm:$0xff] }
 0x4a0   :  { %2259 = vmatprep.subr.bf16.mxu0 %v6289_v13  ;;  %2300 = vmatprep.subr.bf16.mxu1 %v6467_v37  ;;  %v7677_v13 = vld [vmem:[#allocation50_spill] sm:$0xff] }
 0x4a1   :  { %2289 = vmatprep.mubr.bf16.mxu0 %v7636_v24  ;;  %2330 = vmatprep.mubr.bf16.mxu1 %v7636_v24 }
 0x4a3   :  { %2260 = vmatpush1.bf16.msra.mxu0 %v6295_v14  ;;  %2301 = vmatpush1.bf16.msra.mxu1 %v6473_v60  ;;  %v7678_v14 = vld [vmem:[#allocation78_spill] sm:$0xff] }
 0x4a4   :  { %2261 = vmatprep.subr.bf16.mxu0 %v6299_v16  ;;  %2302 = vmatprep.subr.bf16.mxu1 %v6477_v35  ;;  %v7679_v16 = vld [vmem:[#allocation20_spill] sm:$0xff] }
 0x4a7   :  { %2262 = vmatpush1.bf16.msra.mxu0 %v6303_v17  ;;  %2303 = vmatpush1.bf16.msra.mxu1 %v6481_v34  ;;  %v7680_v17 = vld [vmem:[#allocation79_spill] sm:$0xff] }
 0x4a8   :  { %2263 = vmatprep.subr.bf16.mxu0 %v6307_v19  ;;  %2304 = vmatprep.subr.bf16.mxu1 %v6485_v5  ;;  %v7681_v19 = vld [vmem:[#allocation22_spill] sm:$0xff] }
 0x4ab   :  { %2264 = vmatpush1.bf16.msra.mxu0 %v6311_v20  ;;  %2305 = vmatpush1.bf16.msra.mxu1 %v6489_v18  ;;  %v7682_v20 = vld [vmem:[#allocation80_spill] sm:$0xff] }
 0x4ac   :  { %2265 = vmatprep.subr.bf16.mxu0 %v6315_v22  ;;  %2306 = vmatprep.subr.bf16.mxu1 %v6493_v40  ;;  %v7683_v22 = vld [vmem:[#allocation19_spill] sm:$0xff] }
 0x4af   :  { %2266 = vmatpush1.bf16.msra.mxu0 %v6319_v23  ;;  %2307 = vmatpush1.bf16.msra.mxu1 %v7675_v10  ;;  %v7685_v23 = vld [vmem:[#allocation65_spill] sm:$0xff] }
 0x4b0   :  { %2267 = vmatprep.subr.bf16.mxu0 %v7676_v11  ;;  %2308 = vmatprep.subr.bf16.mxu1 %v7677_v13 }
 0x4b3   :  { %2268 = vmatpush1.bf16.msra.mxu0 %v7678_v14  ;;  %2309 = vmatpush1.bf16.msra.mxu1 %v7679_v16 }
 0x4b4   :  { %2269 = vmatprep.subr.bf16.mxu0 %v7680_v17  ;;  %2310 = vmatprep.subr.bf16.mxu1 %v7681_v19 }
 0x4b7   :  { %2270 = vmatpush1.bf16.msra.mxu0 %v7682_v20  ;;  %2311 = vmatpush1.bf16.msra.mxu1 %v7683_v22 }
 0x4b8   :  { %2271 = vmatprep.subr.bf16.mxu0 %v7684_v25  ;;  %2312 = vmatprep.subr.bf16.mxu1 %v7685_v23  ;;  %v7694_v25 = vld [vmem:[#allocation30_spill] sm:$0xff] }
 0x4bb   :  { %2272 = vmatpush1.bf16.msra.mxu0 %v7686_v41  ;;  %2313 = vmatpush1.bf16.msra.mxu1 %v7687_v55 }
 0x4bc   :  { %2339 = vmatprep.subr.bf16.mxu0 %v7688_v38  ;;  %4613 = vmatprep.subr.bf16.mxu1 %v7635_v30 }
 0x551   :  { %v2037_v36 = vpop.f32.mrb[44].mxu0  ;;  %v2078_v32 = vpop.f32.mrb[84].mxu1 }
 0x552   :  { %v2166_v11 = vadd.f32 %v2037_v36, %v7693_v26  ;;  %v6649_v14 = vadd.f32 %v2078_v32, %v625_v46  ;;  %v2039_v17 = vpop.f32.mrb[45].mxu0  ;;  %v2080_v20 = vpop.f32.mrb[85].mxu1 }
 0x553   :  { %v2167_v41 = vadd.f32 %v2039_v17, %v7694_v25  ;;  %v2169_v12 = vadd.f32 %v2080_v20, %v627_v8  ;;  %v2041_v38 = vpop.f32.mrb[46].mxu0  ;;  %v2082_v42 = vpop.f32.mrb[86].mxu1  ;;  %v7695_v8 = vld [vmem:[#allocation61_spill] sm:$0xff]  ;;  %v7696_v20 = vld [vmem:[#allocation27_spill] sm:$0xff] }
 0x554   :  { %v4307_v6 = vmul.f32 -1.442695, %v2166_v11  ;;  %v2042_v55 = vpop.f32.mrb[47].mxu0  ;;  %v2083_v23 = vpop.f32.mrb[87].mxu1  ;;  %v706_v42 = vadd.f32 %v7696_v20, %v7695_v8  ;;  %v7697_v11 = vld [vmem:[#allocation74_spill] sm:$0xff]  ;;  %v7699_v25 = vld [vmem:[#allocation29_spill] sm:$0xff] }
 0x555   :  { %v4308_v4 = vmul.f32 -1.442695, %v2167_v41  ;;  %v7698_v55 = vld [vmem:[#allocation67_spill] sm:$0xff]  ;;  %v708_v41 = vadd.f32 %v7699_v25, %v7654_v63 }
 0x556   :  { %5103 = vpow2.f32 %v4307_v6  ;;  %v784_v23 = vadd.f32 %v7698_v55, %v7697_v11 }
 0x557   :  { %5105 = vpow2.f32 %v4308_v4 }
 0x558   :  { %5107 = vtanh.f32 %v2169_v12 }
 0x560   :  { %v5104_v2 = vpop.eup %5103 }
 0x561   :  { %v2176_v47 = vadd.f32 1.0, %v5104_v2  ;;  %v5106_v43 = vpop.eup %5105 }
 0x562   :  { %v2182_v46 = vadd.f32 1.0, %v5106_v43  ;;  %v5108_v36 = vpop.eup %5107 }
 0x563   :  { %5109 = vrcp.f32 %v2176_v47 }
 0x564   :  { %5111 = vrcp.f32 %v2182_v46 }
 0x56d   :  { %v5110_v32 = vpop.eup %5109 }
 0x56e   :  { %v2213_v26 = vmul.f32 %v5110_v32, %v5108_v36  ;;  %v5112_v17 = vpop.eup %5111 }
 0x56f   :  { %v2212_v6 = vmul.f32 %v5112_v17, %v6555_v31 }
 0x571   :  { %v2119_v38 = vpop.f32.mrb[48].mxu0  ;;  %v2160_v12 = vpop.f32.mrb[88].mxu1  ;;  %v2214_v47 = vadd.f32 %v2213_v26, %v2212_v6 }
 0x572   :  { %v2170_v43 = vadd.f32 %v2119_v38, %v706_v42  ;;  %v2172_v4 = vadd.f32 %v2160_v12, %v784_v23  ;;  %v2121_v2 = vpop.f32.mrb[49].mxu0  ;;  %v4611_v46 = vpop.f32.mrb[89].mxu1  ;;  %v4309_v38 = vmul.f32 -1.442695, %v6649_v14 }
 0x573   :  { %v2171_v32 = vadd.f32 %v2121_v2, %v708_v41  ;;  %v2123_v22 = vpop.f32.mrb[50].mxu0  ;;  %v2163_v19 = vpop.f32.mrb[90].mxu1 }
 0x574   :  { %v4310_v16 = vmul.f32 -1.442695, %v2170_v43  ;;  %v2205_v20 = vmin.f32 %v2172_v4, 20.0  ;;  %v2124_v8 = vpop.f32.mrb[51].mxu0  ;;  %v4612_v13 = vpop.f32.mrb[91].mxu1  ;;  %vm2204_vm4 = vcmp.gt.f32.partialorder %v2172_v4, 20.0 }
 0x575   :  { %v4311_v55 = vmul.f32 -1.442695, %v2171_v32  ;;  %v2234_v12 = vpop.permute.xlu0 %2233 }
 0x576   :  { %5113 = vpow2.f32 %v4310_v16  ;;  %v2206_v31 = vmul.f32 1.442695, %v2205_v20 }
 0x577   :  { %5115 = vpow2.f32 %v4311_v55 }
 0x578   :  { %5117 = vpow2.f32 %v2206_v31 }
 0x580   :  { %v5114_v17 = vpop.eup %5113 }
 0x581   :  { %v5116_v25 = vpop.eup %5115  ;;  %v2195_v63 = vadd.f32 1.0, %v5114_v17 }
 0x582   :  { %v5118_v26 = vpop.eup %5117  ;;  %v2201_v42 = vadd.f32 1.0, %v5116_v25 }
 0x583   :  { %5119 = vrcp.f32 %v2195_v63  ;;  %v2208_v23 = vadd.f32 1.0, %v5118_v26 }
 0x584   :  { %5121 = vrcp.f32 %v2201_v42 }
 0x585   :  { %5123 = vlog2.f32 %v2208_v23 }
 0x586   :  { %5125 = vpow2.f32 %v4309_v38  ;;  %v7716_v38 = vld [vmem:[#allocation56_spill] sm:$0xff] }
 0x58d   :  { %v5120_v22 = vpop.eup %5119 }
 0x58e   :  { %v5122_v19 = vpop.eup %5121  ;;  %v2216_v6 = vmul.f32 %v5120_v22, %v5108_v36 }
 0x58f   :  { %v5124_v41 = vpop.eup %5123  ;;  %v2215_v13 = vmul.f32 %v5122_v19, %v6550_v62 }
 0x590   :  { %v2210_v8 = vmul.f32 0.6931472, %v5124_v41  ;;  %v5126_v36 = vpop.eup %5125 }
 0x591   :  { %v6660_v16 = vadd.f32 %v2216_v6, %v2215_v13  ;;  %v2188_v31 = vadd.f32 1.0, %v5126_v36 }
 0x592   :  { %v2211_v43 = vsel %vm2204_vm4, %v2172_v4, %v2210_v8  ;;  %v7715_v8 = vld [vmem:[#allocation73_spill] sm:$0xff] }
 0x593   :  { %v2219_v2 = vsub.f32 0.0, %v2211_v43  ;;  %v2218_v62 = vsub.f32 %v2214_v47, %v6660_v16 }
 0x595   :  { %v2225_v63 = vmul.f32 %v6541_v29, %v2219_v2  ;;  %v2236_v46 = vmul.f32 %v2234_v12, %v2219_v2  ;;  %v633_v12 = vadd.f32 %v7716_v38, %v7715_v8  ;;  %v7722_v38 = vld [vmem:[#allocation63_spill] sm:$0xff] }
 0x597   :  { %v2226_v32 = vmul.f32 1.442695, %v2225_v63  ;;  %v2237_v20 = vmul.f32 1.442695, %v2236_v46  ;;  %v7717_v63 = vld [vmem:[#allocation32_spill] sm:$0xff] }
 0x599   :  { %5127 = vpow2.f32 %v2226_v32 }
 0x59a   :  { %5129 = vpow2.f32 %v2237_v20 }
 0x59b   :  { %5131 = vrcp.f32 %v2188_v31 }
 0x5a3   :  { %v5128_v55 = vpop.eup %5127 }
 0x5a4   :  { %v5130_v17 = vpop.eup %5129  ;;  %v2228_v25 = vmul.f32 %v5128_v55, %v2218_v62 }
 0x5a5   :  { %v2239_v26 = vmul.f32 %v5130_v17, %v2218_v62  ;;  %v5132_v4 = vpop.eup %5131  ;;  %v7718_v62 = vld [vmem:[#allocation34_spill] sm:$0xff] }
 0x5a6   :  { %v6666_v14 = vadd.f32 %v2228_v25, %v6660_v16 }
 0x5a7   :  { %v2240_v29 = vadd.f32 %v2239_v26, %v6660_v16 }
 0x5a8   :  { %5133 = vtanh.f32 %v6666_v14 }
 0x5a9   :  { %5135 = vtanh.f32 %v2240_v29 }
 0x5b2   :  { %v5134_v42 = vpop.eup %5133 }
 0x5b3   :  { %v5136_v23 = vpop.eup %5135  ;;  %v2231_v22 = vmul.f32 %v5134_v42, %v5132_v4 }
 0x5b4   :  { %v2242_v19 = vmul.f32 %v5136_v23, %v5132_v4 }
 0x5b5   :  { %v2243_v47 = vpack.c.bf16 %v2231_v22, %v2231_v22 }
 0x5b6   :  { %v2248_v6 = vpack.c.bf16 %v2242_v19, %v2242_v19 }
 0x5b7   :  { %v2245_v41 = vrot.slane %v2243_v47, 4  ;;  %2290 = vmatmul.mubr.bf16.vlgmr.msra.gmra.mrb[52].mxu0 %v2243_v47  ;;  %2331 = vmatmul.mubr.bf16.vlgmr.msra.gmra.mrb[92].mxu1 %v2243_v47 }
 0x5b8   :  { %2249 = vst [vmem:[#allocation3 + $0x30] sm:$0xf] %v2248_v6  ;;  %2340 = vmatpush1.bf16.msra.mxu0 %v6395_v7  ;;  %4614 = vmatpush3.bf16.msra.mxu1 %v6560_v44  ;;  %v6703_v7 = vld [vmem:[#allocation9 + $0x4] ss:$28 sps:$4 sm:$0xff]  }
 0x5b9   :  { %2247 = vst [vmem:[#allocation3 + $0x8] sm:$0xf0] %v2245_v41  ;;  %2341 = vmatprep.subr.bf16.mxu0 %v6399_v21  ;;  %4615 = vmatprep.subr.bf16.mxu1 %v7635_v30  ;;  %v6707_v21 = vld [vmem:[#allocation9] ss:$28 sps:$4 sm:$0xff]  }
 0x5ba   :  { %2371 = vmatprep.mubr.bf16.mxu0 %v7636_v24  ;;  %4629 = vmatprep.mubr.msk.bf16.mxu1 %vm5686_vm0, %v7635_v30 }
 0x5bc   :  { %2342 = vmatpush1.bf16.msra.mxu0 %v6406_v53  ;;  %4616 = vmatpush3.bf16.msra.mxu1 %v6569_v27  ;;  %v6711_v53 = vld [vmem:[#allocation9 + $0x3c] ss:$28 sps:$4 sm:$0xff]  }
 0x5bd   :  { %2343 = vmatprep.subr.bf16.mxu0 %v6410_v59  ;;  %4617 = vmatprep.subr.bf16.mxu1 %v7635_v30  ;;  %v6717_v59 = vld [vmem:[#allocation9 + $0x38] ss:$28 sps:$4 sm:$0xff]  }
 0x5c0   :  { %2344 = vmatpush1.bf16.msra.mxu0 %v6414_v48  ;;  %4618 = vmatpush3.bf16.msra.mxu1 %v6575_v28  ;;  %v6721_v48 = vld [vmem:[#allocation9 + $0x74] ss:$28 sps:$4 sm:$0xff]  }
 0x5c1   :  { %2345 = vmatprep.subr.bf16.mxu0 %v6418_v9  ;;  %4619 = vmatprep.subr.bf16.mxu1 %v7635_v30  ;;  %v6725_v9 = vld [vmem:[#allocation9 + $0x70] ss:$28 sps:$4 sm:$0xff]  }
 0x5c4   :  { %2346 = vmatpush1.bf16.msra.mxu0 %v6422_v3  ;;  %4620 = vmatpush3.bf16.msra.mxu1 %v6581_v33  ;;  %v6729_v3 = vld [vmem:[#allocation9 + $0xac] ss:$28 sps:$4 sm:$0xff]  }
 0x5c5   :  { %2347 = vmatprep.subr.bf16.mxu0 %v6426_v49  ;;  %4621 = vmatprep.subr.bf16.mxu1 %v7635_v30  ;;  %v6733_v49 = vld [vmem:[#allocation9 + $0xa8] ss:$28 sps:$4 sm:$0xff]  }
 0x5c8   :  { %2348 = vmatpush1.bf16.msra.mxu0 %v6430_v15  ;;  %4622 = vmatpush3.bf16.msra.mxu1 %v6587_v39  ;;  %v6737_v15 = vld [vmem:[#allocation9 + $0xe4] ss:$28 sps:$4 sm:$0xff]  }
 0x5c9   :  { %2349 = vmatprep.subr.bf16.mxu0 %v6434_v50  ;;  %4623 = vmatprep.subr.bf16.mxu1 %v7635_v30  ;;  %v6741_v50 = vld [vmem:[#allocation9 + $0xe0] ss:$28 sps:$4 sm:$0xff]  }
 0x5cc   :  { %2350 = vmatpush1.bf16.msra.mxu0 %v6438_v51  ;;  %4624 = vmatpush3.bf16.msra.mxu1 %v6593_v1  ;;  %v6745_v51 = vld [vmem:[#allocation9 + $0x11c] ss:$28 sps:$4 sm:$0xff]  }
 0x5cd   :  { %2351 = vmatprep.subr.bf16.mxu0 %v6442_v52  ;;  %4625 = vmatprep.subr.bf16.mxu1 %v7635_v30  ;;  %7700 = vst [vmem:[#allocation52_spill] sm:$0xff] %v6745_v51  ;;  %v7701_v52 = vld [vmem:[#allocation50_spill] sm:$0xff] }
 0x5d0   :  { %2352 = vmatpush1.bf16.msra.mxu0 %v6446_v61  ;;  %4626 = vmatpush3.bf16.msra.mxu1 %v6599_v45  ;;  %v6749_v61 = vld [vmem:[#allocation9 + $0x118] ss:$28 sps:$4 sm:$0xff]  }
 0x5d1   :  { %2353 = vmatprep.subr.bf16.mxu0 %v6450_v54  ;;  %4627 = vmatprep.subr.bf16.mxu1 %v7635_v30  ;;  %7702 = vst [vmem:[#allocation24_spill] sm:$0xff] %v6749_v61  ;;  %v7703_v54 = vld [vmem:[#allocation20_spill] sm:$0xff] }
 0x5d4   :  { %2354 = vmatpush1.bf16.msra.mxu0 %v6454_v0  ;;  %4628 = vmatpush3.bf16.msra.mxu1 %v6605_v57  ;;  %v6753_v0 = vld [vmem:[#allocation9 + $0x154] ss:$28 sps:$4 sm:$0xff]  }
 0x5d5   :  { %2511 = vmatprep.subr.bf16.mxu0 %v6703_v7  ;;  %2552 = vmatprep.subr.bf16.mxu1 %v6459_v56  ;;  %7704 = vst [vmem:[#allocation26_spill] sm:$0xff] %v6753_v0  ;;  %v7705_v56 = vld [vmem:[#allocation22_spill] sm:$0xff] }
 0x5d7   :  { %2372 = vmatmul.mubr.bf16.vlgmr.msra.gmra.mrb[56].mxu0 %v2243_v47  ;;  %4630 = vmatmul.mubr.bf16.vlgmr.msra.gmra.mrb[96].mxu1 %v2243_v47 }
 0x5d8   :  { %2512 = vmatpush1.bf16.msra.mxu0 %v6707_v21  ;;  %2553 = vmatpush1.bf16.msra.mxu1 %v6463_v58  ;;  %v6757_v58 = vld [vmem:[#allocation9 + $0x150] ss:$28 sps:$4 sm:$0xff]  }
 0x5d9   :  { %2513 = vmatprep.subr.bf16.mxu0 %v6711_v53  ;;  %2554 = vmatprep.subr.bf16.mxu1 %v6467_v37  ;;  %7706 = vst [vmem:[#allocation23_spill] sm:$0xff] %v6757_v58  ;;  %v7707_v37 = vld [vmem:[#allocation19_spill] sm:$0xff] }
 0x5da   :  { %2543 = vmatprep.mubr.bf16.mxu0 %v7636_v24  ;;  %2584 = vmatprep.mubr.bf16.mxu1 %v7636_v24 }
 0x5dc   :  { %2514 = vmatpush1.bf16.msra.mxu0 %v6717_v59  ;;  %2555 = vmatpush1.bf16.msra.mxu1 %v6473_v60  ;;  %v6761_v60 = vld [vmem:[#allocation9 + $0x18c] ss:$28 sps:$4 sm:$0xff]  }
 0x5dd   :  { %2515 = vmatprep.subr.bf16.mxu0 %v6721_v48  ;;  %2556 = vmatprep.subr.bf16.mxu1 %v6477_v35  ;;  %7708 = vst [vmem:[#allocation66_spill] sm:$0xff] %v6761_v60  ;;  %v7709_v35 = vld [vmem:[#allocation65_spill] sm:$0xff] }
 0x5e0   :  { %2516 = vmatpush1.bf16.msra.mxu0 %v6725_v9  ;;  %2557 = vmatpush1.bf16.msra.mxu1 %v6481_v34  ;;  %v6765_v34 = vld [vmem:[#allocation9 + $0x188] ss:$28 sps:$4 sm:$0xff]  }
 0x5e1   :  { %2517 = vmatprep.subr.bf16.mxu0 %v6729_v3  ;;  %2558 = vmatprep.subr.bf16.mxu1 %v6485_v5  ;;  %7710 = vst [vmem:[#allocation25_spill] sm:$0xff] %v6765_v34  ;;  %v7711_v5 = vld [vmem:[#allocation21_spill] sm:$0xff] }
 0x5e4   :  { %2518 = vmatpush1.bf16.msra.mxu0 %v6733_v49  ;;  %2559 = vmatpush1.bf16.msra.mxu1 %v6489_v18  ;;  %v6769_v18 = vld [vmem:[#allocation9 + $0x14] ss:$28 sps:$4 sm:$0xff]  }
 0x5e5   :  { %2519 = vmatprep.subr.bf16.mxu0 %v6737_v15  ;;  %2560 = vmatprep.subr.bf16.mxu1 %v6493_v40  ;;  %7712 = vst [vmem:[#allocation49_spill] sm:$0xff] %v6769_v18  ;;  %v7713_v40 = vld [vmem:[#allocation72_spill] sm:$0xff] }
 0x5e8   :  { %2520 = vmatpush1.bf16.msra.mxu0 %v6741_v50  ;;  %2561 = vmatpush1.bf16.msra.mxu1 %v7675_v10  ;;  %v7714_v10 = vld [vmem:[#allocation55_spill] sm:$0xff] }
 0x5e9   :  { %2521 = vmatprep.subr.bf16.mxu0 %v6745_v51  ;;  %2562 = vmatprep.subr.bf16.mxu1 %v7701_v52  ;;  %v631_v13 = vadd.f32 %v7714_v10, %v7713_v40 }
 0x5ec   :  { %2522 = vmatpush1.bf16.msra.mxu0 %v6749_v61  ;;  %2563 = vmatpush1.bf16.msra.mxu1 %v7703_v54 }
 0x5ed   :  { %2523 = vmatprep.subr.bf16.mxu0 %v6753_v0  ;;  %2564 = vmatprep.subr.bf16.mxu1 %v7705_v56  ;;  %v7719_v56 = vld [vmem:[#allocation61_spill] sm:$0xff] }
 0x5f0   :  { %2524 = vmatpush1.bf16.msra.mxu0 %v6757_v58  ;;  %2565 = vmatpush1.bf16.msra.mxu1 %v7707_v37  ;;  %v7720_v37 = vld [vmem:[#allocation31_spill] sm:$0xff] }
 0x5f1   :  { %2525 = vmatprep.subr.bf16.mxu0 %v6761_v60  ;;  %2566 = vmatprep.subr.bf16.mxu1 %v7709_v35  ;;  %v712_v35 = vadd.f32 %v7720_v37, %v7719_v56 }
 0x5f4   :  { %2526 = vmatpush1.bf16.msra.mxu0 %v6765_v34  ;;  %2567 = vmatpush1.bf16.msra.mxu1 %v7711_v5  ;;  %v7721_v5 = vld [vmem:[#allocation68_spill] sm:$0xff] }
 0x5f5   :  { %2593 = vmatprep.subr.bf16.mxu0 %v6769_v18  ;;  %4633 = vmatprep.subr.bf16.mxu1 %v7635_v30  ;;  %v789_v10 = vadd.f32 %v7721_v5, %v7697_v11 }
 0x68a   :  { %v2291_v43 = vpop.f32.mrb[52].mxu0  ;;  %v2332_v2 = vpop.f32.mrb[92].mxu1 }
 0x68b   :  { %v2420_v46 = vadd.f32 %v2291_v43, %v7717_v63  ;;  %v6778_v32 = vadd.f32 %v2332_v2, %v631_v13  ;;  %v2293_v20 = vpop.f32.mrb[53].mxu0  ;;  %v2334_v36 = vpop.f32.mrb[93].mxu1 }
 0x68c   :  { %v2421_v55 = vadd.f32 %v2293_v20, %v7718_v62  ;;  %v2423_v31 = vadd.f32 %v2334_v36, %v633_v12  ;;  %v2295_v17 = vpop.f32.mrb[54].mxu0  ;;  %v2336_v25 = vpop.f32.mrb[94].mxu1  ;;  %v7723_v12 = vld [vmem:[#allocation33_spill] sm:$0xff] }
 0x68d   :  { %v4312_v26 = vmul.f32 -1.442695, %v2420_v46  ;;  %v2296_v29 = vpop.f32.mrb[55].mxu0  ;;  %v2337_v4 = vpop.f32.mrb[95].mxu1  ;;  %v714_v43 = vadd.f32 %v7723_v12, %v7722_v38 }
 0x68e   :  { %v4313_v42 = vmul.f32 -1.442695, %v2421_v55 }
 0x68f   :  { %5137 = vpow2.f32 %v4312_v26 }
 0x690   :  { %5139 = vpow2.f32 %v4313_v42 }
 0x691   :  { %5141 = vtanh.f32 %v2423_v31 }
 0x699   :  { %v5138_v23 = vpop.eup %5137 }
 0x69a   :  { %v2430_v22 = vadd.f32 1.0, %v5138_v23  ;;  %v5140_v19 = vpop.eup %5139 }
 0x69b   :  { %v2436_v47 = vadd.f32 1.0, %v5140_v19  ;;  %v5142_v6 = vpop.eup %5141 }
 0x69c   :  { %5143 = vrcp.f32 %v2430_v22 }
 0x69d   :  { %5145 = vrcp.f32 %v2436_v47 }
 0x6a6   :  { %v5144_v41 = vpop.eup %5143 }
 0x6a7   :  { %v2467_v52 = vmul.f32 %v5144_v41, %v5142_v6  ;;  %v5146_v54 = vpop.eup %5145 }
 0x6a8   :  { %v2466_v13 = vmul.f32 %v5146_v54, %v6666_v14 }
 0x6aa   :  { %v2373_v2 = vpop.f32.mrb[56].mxu0  ;;  %v2414_v63 = vpop.f32.mrb[96].mxu1  ;;  %v2468_v46 = vadd.f32 %v2467_v52, %v2466_v13 }
 0x6ab   :  { %v2424_v20 = vadd.f32 %v2373_v2, %v712_v35  ;;  %v2426_v36 = vadd.f32 %v2414_v63, %v789_v10  ;;  %v2375_v62 = vpop.f32.mrb[57].mxu0  ;;  %v4631_v55 = vpop.f32.mrb[97].mxu1  ;;  %v4314_v2 = vmul.f32 -1.442695, %v6778_v32 }
 0x6ac   :  { %v2425_v31 = vadd.f32 %v2375_v62, %v714_v43  ;;  %v2377_v17 = vpop.f32.mrb[58].mxu0  ;;  %v2417_v25 = vpop.f32.mrb[98].mxu1  ;;  %v7724_v55 = vld [vmem:[#allocation75_spill] sm:$0xff] }
 0x6ad   :  { %v4315_v26 = vmul.f32 -1.442695, %v2424_v20  ;;  %v2459_v29 = vmin.f32 %v2426_v36, 20.0  ;;  %v2378_v4 = vpop.f32.mrb[59].mxu0  ;;  %v4632_v42 = vpop.f32.mrb[99].mxu1  ;;  %vm2458_vm5 = vcmp.gt.f32.partialorder %v2426_v36, 20.0 }
 0x6ae   :  { %v4316_v23 = vmul.f32 -1.442695, %v2425_v31  ;;  %v2488_v63 = vpop.permute.xlu1 %2487 }
 0x6af   :  { %5147 = vpow2.f32 %v4315_v26  ;;  %v2460_v14 = vmul.f32 1.442695, %v2459_v29 }
 0x6b0   :  { %5149 = vpow2.f32 %v4316_v23 }
 0x6b1   :  { %5151 = vpow2.f32 %v2460_v14 }
 0x6b9   :  { %v5148_v22 = vpop.eup %5147 }
 0x6ba   :  { %v5150_v19 = vpop.eup %5149  ;;  %v2449_v47 = vadd.f32 1.0, %v5148_v22 }
 0x6bb   :  { %v5152_v41 = vpop.eup %5151  ;;  %v2455_v52 = vadd.f32 1.0, %v5150_v19 }
 0x6bc   :  { %5153 = vrcp.f32 %v2449_v47  ;;  %v2462_v54 = vadd.f32 1.0, %v5152_v41 }
 0x6bd   :  { %5155 = vrcp.f32 %v2455_v52 }
 0x6be   :  { %5157 = vlog2.f32 %v2462_v54 }
 0x6bf   :  { %5159 = vpow2.f32 %v4314_v2  ;;  %v6826_v2 = vld [vmem:[#allocation9 + $0xb8] ss:$28 sps:$4 sm:$0xff]  }
 0x6c6   :  { %v5154_v37 = vpop.eup %5153 }
 0x6c7   :  { %v5156_v35 = vpop.eup %5155  ;;  %v2470_v5 = vmul.f32 %v5154_v37, %v5142_v6 }
 0x6c8   :  { %v5158_v10 = vpop.eup %5157  ;;  %v2469_v13 = vmul.f32 %v5156_v35, %v6660_v16  ;;  %v6799_v35 = vld [vmem:[#allocation9 + $0x10] ss:$28 sps:$4 sm:$0xff]  }
 0x6c9   :  { %v2464_v12 = vmul.f32 0.6931472, %v5158_v10  ;;  %v5160_v6 = vpop.eup %5159  ;;  %v6810_v10 = vld [vmem:[#allocation9 + $0x48] ss:$28 sps:$4 sm:$0xff]  }
 0x6ca   :  { %v6789_v43 = vadd.f32 %v2470_v5, %v2469_v13  ;;  %v2442_v4 = vadd.f32 1.0, %v5160_v6  ;;  %v6803_v5 = vld [vmem:[#allocation9 + $0x4c] ss:$28 sps:$4 sm:$0xff]   ;;  %v6814_v13 = vld [vmem:[#allocation9 + $0x84] ss:$28 sps:$4 sm:$0xff]  }
 0x6cb   :  { %v2465_v20 = vsel %vm2458_vm5, %v2426_v36, %v2464_v12  ;;  %v6822_v12 = vld [vmem:[#allocation9 + $0xbc] ss:$28 sps:$4 sm:$0xff]   ;;  %v6893_v6 = vld [vmem:[#allocation9 + $0xb0] ss:$28 sps:$4 sm:$0xff]  }
 0x6cc   :  { %v2473_v62 = vsub.f32 0.0, %v2465_v20  ;;  %v2472_v16 = vsub.f32 %v2468_v46, %v6789_v43  ;;  %v6842_v20 = vld [vmem:[#allocation9 + $0x128] ss:$28 sps:$4 sm:$0xff]  }
 0x6ce   :  { %v2479_v31 = vmul.f32 %v7724_v55, %v2473_v62  ;;  %v2490_v17 = vmul.f32 %v2488_v63, %v2473_v62  ;;  %v6834_v63 = vld [vmem:[#allocation9 + $0xf0] ss:$28 sps:$4 sm:$0xff]   ;;  %v6850_v62 = vld [vmem:[#allocation9 + $0x160] ss:$28 sps:$4 sm:$0xff]   ;;  %v6858_v55 = vld [vmem:[#allocation9 + $0x198] ss:$28 sps:$4 sm:$0xff]  }
 0x6d0   :  { %v2480_v25 = vmul.f32 1.442695, %v2479_v31  ;;  %v2491_v26 = vmul.f32 1.442695, %v2490_v17  ;;  %v6871_v31 = vld [vmem:[#allocation9 + $0x44] ss:$28 sps:$4 sm:$0xff]  }
 0x6d1   :  { %v6881_v17 = vld [vmem:[#allocation9 + $0x7c] ss:$28 sps:$4 sm:$0xff]  }
 0x6d2   :  { %5161 = vpow2.f32 %v2480_v25  ;;  %v6885_v25 = vld [vmem:[#allocation9 + $0x78] ss:$28 sps:$4 sm:$0xff]  }
 0x6d3   :  { %5163 = vpow2.f32 %v2491_v26  ;;  %v6889_v26 = vld [vmem:[#allocation9 + $0xb4] ss:$28 sps:$4 sm:$0xff]  }
 0x6d4   :  { %5165 = vrcp.f32 %v2442_v4  ;;  %v6905_v4 = vld [vmem:[#allocation9 + $0x124] ss:$28 sps:$4 sm:$0xff]  }
 0x6d5   :  { %7726 = vst [vmem:[#allocation78_spill] sm:$0xff] %v6905_v4 }
 0x6dc   :  { %v5162_v29 = vpop.eup %5161 }
 0x6dd   :  { %v5164_v42 = vpop.eup %5163  ;;  %v2482_v23 = vmul.f32 %v5162_v29, %v2472_v16  ;;  %v6901_v29 = vld [vmem:[#allocation9 + $0xe8] ss:$28 sps:$4 sm:$0xff]  }
 0x6de   :  { %v2493_v14 = vmul.f32 %v5164_v42, %v2472_v16  ;;  %v5166_v22 = vpop.eup %5165  ;;  %v6897_v16 = vld [vmem:[#allocation9 + $0xec] ss:$28 sps:$4 sm:$0xff]   ;;  %7725 = vst [vmem:[#allocation77_spill] sm:$0xff] %v6901_v29  ;;  %v6909_v42 = vld [vmem:[#allocation9 + $0x120] ss:$28 sps:$4 sm:$0xff]  }
 0x6df   :  { %v6795_v32 = vadd.f32 %v2482_v23, %v6789_v43  ;;  %7727 = vst [vmem:[#allocation79_spill] sm:$0xff] %v6909_v42  ;;  %v6913_v23 = vld [vmem:[#allocation9 + $0x15c] ss:$28 sps:$4 sm:$0xff]  }
 0x6e0   :  { %v2494_v36 = vadd.f32 %v2493_v14, %v6789_v43  ;;  %7728 = vst [vmem:[#allocation80_spill] sm:$0xff] %v6913_v23  ;;  %v6917_v14 = vld [vmem:[#allocation9 + $0x158] ss:$28 sps:$4 sm:$0xff]  }
 0x6e1   :  { %5167 = vtanh.f32 %v6795_v32  ;;  %7729 = vst [vmem:[#allocation81_spill] sm:$0xff] %v6917_v14 }
 0x6e2   :  { %5169 = vtanh.f32 %v2494_v36  ;;  %v6921_v36 = vld [vmem:[#allocation9 + $0x194] ss:$28 sps:$4 sm:$0xff]  }
 0x6e3   :  { %7730 = vst [vmem:[#allocation82_spill] sm:$0xff] %v6921_v36 }
 0x6eb   :  { %v5168_v19 = vpop.eup %5167 }
 0x6ec   :  { %v5170_v47 = vpop.eup %5169  ;;  %v2485_v41 = vmul.f32 %v5168_v19, %v5166_v22  ;;  %v7732_v19 = vld [vmem:[#allocation57_spill] sm:$0xff] }
 0x6ed   :  { %v2496_v52 = vmul.f32 %v5170_v47, %v5166_v22  ;;  %v6925_v22 = vld [vmem:[#allocation9 + $0x190] ss:$28 sps:$4 sm:$0xff]   ;;  %v635_v47 = vadd.f32 %v7732_v19, %v7713_v40 }
 0x6ee   :  { %v2497_v46 = vpack.c.bf16 %v2485_v41, %v2485_v41  ;;  %7731 = vst [vmem:[#allocation83_spill] sm:$0xff] %v6925_v22  ;;  %v7733_v41 = vld [vmem:[#allocation58_spill] sm:$0xff] }
 0x6ef   :  { %v2499_v54 = vpack.c.bf16 %v2496_v52, %v2496_v52  ;;  %v637_v52 = vadd.f32 %v7733_v41, %v7715_v8 }
 0x6f0   :  { %2498 = vst [vmem:[#allocation3 + $0x10] sm:$0xf] %v2497_v46  ;;  %2544 = vmatmul.mubr.bf16.vlgmr.msra.gmra.mrb[60].mxu0 %v2497_v46  ;;  %2585 = vmatmul.mubr.bf16.vlgmr.msra.gmra.mrb[100].mxu1 %v2497_v46 }
 0x6f1   :  { %v2501_v37 = vrot.slane %v2499_v54, 4  ;;  %2594 = vmatpush1.bf16.msra.mxu0 %v6799_v35  ;;  %4634 = vmatpush3.bf16.msra.mxu1 %v6560_v44  ;;  %v6818_v44 = vld [vmem:[#allocation9 + $0x80] ss:$28 sps:$4 sm:$0xff]  }
 0x6f2   :  { %2595 = vmatprep.subr.bf16.mxu0 %v6803_v5  ;;  %4635 = vmatprep.subr.bf16.mxu1 %v7635_v30 }
 0x6f3   :  { %2503 = vst [vmem:[#allocation3 + $0x30] sm:$0xf0] %v2501_v37  ;;  %2625 = vmatprep.mubr.bf16.mxu0 %v7636_v24  ;;  %4649 = vmatprep.mubr.msk.bf16.mxu1 %vm5686_vm0, %v7635_v30  ;;  %v7734_v37 = vld [vmem:[#allocation36_spill] sm:$0xff] }
 0x6f5   :  { %2596 = vmatpush1.bf16.msra.mxu0 %v6810_v10  ;;  %4636 = vmatpush3.bf16.msra.mxu1 %v6569_v27  ;;  %v6830_v27 = vld [vmem:[#allocation9 + $0xf4] ss:$28 sps:$4 sm:$0xff]  }
 0x6f6   :  { %2597 = vmatprep.subr.bf16.mxu0 %v6814_v13  ;;  %4637 = vmatprep.subr.bf16.mxu1 %v7635_v30 }
 0x6f9   :  { %2598 = vmatpush1.bf16.msra.mxu0 %v6818_v44  ;;  %4638 = vmatpush3.bf16.msra.mxu1 %v6575_v28  ;;  %v6838_v28 = vld [vmem:[#allocation9 + $0x12c] ss:$28 sps:$4 sm:$0xff]  }
 0x6fa   :  { %2599 = vmatprep.subr.bf16.mxu0 %v6822_v12  ;;  %4639 = vmatprep.subr.bf16.mxu1 %v7635_v30 }
 0x6fd   :  { %2600 = vmatpush1.bf16.msra.mxu0 %v6826_v2  ;;  %4640 = vmatpush3.bf16.msra.mxu1 %v6581_v33  ;;  %v6846_v33 = vld [vmem:[#allocation9 + $0x164] ss:$28 sps:$4 sm:$0xff]  }
 0x6fe   :  { %2601 = vmatprep.subr.bf16.mxu0 %v6830_v27  ;;  %4641 = vmatprep.subr.bf16.mxu1 %v7635_v30 }
 0x701   :  { %2602 = vmatpush1.bf16.msra.mxu0 %v6834_v63  ;;  %4642 = vmatpush3.bf16.msra.mxu1 %v6587_v39  ;;  %v6854_v39 = vld [vmem:[#allocation9 + $0x19c] ss:$28 sps:$4 sm:$0xff]  }
 0x702   :  { %2603 = vmatprep.subr.bf16.mxu0 %v6838_v28  ;;  %4643 = vmatprep.subr.bf16.mxu1 %v7635_v30 }
 0x705   :  { %2604 = vmatpush1.bf16.msra.mxu0 %v6842_v20  ;;  %4644 = vmatpush3.bf16.msra.mxu1 %v6593_v1  ;;  %v6863_v1 = vld [vmem:[#allocation9 + $0xc] ss:$28 sps:$4 sm:$0xff]  }
 0x706   :  { %2605 = vmatprep.subr.bf16.mxu0 %v6846_v33  ;;  %4645 = vmatprep.subr.bf16.mxu1 %v7635_v30 }
 0x709   :  { %2606 = vmatpush1.bf16.msra.mxu0 %v6850_v62  ;;  %4646 = vmatpush3.bf16.msra.mxu1 %v6599_v45  ;;  %v6867_v45 = vld [vmem:[#allocation9 + $0x8] ss:$28 sps:$4 sm:$0xff]  }
 0x70a   :  { %2607 = vmatprep.subr.bf16.mxu0 %v6854_v39  ;;  %4647 = vmatprep.subr.bf16.mxu1 %v7635_v30 }
 0x70d   :  { %2608 = vmatpush1.bf16.msra.mxu0 %v6858_v55  ;;  %4648 = vmatpush3.bf16.msra.mxu1 %v6605_v57  ;;  %v6877_v57 = vld [vmem:[#allocation9 + $0x40] ss:$28 sps:$4 sm:$0xff]  }
 0x70e   :  { %2765 = vmatprep.subr.bf16.mxu0 %v6703_v7  ;;  %2806 = vmatprep.subr.bf16.mxu1 %v6863_v1 }
 0x710   :  { %2626 = vmatmul.mubr.bf16.vlgmr.msra.gmra.mrb[64].mxu0 %v2497_v46  ;;  %4650 = vmatmul.mubr.bf16.vlgmr.msra.gmra.mrb[104].mxu1 %v2497_v46 }
 0x711   :  { %2766 = vmatpush1.bf16.msra.mxu0 %v6707_v21  ;;  %2807 = vmatpush1.bf16.msra.mxu1 %v6867_v45 }
 0x712   :  { %2767 = vmatprep.subr.bf16.mxu0 %v6711_v53  ;;  %2808 = vmatprep.subr.bf16.mxu1 %v6871_v31 }
 0x713   :  { %2797 = vmatprep.mubr.bf16.mxu0 %v7636_v24  ;;  %2838 = vmatprep.mubr.bf16.mxu1 %v7636_v24 }
 0x715   :  { %2768 = vmatpush1.bf16.msra.mxu0 %v6717_v59  ;;  %2809 = vmatpush1.bf16.msra.mxu1 %v6877_v57 }
 0x716   :  { %2769 = vmatprep.subr.bf16.mxu0 %v6721_v48  ;;  %2810 = vmatprep.subr.bf16.mxu1 %v6881_v17 }
 0x719   :  { %2770 = vmatpush1.bf16.msra.mxu0 %v6725_v9  ;;  %2811 = vmatpush1.bf16.msra.mxu1 %v6885_v25 }
 0x71a   :  { %2771 = vmatprep.subr.bf16.mxu0 %v6729_v3  ;;  %2812 = vmatprep.subr.bf16.mxu1 %v6889_v26 }
 0x71d   :  { %2772 = vmatpush1.bf16.msra.mxu0 %v6733_v49  ;;  %2813 = vmatpush1.bf16.msra.mxu1 %v6893_v6 }
 0x71e   :  { %2773 = vmatprep.subr.bf16.mxu0 %v6737_v15  ;;  %2814 = vmatprep.subr.bf16.mxu1 %v6897_v16 }
 0x721   :  { %2774 = vmatpush1.bf16.msra.mxu0 %v6741_v50  ;;  %2815 = vmatpush1.bf16.msra.mxu1 %v6901_v29 }
 0x722   :  { %2775 = vmatprep.subr.bf16.mxu0 %v6745_v51  ;;  %2816 = vmatprep.subr.bf16.mxu1 %v6905_v4 }
 0x725   :  { %2776 = vmatpush1.bf16.msra.mxu0 %v6749_v61  ;;  %2817 = vmatpush1.bf16.msra.mxu1 %v6909_v42 }
 0x726   :  { %2777 = vmatprep.subr.bf16.mxu0 %v6753_v0  ;;  %2818 = vmatprep.subr.bf16.mxu1 %v6913_v23 }
 0x729   :  { %2778 = vmatpush1.bf16.msra.mxu0 %v6757_v58  ;;  %2819 = vmatpush1.bf16.msra.mxu1 %v6917_v14  ;;  %v7735_v58 = vld [vmem:[#allocation38_spill] sm:$0xff] }
 0x72a   :  { %2779 = vmatprep.subr.bf16.mxu0 %v6761_v60  ;;  %2820 = vmatprep.subr.bf16.mxu1 %v6921_v36 }
 0x72d   :  { %2780 = vmatpush1.bf16.msra.mxu0 %v6765_v34  ;;  %2821 = vmatpush1.bf16.msra.mxu1 %v6925_v22 }
 0x72e   :  { %2847 = vmatprep.subr.bf16.mxu0 %v6769_v18  ;;  %4653 = vmatprep.subr.bf16.mxu1 %v7635_v30 }
 0x7c3   :  { %v2545_v46 = vpop.f32.mrb[60].mxu0  ;;  %v2586_v54 = vpop.f32.mrb[100].mxu1 }
 0x7c4   :  { %v2674_v36 = vadd.f32 %v2545_v46, %v7734_v37  ;;  %v6935_v60 = vadd.f32 %v2586_v54, %v635_v47  ;;  %v2547_v34 = vpop.f32.mrb[61].mxu0  ;;  %v2588_v14 = vpop.f32.mrb[101].mxu1 }
 0x7c5   :  { %v2675_v22 = vadd.f32 %v2547_v34, %v7735_v58  ;;  %v2677_v23 = vadd.f32 %v2588_v14, %v637_v52  ;;  %v2549_v18 = vpop.f32.mrb[62].mxu0  ;;  %v2590_v0 = vpop.f32.mrb[102].mxu1  ;;  %v7736_v34 = vld [vmem:[#allocation35_spill] sm:$0xff] }
 0x7c6   :  { %v4317_v42 = vmul.f32 -1.442695, %v2674_v36  ;;  %v2550_v61 = vpop.f32.mrb[63].mxu0  ;;  %v2591_v4 = vpop.f32.mrb[103].mxu1  ;;  %v716_v0 = vadd.f32 %v7736_v34, %v7719_v56 }
 0x7c7   :  { %v4318_v19 = vmul.f32 -1.442695, %v2675_v22  ;;  %v7737_v61 = vld [vmem:[#allocation69_spill] sm:$0xff] }
 0x7c8   :  { %5171 = vpow2.f32 %v4317_v42  ;;  %v792_v18 = vadd.f32 %v7737_v61, %v7697_v11  ;;  %v7738_v42 = vld [vmem:[#allocation37_spill] sm:$0xff] }
 0x7c9   :  { %5173 = vpow2.f32 %v4318_v19  ;;  %v718_v14 = vadd.f32 %v7738_v42, %v7722_v38 }
 0x7ca   :  { %5175 = vtanh.f32 %v2677_v23 }
 0x7d2   :  { %v5172_v41 = vpop.eup %5171 }
 0x7d3   :  { %v2684_v8 = vadd.f32 1.0, %v5172_v41  ;;  %v5174_v40 = vpop.eup %5173 }
 0x7d4   :  { %v2690_v47 = vadd.f32 1.0, %v5174_v40  ;;  %v5176_v46 = vpop.eup %5175 }
 0x7d5   :  { %5177 = vrcp.f32 %v2684_v8 }
 0x7d6   :  { %5179 = vrcp.f32 %v2690_v47 }
 0x7df   :  { %v5178_v54 = vpop.eup %5177 }
 0x7e0   :  { %v2721_v37 = vmul.f32 %v5178_v54, %v5176_v46  ;;  %v5180_v58 = vpop.eup %5179 }
 0x7e1   :  { %v2720_v4 = vmul.f32 %v5180_v58, %v6795_v32 }
 0x7e3   :  { %v2627_v36 = vpop.f32.mrb[64].mxu0  ;;  %v2668_v23 = vpop.f32.mrb[104].mxu1  ;;  %v2722_v8 = vadd.f32 %v2721_v37, %v2720_v4 }
 0x7e4   :  { %v2678_v40 = vadd.f32 %v2627_v36, %v716_v0  ;;  %v2680_v22 = vadd.f32 %v2668_v23, %v792_v18  ;;  %v2629_v52 = vpop.f32.mrb[65].mxu0  ;;  %v4651_v19 = vpop.f32.mrb[105].mxu1 }
 0x7e5   :  { %v2679_v41 = vadd.f32 %v2629_v52, %v718_v14  ;;  %v2631_v47 = vpop.f32.mrb[66].mxu0  ;;  %v2671_v54 = vpop.f32.mrb[106].mxu1 }
 0x7e6   :  { %v4320_v51 = vmul.f32 -1.442695, %v2678_v40  ;;  %v2713_v34 = vmin.f32 %v2680_v22, 20.0  ;;  %v2632_v56 = vpop.f32.mrb[67].mxu0  ;;  %v4652_v29 = vpop.f32.mrb[107].mxu1  ;;  %vm2712_vm6 = vcmp.gt.f32.partialorder %v2680_v22, 20.0 }
 0x7e7   :  { %v4321_v61 = vmul.f32 -1.442695, %v2679_v41  ;;  %v4319_v40 = vmul.f32 -1.442695, %v6935_v60  ;;  %v2742_v52 = vpop.permute.xlu0 %2741  ;;  %v7739_v47 = vld [vmem:[#allocation17_spill] sm:$0xff] }
 0x7e8   :  { %5181 = vpow2.f32 %v4320_v51  ;;  %v2714_v32 = vmul.f32 1.442695, %v2713_v34 }
 0x7e9   :  { %5183 = vpow2.f32 %v4321_v61 }
 0x7ea   :  { %5185 = vpow2.f32 %v2714_v32 }
 0x7f2   :  { %v5182_v58 = vpop.eup %5181 }
 0x7f3   :  { %v5184_v42 = vpop.eup %5183  ;;  %v2703_v38 = vadd.f32 1.0, %v5182_v58 }
 0x7f4   :  { %v5186_v37 = vpop.eup %5185  ;;  %v2709_v0 = vadd.f32 1.0, %v5184_v42 }
 0x7f5   :  { %5187 = vrcp.f32 %v2703_v38  ;;  %v2716_v18 = vadd.f32 1.0, %v5186_v37 }
 0x7f6   :  { %5189 = vrcp.f32 %v2709_v0 }
 0x7f7   :  { %5191 = vlog2.f32 %v2716_v18 }
 0x7f8   :  { %5193 = vpow2.f32 %v4319_v40  ;;  %v6957_v40 = vld [vmem:[#allocation9 + $0x18] ss:$28 sps:$4 sm:$0xff]  }
 0x7ff   :  { %v5188_v4 = vpop.eup %5187 }
 0x800   :  { %v5190_v14 = vpop.eup %5189  ;;  %v2724_v36 = vmul.f32 %v5188_v4, %v5176_v46 }
 0x801   :  { %v5192_v23 = vpop.eup %5191  ;;  %v2723_v56 = vmul.f32 %v5190_v14, %v6789_v43 }
 0x802   :  { %v2718_v29 = vmul.f32 0.6931472, %v5192_v23  ;;  %v5194_v46 = vpop.eup %5193 }
 0x803   :  { %v6946_v51 = vadd.f32 %v2724_v36, %v2723_v56  ;;  %v2696_v58 = vadd.f32 1.0, %v5194_v46  ;;  %v7751_v46 = vld [vmem:[#allocation25_spill] sm:$0xff] }
 0x804   :  { %v2719_v19 = vsel %vm2712_vm6, %v2680_v22, %v2718_v29 }
 0x805   :  { %v2727_v41 = vsub.f32 0.0, %v2719_v19  ;;  %v2726_v43 = vsub.f32 %v2722_v8, %v6946_v51  ;;  %v6972_v19 = vld [vmem:[#allocation9 + $0x88] ss:$28 sps:$4 sm:$0xff]  }
 0x807   :  { %v2733_v38 = vmul.f32 %v7739_v47, %v2727_v41  ;;  %v2744_v54 = vmul.f32 %v2742_v52, %v2727_v41  ;;  %v6966_v52 = vld [vmem:[#allocation9 + $0x50] ss:$28 sps:$4 sm:$0xff]   ;;  %v6978_v41 = vld [vmem:[#allocation9 + $0xc0] ss:$28 sps:$4 sm:$0xff]   ;;  %v6984_v47 = vld [vmem:[#allocation9 + $0xf8] ss:$28 sps:$4 sm:$0xff]  }
 0x809   :  { %v2734_v34 = vmul.f32 1.442695, %v2733_v38  ;;  %v2745_v61 = vmul.f32 1.442695, %v2744_v54  ;;  %v6990_v38 = vld [vmem:[#allocation9 + $0x130] ss:$28 sps:$4 sm:$0xff]  }
 0x80a   :  { %v6996_v54 = vld [vmem:[#allocation9 + $0x168] ss:$28 sps:$4 sm:$0xff]  }
 0x80b   :  { %5195 = vpow2.f32 %v2734_v34  ;;  %v7002_v34 = vld [vmem:[#allocation9 + $0x1a0] ss:$28 sps:$4 sm:$0xff]  }
 0x80c   :  { %5197 = vpow2.f32 %v2745_v61  ;;  %v7749_v61 = vld [vmem:[#allocation66_spill] sm:$0xff] }
 0x80d   :  { %5199 = vrcp.f32 %v2696_v58  ;;  %v7754_v58 = vld [vmem:[#allocation72_spill] sm:$0xff] }
 0x815   :  { %v5196_v32 = vpop.eup %5195 }
 0x816   :  { %v5198_v42 = vpop.eup %5197  ;;  %v2736_v37 = vmul.f32 %v5196_v32, %v2726_v43  ;;  %v7753_v32 = vld [vmem:[#allocation49_spill] sm:$0xff] }
 0x817   :  { %v2747_v0 = vmul.f32 %v5198_v42, %v2726_v43  ;;  %v5200_v18 = vpop.eup %5199  ;;  %v7752_v43 = vld [vmem:[#allocation83_spill] sm:$0xff] }
 0x818   :  { %v6952_v60 = vadd.f32 %v2736_v37, %v6946_v51  ;;  %v7755_v42 = vld [vmem:[#allocation59_spill] sm:$0xff] }
 0x819   :  { %v2748_v22 = vadd.f32 %v2747_v0, %v6946_v51  ;;  %v641_v37 = vadd.f32 %v7755_v42, %v7754_v58  ;;  %v7756_v0 = vld [vmem:[#allocation73_spill] sm:$0xff] }
 0x81a   :  { %5201 = vtanh.f32 %v6952_v60 }
 0x81b   :  { %5203 = vtanh.f32 %v2748_v22  ;;  %v7757_v22 = vld [vmem:[#allocation60_spill] sm:$0xff] }
 0x824   :  { %v5202_v4 = vpop.eup %5201 }
 0x825   :  { %v5204_v14 = vpop.eup %5203  ;;  %v2739_v36 = vmul.f32 %v5202_v4, %v5200_v18 }
 0x826   :  { %v2750_v23 = vmul.f32 %v5204_v14, %v5200_v18  ;;  %v643_v18 = vadd.f32 %v7757_v22, %v7756_v0 }
 0x827   :  { %v2751_v8 = vpack.c.bf16 %v2739_v36, %v2739_v36  ;;  %v7758_v36 = vld [vmem:[#allocation40_spill] sm:$0xff] }
 0x828   :  { %v2756_v56 = vpack.c.bf16 %v2750_v23, %v2750_v23 }
 0x829   :  { %v2753_v29 = vrot.slane %v2751_v8, 4  ;;  %2798 = vmatmul.mubr.bf16.vlgmr.msra.gmra.mrb[68].mxu0 %v2751_v8  ;;  %2839 = vmatmul.mubr.bf16.vlgmr.msra.gmra.mrb[108].mxu1 %v2751_v8 }
 0x82a   :  { %2757 = vst [vmem:[#allocation3 + $0x38] sm:$0xf] %v2756_v56  ;;  %2848 = vmatpush1.bf16.msra.mxu0 %v6799_v35  ;;  %4654 = vmatpush3.bf16.msra.mxu1 %v6957_v40 }
 0x82b   :  { %2755 = vst [vmem:[#allocation3 + $0x10] sm:$0xf0] %v2753_v29  ;;  %2849 = vmatprep.subr.bf16.mxu0 %v6803_v5  ;;  %4655 = vmatprep.subr.bf16.mxu1 %v7635_v30 }
 0x82c   :  { %2879 = vmatprep.mubr.bf16.mxu0 %v7636_v24  ;;  %4669 = vmatprep.mubr.msk.bf16.mxu1 %vm5686_vm0, %v7635_v30 }
 0x82e   :  { %2850 = vmatpush1.bf16.msra.mxu0 %v6810_v10  ;;  %4656 = vmatpush3.bf16.msra.mxu1 %v6966_v52 }
 0x82f   :  { %2851 = vmatprep.subr.bf16.mxu0 %v6814_v13  ;;  %4657 = vmatprep.subr.bf16.mxu1 %v7635_v30 }
 0x832   :  { %2852 = vmatpush1.bf16.msra.mxu0 %v6818_v44  ;;  %4658 = vmatpush3.bf16.msra.mxu1 %v6972_v19 }
 0x833   :  { %2853 = vmatprep.subr.bf16.mxu0 %v6822_v12  ;;  %4659 = vmatprep.subr.bf16.mxu1 %v7635_v30 }
 0x836   :  { %2854 = vmatpush1.bf16.msra.mxu0 %v6826_v2  ;;  %4660 = vmatpush3.bf16.msra.mxu1 %v6978_v41 }
 0x837   :  { %2855 = vmatprep.subr.bf16.mxu0 %v6830_v27  ;;  %4661 = vmatprep.subr.bf16.mxu1 %v7635_v30 }
 0x83a   :  { %2856 = vmatpush1.bf16.msra.mxu0 %v6834_v63  ;;  %4662 = vmatpush3.bf16.msra.mxu1 %v6984_v47 }
 0x83b   :  { %2857 = vmatprep.subr.bf16.mxu0 %v6838_v28  ;;  %4663 = vmatprep.subr.bf16.mxu1 %v7635_v30 }
 0x83e   :  { %2858 = vmatpush1.bf16.msra.mxu0 %v6842_v20  ;;  %4664 = vmatpush3.bf16.msra.mxu1 %v6990_v38 }
 0x83f   :  { %2859 = vmatprep.subr.bf16.mxu0 %v6846_v33  ;;  %4665 = vmatprep.subr.bf16.mxu1 %v7635_v30 }
 0x842   :  { %2860 = vmatpush1.bf16.msra.mxu0 %v6850_v62  ;;  %4666 = vmatpush3.bf16.msra.mxu1 %v6996_v54 }
 0x843   :  { %2861 = vmatprep.subr.bf16.mxu0 %v6854_v39  ;;  %4667 = vmatprep.subr.bf16.mxu1 %v7635_v30 }
 0x846   :  { %2862 = vmatpush1.bf16.msra.mxu0 %v6858_v55  ;;  %4668 = vmatpush3.bf16.msra.mxu1 %v7002_v34 }
 0x847   :  { %3019 = vmatprep.subr.bf16.mxu0 %v6703_v7  ;;  %3060 = vmatprep.subr.bf16.mxu1 %v6863_v1  ;;  %v7740_v7 = vld [vmem:[#allocation77_spill] sm:$0xff] }
 0x849   :  { %2880 = vmatmul.mubr.bf16.vlgmr.msra.gmra.mrb[72].mxu0 %v2751_v8  ;;  %4670 = vmatmul.mubr.bf16.vlgmr.msra.gmra.mrb[112].mxu1 %v2751_v8 }
 0x84a   :  { %3020 = vmatpush1.bf16.msra.mxu0 %v6707_v21  ;;  %3061 = vmatpush1.bf16.msra.mxu1 %v6867_v45  ;;  %v7741_v21 = vld [vmem:[#allocation52_spill] sm:$0xff] }
 0x84b   :  { %3021 = vmatprep.subr.bf16.mxu0 %v6711_v53  ;;  %3062 = vmatprep.subr.bf16.mxu1 %v6871_v31  ;;  %v7742_v53 = vld [vmem:[#allocation78_spill] sm:$0xff] }
 0x84c   :  { %3051 = vmatprep.mubr.bf16.mxu0 %v7636_v24  ;;  %3092 = vmatprep.mubr.bf16.mxu1 %v7636_v24 }
 0x84e   :  { %3022 = vmatpush1.bf16.msra.mxu0 %v6717_v59  ;;  %3063 = vmatpush1.bf16.msra.mxu1 %v6877_v57  ;;  %v7743_v59 = vld [vmem:[#allocation24_spill] sm:$0xff] }
 0x84f   :  { %3023 = vmatprep.subr.bf16.mxu0 %v6721_v48  ;;  %3064 = vmatprep.subr.bf16.mxu1 %v6881_v17  ;;  %v7744_v48 = vld [vmem:[#allocation79_spill] sm:$0xff] }
 0x852   :  { %3024 = vmatpush1.bf16.msra.mxu0 %v6725_v9  ;;  %3065 = vmatpush1.bf16.msra.mxu1 %v6885_v25  ;;  %v7745_v9 = vld [vmem:[#allocation26_spill] sm:$0xff] }
 0x853   :  { %3025 = vmatprep.subr.bf16.mxu0 %v6729_v3  ;;  %3066 = vmatprep.subr.bf16.mxu1 %v6889_v26  ;;  %v7746_v3 = vld [vmem:[#allocation80_spill] sm:$0xff] }
 0x856   :  { %3026 = vmatpush1.bf16.msra.mxu0 %v6733_v49  ;;  %3067 = vmatpush1.bf16.msra.mxu1 %v6893_v6  ;;  %v7747_v49 = vld [vmem:[#allocation23_spill] sm:$0xff] }
 0x857   :  { %3027 = vmatprep.subr.bf16.mxu0 %v6737_v15  ;;  %3068 = vmatprep.subr.bf16.mxu1 %v6897_v16  ;;  %v7748_v15 = vld [vmem:[#allocation81_spill] sm:$0xff] }
 0x85a   :  { %3028 = vmatpush1.bf16.msra.mxu0 %v6741_v50  ;;  %3069 = vmatpush1.bf16.msra.mxu1 %v7740_v7  ;;  %v7750_v50 = vld [vmem:[#allocation82_spill] sm:$0xff] }
 0x85b   :  { %3029 = vmatprep.subr.bf16.mxu0 %v7741_v21  ;;  %3070 = vmatprep.subr.bf16.mxu1 %v7742_v53  ;;  %v7759_v21 = vld [vmem:[#allocation42_spill] sm:$0xff] }
 0x85e   :  { %3030 = vmatpush1.bf16.msra.mxu0 %v7743_v59  ;;  %3071 = vmatpush1.bf16.msra.mxu1 %v7744_v48 }
 0x85f   :  { %3031 = vmatprep.subr.bf16.mxu0 %v7745_v9  ;;  %3072 = vmatprep.subr.bf16.mxu1 %v7746_v3 }
 0x862   :  { %3032 = vmatpush1.bf16.msra.mxu0 %v7747_v49  ;;  %3073 = vmatpush1.bf16.msra.mxu1 %v7748_v15 }
 0x863   :  { %3033 = vmatprep.subr.bf16.mxu0 %v7749_v61  ;;  %3074 = vmatprep.subr.bf16.mxu1 %v7750_v50 }
 0x866   :  { %3034 = vmatpush1.bf16.msra.mxu0 %v7751_v46  ;;  %3075 = vmatpush1.bf16.msra.mxu1 %v7752_v43 }
 0x867   :  { %3101 = vmatprep.subr.bf16.mxu0 %v7753_v32  ;;  %4673 = vmatprep.subr.bf16.mxu1 %v7635_v30 }
 0x8fc   :  { %v2799_v4 = vpop.f32.mrb[68].mxu0  ;;  %v2840_v14 = vpop.f32.mrb[108].mxu1 }
 0x8fd   :  { %v2928_v23 = vadd.f32 %v2799_v4, %v7758_v36  ;;  %v7046_v8 = vadd.f32 %v2840_v14, %v641_v37  ;;  %v2801_v56 = vpop.f32.mrb[69].mxu0  ;;  %v2842_v29 = vpop.f32.mrb[109].mxu1 }
 0x8fe   :  { %v2929_v59 = vadd.f32 %v2801_v56, %v7759_v21  ;;  %v2931_v9 = vadd.f32 %v2842_v29, %v643_v18  ;;  %v2803_v49 = vpop.f32.mrb[70].mxu0  ;;  %v2844_v61 = vpop.f32.mrb[110].mxu1  ;;  %v7760_v18 = vld [vmem:[#allocation61_spill] sm:$0xff]  ;;  %v7761_v29 = vld [vmem:[#allocation39_spill] sm:$0xff] }
 0x8ff   :  { %v4322_v46 = vmul.f32 -1.442695, %v2928_v23  ;;  %v2804_v32 = vpop.f32.mrb[71].mxu0  ;;  %v2845_v43 = vpop.f32.mrb[111].mxu1  ;;  %v722_v21 = vadd.f32 %v7761_v29, %v7760_v18  ;;  %v7762_v23 = vld [vmem:[#allocation70_spill] sm:$0xff]  ;;  %v7763_v49 = vld [vmem:[#allocation63_spill] sm:$0xff] }
 0x900   :  { %v4323_v42 = vmul.f32 -1.442695, %v2929_v59  ;;  %v797_v43 = vadd.f32 %v7762_v23, %v7697_v11  ;;  %v7764_v61 = vld [vmem:[#allocation41_spill] sm:$0xff] }
 0x901   :  { %5205 = vpow2.f32 %v4322_v46  ;;  %v724_v46 = vadd.f32 %v7764_v61, %v7763_v49 }
 0x902   :  { %5207 = vpow2.f32 %v4323_v42 }
 0x903   :  { %5209 = vtanh.f32 %v2931_v9 }
 0x90b   :  { %v5206_v22 = vpop.eup %5205 }
 0x90c   :  { %v2938_v0 = vadd.f32 1.0, %v5206_v22  ;;  %v5208_v58 = vpop.eup %5207 }
 0x90d   :  { %v2944_v37 = vadd.f32 1.0, %v5208_v58  ;;  %v5210_v4 = vpop.eup %5209 }
 0x90e   :  { %5211 = vrcp.f32 %v2938_v0 }
 0x90f   :  { %5213 = vrcp.f32 %v2944_v37 }
 0x918   :  { %v5212_v14 = vpop.eup %5211 }
 0x919   :  { %v2975_v36 = vmul.f32 %v5212_v14, %v5210_v4  ;;  %v5214_v56 = vpop.eup %5213 }
 0x91a   :  { %v2974_v59 = vmul.f32 %v5214_v56, %v6952_v60 }
 0x91c   :  { %v2881_v32 = vpop.f32.mrb[72].mxu0  ;;  %v2922_v9 = vpop.f32.mrb[112].mxu1  ;;  %v2976_v0 = vadd.f32 %v2975_v36, %v2974_v59 }
 0x91d   :  { %v2932_v58 = vadd.f32 %v2881_v32, %v722_v21  ;;  %v2934_v42 = vadd.f32 %v2922_v9, %v797_v43  ;;  %v2883_v22 = vpop.f32.mrb[73].mxu0  ;;  %v4671_v37 = vpop.f32.mrb[113].mxu1  ;;  %v4324_v32 = vmul.f32 -1.442695, %v7046_v8 }
 0x91e   :  { %v2933_v14 = vadd.f32 %v2883_v22, %v724_v46  ;;  %v2885_v50 = vpop.f32.mrb[74].mxu0  ;;  %v2925_v15 = vpop.f32.mrb[114].mxu1  ;;  %v7765_v37 = vld [vmem:[#allocation76_spill] sm:$0xff] }
 0x91f   :  { %v4325_v3 = vmul.f32 -1.442695, %v2932_v58  ;;  %v2967_v29 = vmin.f32 %v2934_v42, 20.0  ;;  %v2886_v18 = vpop.f32.mrb[75].mxu0  ;;  %v4672_v48 = vpop.f32.mrb[115].mxu1  ;;  %vm2966_vm7 = vcmp.gt.f32.partialorder %v2934_v42, 20.0 }
 0x920   :  { %v4326_v23 = vmul.f32 -1.442695, %v2933_v14  ;;  %v2996_v9 = vpop.permute.xlu1 %2995 }
 0x921   :  { %5215 = vpow2.f32 %v4325_v3  ;;  %v2968_v60 = vmul.f32 1.442695, %v2967_v29 }
 0x922   :  { %5217 = vpow2.f32 %v4326_v23 }
 0x923   :  { %5219 = vpow2.f32 %v2968_v60 }
 0x92b   :  { %v5216_v56 = vpop.eup %5215 }
 0x92c   :  { %v5218_v61 = vpop.eup %5217  ;;  %v2957_v49 = vadd.f32 1.0, %v5216_v56 }
 0x92d   :  { %v5220_v36 = vpop.eup %5219  ;;  %v2963_v21 = vadd.f32 1.0, %v5218_v61 }
 0x92e   :  { %5221 = vrcp.f32 %v2957_v49  ;;  %v2970_v43 = vadd.f32 1.0, %v5220_v36 }
 0x92f   :  { %5223 = vrcp.f32 %v2963_v21 }
 0x930   :  { %5225 = vlog2.f32 %v2970_v43 }
 0x931   :  { %5227 = vpow2.f32 %v4324_v32  ;;  %v7774_v32 = vld [vmem:[#allocation64_spill] sm:$0xff] }
 0x938   :  { %v5222_v50 = vpop.eup %5221 }
 0x939   :  { %v5224_v15 = vpop.eup %5223  ;;  %v2978_v59 = vmul.f32 %v5222_v50, %v5210_v4 }
 0x93a   :  { %v5226_v46 = vpop.eup %5225  ;;  %v2977_v48 = vmul.f32 %v5224_v15, %v6946_v51 }
 0x93b   :  { %v2972_v18 = vmul.f32 0.6931472, %v5226_v46  ;;  %v5228_v4 = vpop.eup %5227 }
 0x93c   :  { %v7057_v3 = vadd.f32 %v2978_v59, %v2977_v48  ;;  %v2950_v56 = vadd.f32 1.0, %v5228_v4  ;;  %v7776_v4 = vld [vmem:[#allocation46_spill] sm:$0xff] }
 0x93d   :  { %v2973_v58 = vsel %vm2966_vm7, %v2934_v42, %v2972_v18 }
 0x93e   :  { %v2981_v22 = vsub.f32 0.0, %v2973_v58  ;;  %v2980_v51 = vsub.f32 %v2976_v0, %v7057_v3 }
 0x940   :  { %v2987_v49 = vmul.f32 %v7765_v37, %v2981_v22  ;;  %v2998_v14 = vmul.f32 %v2996_v9, %v2981_v22  ;;  %v7775_v37 = vld [vmem:[#allocation44_spill] sm:$0xff] }
 0x942   :  { %v2988_v29 = vmul.f32 1.442695, %v2987_v49  ;;  %v2999_v23 = vmul.f32 1.442695, %v2998_v14 }
 0x944   :  { %5229 = vpow2.f32 %v2988_v29 }
 0x945   :  { %5231 = vpow2.f32 %v2999_v23 }
 0x946   :  { %5233 = vrcp.f32 %v2950_v56 }
 0x94e   :  { %v5230_v60 = vpop.eup %5229 }
 0x94f   :  { %v5232_v61 = vpop.eup %5231  ;;  %v2990_v36 = vmul.f32 %v5230_v60, %v2980_v51 }
 0x950   :  { %v3001_v21 = vmul.f32 %v5232_v61, %v2980_v51  ;;  %v5234_v43 = vpop.eup %5233 }
 0x951   :  { %v7063_v8 = vadd.f32 %v2990_v36, %v7057_v3 }
 0x952   :  { %v3002_v42 = vadd.f32 %v3001_v21, %v7057_v3 }
 0x953   :  { %5235 = vtanh.f32 %v7063_v8 }
 0x954   :  { %5237 = vtanh.f32 %v3002_v42 }
 0x95d   :  { %v5236_v50 = vpop.eup %5235 }
 0x95e   :  { %v5238_v15 = vpop.eup %5237  ;;  %v2993_v59 = vmul.f32 %v5236_v50, %v5234_v43 }
 0x95f   :  { %v3004_v46 = vmul.f32 %v5238_v15, %v5234_v43 }
 0x960   :  { %v3005_v0 = vpack.c.bf16 %v2993_v59, %v2993_v59 }
 0x961   :  { %v3007_v48 = vpack.c.bf16 %v3004_v46, %v3004_v46 }
 0x962   :  { %3006 = vst [vmem:[#allocation3 + $0x18] sm:$0xf] %v3005_v0  ;;  %3052 = vmatmul.mubr.bf16.vlgmr.msra.gmra.mrb[76].mxu0 %v3005_v0  ;;  %3093 = vmatmul.mubr.bf16.vlgmr.msra.gmra.mrb[116].mxu1 %v3005_v0 }
 0x963   :  { %v3009_v18 = vrot.slane %v3007_v48, 4  ;;  %3102 = vmatpush1.bf16.msra.mxu0 %v6799_v35  ;;  %4674 = vmatpush3.bf16.msra.mxu1 %v6957_v40  ;;  %v5509_v35 = vld [vmem:[#allocation9 + $0x4] ss:$28 sps:$4 sm:$0xff]  }
 0x964   :  { %3103 = vmatprep.subr.bf16.mxu0 %v6803_v5  ;;  %4675 = vmatprep.subr.bf16.mxu1 %v7635_v30  ;;  %v5510_v5 = vld [vmem:[#allocation9] ss:$28 sps:$4 sm:$0xff]  }
 0x965   :  { %3011 = vst [vmem:[#allocation3 + $0x38] sm:$0xf0] %v3009_v18  ;;  %3133 = vmatprep.mubr.bf16.mxu0 %v7636_v24  ;;  %4689 = vmatprep.mubr.msk.bf16.mxu1 %vm5686_vm0, %v7635_v30 }
 0x967   :  { %3104 = vmatpush1.bf16.msra.mxu0 %v6810_v10  ;;  %4676 = vmatpush3.bf16.msra.mxu1 %v6966_v52  ;;  %v5511_v10 = vld [vmem:[#allocation9 + $0x3c] ss:$28 sps:$4 sm:$0xff]  }
 0x968   :  { %3105 = vmatprep.subr.bf16.mxu0 %v6814_v13  ;;  %4677 = vmatprep.subr.bf16.mxu1 %v7635_v30  ;;  %v5512_v13 = vld [vmem:[#allocation9 + $0x38] ss:$28 sps:$4 sm:$0xff]  }
 0x96b   :  { %3106 = vmatpush1.bf16.msra.mxu0 %v6818_v44  ;;  %4678 = vmatpush3.bf16.msra.mxu1 %v6972_v19  ;;  %v5513_v44 = vld [vmem:[#allocation9 + $0x74] ss:$28 sps:$4 sm:$0xff]  }
 0x96c   :  { %3107 = vmatprep.subr.bf16.mxu0 %v6822_v12  ;;  %4679 = vmatprep.subr.bf16.mxu1 %v7635_v30  ;;  %v5514_v12 = vld [vmem:[#allocation9 + $0x70] ss:$28 sps:$4 sm:$0xff]  }
 0x96f   :  { %3108 = vmatpush1.bf16.msra.mxu0 %v6826_v2  ;;  %4680 = vmatpush3.bf16.msra.mxu1 %v6978_v41  ;;  %v5515_v2 = vld [vmem:[#allocation9 + $0xac] ss:$28 sps:$4 sm:$0xff]  }
 0x970   :  { %3109 = vmatprep.subr.bf16.mxu0 %v6830_v27  ;;  %4681 = vmatprep.subr.bf16.mxu1 %v7635_v30  ;;  %v5516_v27 = vld [vmem:[#allocation9 + $0xa8] ss:$28 sps:$4 sm:$0xff]  }
 0x973   :  { %3110 = vmatpush1.bf16.msra.mxu0 %v6834_v63  ;;  %4682 = vmatpush3.bf16.msra.mxu1 %v6984_v47  ;;  %v5517_v63 = vld [vmem:[#allocation9 + $0xe4] ss:$28 sps:$4 sm:$0xff]  }
 0x974   :  { %3111 = vmatprep.subr.bf16.mxu0 %v6838_v28  ;;  %4683 = vmatprep.subr.bf16.mxu1 %v7635_v30  ;;  %v5518_v28 = vld [vmem:[#allocation9 + $0xe0] ss:$28 sps:$4 sm:$0xff]  }
 0x977   :  { %3112 = vmatpush1.bf16.msra.mxu0 %v6842_v20  ;;  %4684 = vmatpush3.bf16.msra.mxu1 %v6990_v38  ;;  %v5519_v20 = vld [vmem:[#allocation9 + $0x11c] ss:$28 sps:$4 sm:$0xff]  }
 0x978   :  { %3113 = vmatprep.subr.bf16.mxu0 %v6846_v33  ;;  %4685 = vmatprep.subr.bf16.mxu1 %v7635_v30  ;;  %v5520_v33 = vld [vmem:[#allocation9 + $0x118] ss:$28 sps:$4 sm:$0xff]  }
 0x97b   :  { %3114 = vmatpush1.bf16.msra.mxu0 %v6850_v62  ;;  %4686 = vmatpush3.bf16.msra.mxu1 %v6996_v54  ;;  %v7766_v62 = vld [vmem:[#allocation79_spill] sm:$0xff] }
 0x97c   :  { %3115 = vmatprep.subr.bf16.mxu0 %v6854_v39  ;;  %4687 = vmatprep.subr.bf16.mxu1 %v7635_v30  ;;  %v5521_v39 = vld [vmem:[#allocation9 + $0x154] ss:$28 sps:$4 sm:$0xff]  }
 0x97f   :  { %3116 = vmatpush1.bf16.msra.mxu0 %v6858_v55  ;;  %4688 = vmatpush3.bf16.msra.mxu1 %v7002_v34  ;;  %v7767_v55 = vld [vmem:[#allocation80_spill] sm:$0xff] }
 0x980   :  { %3273 = vmatprep.subr.bf16.mxu0 %v5509_v35  ;;  %3314 = vmatprep.subr.bf16.mxu1 %v6863_v1  ;;  %v5522_v1 = vld [vmem:[#allocation9 + $0x150] ss:$28 sps:$4 sm:$0xff]  }
 0x982   :  { %3134 = vmatmul.mubr.bf16.vlgmr.msra.gmra.mrb[80].mxu0 %v3005_v0  ;;  %4690 = vmatmul.mubr.bf16.vlgmr.msra.gmra.mrb[120].mxu1 %v3005_v0 }
 0x983   :  { %3274 = vmatpush1.bf16.msra.mxu0 %v5510_v5  ;;  %3315 = vmatpush1.bf16.msra.mxu1 %v6867_v45  ;;  %v7768_v45 = vld [vmem:[#allocation81_spill] sm:$0xff] }
 0x984   :  { %3275 = vmatprep.subr.bf16.mxu0 %v5511_v10  ;;  %3316 = vmatprep.subr.bf16.mxu1 %v6871_v31  ;;  %v5523_v31 = vld [vmem:[#allocation9 + $0x18c] ss:$28 sps:$4 sm:$0xff]   ;;  %v7778_v10 = vld [vmem:[#allocation43_spill] sm:$0xff] }
 0x985   :  { %3305 = vmatprep.mubr.bf16.mxu0 %v7636_v24  ;;  %3346 = vmatprep.mubr.bf16.mxu1 %v7636_v24  ;;  %v7777_v5 = vld [vmem:[#allocation61_spill] sm:$0xff] }
 0x987   :  { %3276 = vmatpush1.bf16.msra.mxu0 %v5512_v13  ;;  %3317 = vmatpush1.bf16.msra.mxu1 %v6877_v57  ;;  %v7769_v57 = vld [vmem:[#allocation82_spill] sm:$0xff]  ;;  %v726_v13 = vadd.f32 %v7778_v10, %v7777_v5  ;;  %v3250_v10 = vpop.permute.xlu0 %3249 }
 0x988   :  { %3277 = vmatprep.subr.bf16.mxu0 %v5513_v44  ;;  %3318 = vmatprep.subr.bf16.mxu1 %v6881_v17  ;;  %v5524_v17 = vld [vmem:[#allocation9 + $0x188] ss:$28 sps:$4 sm:$0xff]   ;;  %v7779_v44 = vld [vmem:[#allocation71_spill] sm:$0xff] }
 0x98b   :  { %3278 = vmatpush1.bf16.msra.mxu0 %v5514_v12  ;;  %3319 = vmatpush1.bf16.msra.mxu1 %v6885_v25  ;;  %v7770_v25 = vld [vmem:[#allocation83_spill] sm:$0xff]  ;;  %v800_v12 = vadd.f32 %v7779_v44, %v7697_v11 }
 0x98c   :  { %3279 = vmatprep.subr.bf16.mxu0 %v5515_v2  ;;  %3320 = vmatprep.subr.bf16.mxu1 %v6889_v26  ;;  %v5525_v26 = vld [vmem:[#allocation9 + $0x14] ss:$28 sps:$4 sm:$0xff]  }
 0x98f   :  { %3280 = vmatpush1.bf16.msra.mxu0 %v5516_v27  ;;  %3321 = vmatpush1.bf16.msra.mxu1 %v6893_v6  ;;  %v7771_v6 = vld [vmem:[#allocation72_spill] sm:$0xff]  ;;  %v7780_v27 = vld [vmem:[#allocation63_spill] sm:$0xff] }
 0x990   :  { %3281 = vmatprep.subr.bf16.mxu0 %v5517_v63  ;;  %3322 = vmatprep.subr.bf16.mxu1 %v6897_v16  ;;  %v7772_v16 = vld [vmem:[#allocation62_spill] sm:$0xff]  ;;  %v7781_v63 = vld [vmem:[#allocation45_spill] sm:$0xff] }
 0x993   :  { %3282 = vmatpush1.bf16.msra.mxu0 %v5518_v28  ;;  %3323 = vmatpush1.bf16.msra.mxu1 %v7740_v7  ;;  %v645_v7 = vadd.f32 %v7772_v16, %v7771_v6  ;;  %v728_v28 = vadd.f32 %v7781_v63, %v7780_v27 }
 0x994   :  { %3283 = vmatprep.subr.bf16.mxu0 %v5519_v20  ;;  %3324 = vmatprep.subr.bf16.mxu1 %v7742_v53  ;;  %v7773_v53 = vld [vmem:[#allocation73_spill] sm:$0xff] }
 0x995   :  { %v647_v9 = vadd.f32 %v7774_v32, %v7773_v53 }
 0x997   :  { %3284 = vmatpush1.bf16.msra.mxu0 %v5520_v33  ;;  %3325 = vmatpush1.bf16.msra.mxu1 %v7766_v62 }
 0x998   :  { %3285 = vmatprep.subr.bf16.mxu0 %v5521_v39  ;;  %3326 = vmatprep.subr.bf16.mxu1 %v7767_v55 }
 0x99b   :  { %3286 = vmatpush1.bf16.msra.mxu0 %v5522_v1  ;;  %3327 = vmatpush1.bf16.msra.mxu1 %v7768_v45 }
 0x99c   :  { %3287 = vmatprep.subr.bf16.mxu0 %v5523_v31  ;;  %3328 = vmatprep.subr.bf16.mxu1 %v7769_v57 }
 0x99f   :  { %3288 = vmatpush1.bf16.msra.mxu0 %v5524_v17  ;;  %3329 = vmatpush1.bf16.msra.mxu1 %v7770_v25 }
 0x9a0   :  { %3355 = vmatprep.subr.bf16.mxu0 %v5525_v26  ;;  %4693 = vmatprep.subr.bf16.mxu1 %v7635_v30 }
 0xa35   :  { %v3053_v58 = vpop.f32.mrb[76].mxu0  ;;  %v3094_v22 = vpop.f32.mrb[116].mxu1 }
 0xa36   :  { %v3182_v49 = vadd.f32 %v3053_v58, %v7775_v37  ;;  %v7124_v14 = vadd.f32 %v3094_v22, %v645_v7  ;;  %v3055_v29 = vpop.f32.mrb[77].mxu0  ;;  %v3096_v23 = vpop.f32.mrb[117].mxu1 }
 0xa37   :  { %v3183_v51 = vadd.f32 %v3055_v29, %v7776_v4  ;;  %v3185_v60 = vadd.f32 %v3096_v23, %v647_v9  ;;  %v3057_v56 = vpop.f32.mrb[78].mxu0  ;;  %v3098_v61 = vpop.f32.mrb[118].mxu1 }
 0xa38   :  { %v4327_v36 = vmul.f32 -1.442695, %v3182_v49  ;;  %v3058_v21 = vpop.f32.mrb[79].mxu0  ;;  %v3099_v42 = vpop.f32.mrb[119].mxu1  ;;  %v5526_v61 = vld [vmem:[%s7500_s1] sm:$0xff] }
 0xa39   :  { %v4328_v43 = vmul.f32 -1.442695, %v3183_v51  ;;  %v5527_v21 = vld [vmem:[%s7500_s1 + $0x8] sm:$0xff] }
 0xa3a   :  { %5239 = vpow2.f32 %v4327_v36  ;;  %v4786_v36 = vtrunc.f32 %v5526_v61  ;;  %v4788_v42 = vtrunc.f32 %v5527_v21  ;;  %v5534_v61 = vld [vmem:[#allocation9 + $0x48] ss:$28 sps:$4 sm:$0xff]   ;;  %v5536_v21 = vld [vmem:[#allocation9 + $0x80] ss:$28 sps:$4 sm:$0xff]  }
 0xa3b   :  { %5241 = vpow2.f32 %v4328_v43 }
 0xa3c   :  { %5243 = vtanh.f32 %v3185_v60 }
 0xa44   :  { %v5240_v50 = vpop.eup %5239 }
 0xa45   :  { %v3192_v15 = vadd.f32 1.0, %v5240_v50  ;;  %v5242_v59 = vpop.eup %5241  ;;  %v5688_v50 = vmov 4  }
 0xa46   :  { %v3198_v46 = vadd.f32 1.0, %v5242_v59  ;;  %v5244_v0 = vpop.eup %5243  ;;  %4824 = vset.pattern.permute.xlu1 %v5688_v50  ;;  %4825 = vset.pattern.permute.xlu0 %v5688_v50  ;;  %v5543_v50 = vld [vmem:[#allocation9 + $0x164] ss:$28 sps:$4 sm:$0xff]  }
 0xa47   :  { %5245 = vrcp.f32 %v3192_v15  ;;  %v5528_v15 = vld [vmem:[%s7500_s1 + $0x10] sm:$0xff] }
 0xa48   :  { %5247 = vrcp.f32 %v3198_v46  ;;  %v4790_v59 = vtrunc.f32 %v5528_v15  ;;  %v5545_v15 = vld [vmem:[#allocation9 + $0x19c] ss:$28 sps:$4 sm:$0xff]  }
 0xa51   :  { %v5246_v48 = vpop.eup %5245 }
 0xa52   :  { %v3229_v18 = vmul.f32 %v5246_v48, %v5244_v0  ;;  %v5248_v35 = vpop.eup %5247  ;;  %v4787_v48 = vcvt.f32.s32 %v4786_v36  ;;  %v5535_v36 = vld [vmem:[#allocation9 + $0x84] ss:$28 sps:$4 sm:$0xff]  }
 0xa53   :  { %v3228_v2 = vmul.f32 %v5248_v35, %v7063_v8  ;;  %v4329_v35 = vmul.f32 -1.442695, %v7124_v14 }
 0xa54   :  { %3927 = vperm.xlu1 %4824, %v4787_v48   ;;  %v4999_v48 = vld [vmem:[%s7504_s5 + $0x30] sm:$0xff]  }
 0xa55   :  { %v3135_v20 = vpop.f32.mrb[80].mxu0  ;;  %v3176_v33 = vpop.f32.mrb[120].mxu1  ;;  %v7134_v62 = vadd.f32 %v3229_v18, %v3228_v2  ;;  %v4789_v18 = vcvt.f32.s32 %v4788_v42  ;;  %v5530_v2 = vld [vmem:[%s7500_s1 + $0x18] sm:$0xff] }
 0xa56   :  { %v3186_v39 = vadd.f32 %v3135_v20, %v726_v13  ;;  %v3188_v55 = vadd.f32 %v3176_v33, %v800_v12  ;;  %v3137_v1 = vpop.f32.mrb[81].mxu0  ;;  %v4691_v45 = vpop.f32.mrb[121].mxu1  ;;  %v4791_v12 = vcvt.f32.s32 %v4790_v59  ;;  %v4792_v63 = vtrunc.f32 %v5530_v2  ;;  %v7782_v20 = vld [vmem:[#allocation18_spill] sm:$0xff]  ;;  %v4996_v59 = vld [vmem:[%s7504_s5 + $0x18] sm:$0xff]  }
 0xa57   :  { %v3187_v31 = vadd.f32 %v3137_v1, %v728_v28  ;;  %v3139_v57 = vpop.f32.mrb[82].mxu0  ;;  %v3179_v17 = vpop.f32.mrb[122].mxu1  ;;  %3930 = vperm.xlu0 %4825, %v4789_v18   ;;  %v5539_v42 = vld [vmem:[#allocation9 + $0xf4] ss:$28 sps:$4 sm:$0xff]  }
 0xa58   :  { %v4330_v25 = vmul.f32 -1.442695, %v3186_v39  ;;  %v3221_v26 = vmin.f32 %v3188_v55, 20.0  ;;  %v3140_v16 = vpop.f32.mrb[83].mxu0  ;;  %v4692_v7 = vpop.f32.mrb[123].mxu1  ;;  %vm3220_vm8 = vcmp.gt.f32.partialorder %v3188_v55, 20.0  ;;  %3933 = vperm.xlu1 %4824, %v4791_v12   ;;  %v4793_v14 = vcvt.f32.s32 %v4792_v63 }
 0xa59   :  { %v4331_v32 = vmul.f32 -1.442695, %v3187_v31  ;;  %v5000_v18 = vld [vmem:[%s7504_s5 + $0x38] sm:$0xff]  }
 0xa5a   :  { %5249 = vpow2.f32 %v4330_v25  ;;  %v3222_v8 = vmul.f32 1.442695, %v3221_v26 }
 0xa5b   :  { %5251 = vpow2.f32 %v4331_v32 }
 0xa5c   :  { %5253 = vpow2.f32 %v3222_v8  ;;  %3936 = vperm.xlu1 %4824, %v4793_v14  }
 0xa64   :  { %v5250_v9 = vpop.eup %5249 }
 0xa65   :  { %v5252_v58 = vpop.eup %5251  ;;  %v3211_v22 = vadd.f32 1.0, %v5250_v9 }
 0xa66   :  { %v5254_v37 = vpop.eup %5253  ;;  %v3217_v49 = vadd.f32 1.0, %v5252_v58 }
 0xa67   :  { %5255 = vrcp.f32 %v3211_v22  ;;  %v3224_v29 = vadd.f32 1.0, %v5254_v37 }
 0xa68   :  { %5257 = vrcp.f32 %v3217_v49 }
 0xa69   :  { %5259 = vlog2.f32 %v3224_v29 }
 0xa6a   :  { %5261 = vpow2.f32 %v4329_v35  ;;  %v3520_v35 = vld [vmem:[#allocation3] sm:$0xff] }
 0xa71   :  { %v5256_v23 = vpop.eup %5255 }
 0xa72   :  { %v5258_v4 = vpop.eup %5257  ;;  %v3232_v51 = vmul.f32 %v5256_v23, %v5244_v0 }
 0xa73   :  { %v5260_v60 = vpop.eup %5259  ;;  %v3231_v56 = vmul.f32 %v5258_v4, %v7057_v3  ;;  %v5529_v3 = vld [vmem:[%s7500_s1 + $0x20] sm:$0xff] }
 0xa74   :  { %v3226_v43 = vmul.f32 0.6931472, %v5260_v60  ;;  %v4794_v46 = vtrunc.f32 %v5529_v3  ;;  %v5262_v17 = vpop.eup %5261  ;;  %v5532_v60 = vld [vmem:[#allocation9 + $0x10] ss:$28 sps:$4 sm:$0xff]   ;;  %v4997_v3 = vld [vmem:[%s7504_s5 + $0x20] sm:$0xff]  }
 0xa75   :  { %v7149_v0 = vadd.f32 %v3232_v51, %v3231_v56  ;;  %v3204_v16 = vadd.f32 1.0, %v5262_v17  ;;  %v5533_v56 = vld [vmem:[#allocation9 + $0x4c] ss:$28 sps:$4 sm:$0xff]  }
 0xa76   :  { %v3227_v13 = vsel %vm3220_vm8, %v3188_v55, %v3226_v43  ;;  %v4795_v28 = vcvt.f32.s32 %v4794_v46  ;;  %v5531_v55 = vld [vmem:[%s7500_s1 + $0x28] sm:$0xff]  ;;  %v5541_v43 = vld [vmem:[#allocation9 + $0x12c] ss:$28 sps:$4 sm:$0xff]  }
 0xa77   :  { %v3235_v44 = vsub.f32 0.0, %v3227_v13  ;;  %v4796_v31 = vtrunc.f32 %v5531_v55  ;;  %v3234_v25 = vsub.f32 %v7134_v62, %v7149_v0  ;;  %v4998_v46 = vld [vmem:[%s7504_s5 + $0x28] sm:$0xff]   ;;  %v3522_v13 = vld [vmem:[#allocation3 + $0x10] sm:$0xff] }
 0xa78   :  { %3939 = vperm.xlu0 %4825, %v4795_v28   ;;  %v7233_v28 = vld [vmem:[%s7500_s1 + $0x38] sm:$0xff] }
 0xa79   :  { %v3241_v33 = vmul.f32 %v7782_v20, %v3235_v44  ;;  %v3252_v39 = vmul.f32 %v3250_v10, %v3235_v44  ;;  %v4797_v57 = vcvt.f32.s32 %v4796_v31  ;;  %v3521_v10 = vld [vmem:[#allocation3 + $0x8] sm:$0xff]  ;;  %v7227_v44 = vld [vmem:[%s7500_s1 + $0x30] sm:$0xff]  ;;  %v4800_v20 = vtrunc.f32 %v7233_v28 }
 0xa7a   :  { %v4798_v12 = vtrunc.f32 %v7227_v44 }
 0xa7b   :  { %v3242_v1 = vmul.f32 1.442695, %v3241_v33  ;;  %v3253_v45 = vmul.f32 1.442695, %v3252_v39  ;;  %3942 = vperm.xlu1 %4824, %v4797_v57   ;;  %v4801_v33 = vcvt.f32.s32 %v4800_v20  ;;  %v7784_v57 = vld [vmem:[#allocation48_spill] sm:$0xff] }
 0xa7c   :  { %v4799_v63 = vcvt.f32.s32 %v4798_v12 }
 0xa7d   :  { %5263 = vpow2.f32 %v3242_v1 }
 0xa7e   :  { %5265 = vpow2.f32 %v3253_v45  ;;  %3945 = vperm.xlu0 %4825, %v4799_v63   ;;  %v7783_v45 = vld [vmem:[#allocation47_spill] sm:$0xff] }
 0xa7f   :  { %5267 = vrcp.f32 %v3204_v16  ;;  %3948 = vperm.xlu1 %4824, %v4801_v33  }
 0xa87   :  { %v5264_v26 = vpop.eup %5263 }
 0xa88   :  { %v5266_v7 = vpop.eup %5265  ;;  %v3244_v32 = vmul.f32 %v5264_v26, %v3234_v25 }
 0xa89   :  { %v3255_v8 = vmul.f32 %v5266_v7, %v3234_v25  ;;  %v5268_v22 = vpop.eup %5267 }
 0xa8a   :  { %v7162_v9 = vadd.f32 %v3244_v32, %v7149_v0 }
 0xa8b   :  { %v3256_v58 = vadd.f32 %v3255_v8, %v7149_v0 }
 0xa8c   :  { %5269 = vtanh.f32 %v7162_v9 }
 0xa8d   :  { %5271 = vtanh.f32 %v3256_v58 }
 0xa96   :  { %v5270_v37 = vpop.eup %5269 }
 0xa97   :  { %v5272_v49 = vpop.eup %5271  ;;  %v3247_v29 = vmul.f32 %v5270_v37, %v5268_v22 }
 0xa98   :  { %v3258_v23 = vmul.f32 %v5272_v49, %v5268_v22  ;;  %v7244_v22 = vld [vmem:[%s7500_s1 + $0x40] sm:$0xff] }
 0xa99   :  { %v3259_v62 = vpack.c.bf16 %v3247_v29, %v3247_v29  ;;  %v4802_v37 = vtrunc.f32 %v7244_v22 }
 0xa9a   :  { %v3264_v4 = vpack.c.bf16 %v3258_v23, %v3258_v23 }
 0xa9b   :  { %v3261_v51 = vrot.slane %v3259_v62, 4  ;;  %3306 = vmatmul.mubr.bf16.vlgmr.msra.gmra.mrb[84].mxu0 %v3259_v62  ;;  %3347 = vmatmul.mubr.bf16.vlgmr.msra.gmra.mrb[36].mxu1 %v3259_v62  ;;  %v4803_v23 = vcvt.f32.s32 %v4802_v37 }
 0xa9c   :  { %3265 = vst [vmem:[#allocation3 + $0x40] sm:$0xf] %v3264_v4  ;;  %3356 = vmatpush1.bf16.msra.mxu0 %v5532_v60  ;;  %4694 = vmatpush3.bf16.msra.mxu1 %v6957_v40  ;;  %v5537_v40 = vld [vmem:[#allocation9 + $0xbc] ss:$28 sps:$4 sm:$0xff]  }
 0xa9d   :  { %3263 = vst [vmem:[#allocation3 + $0x18] sm:$0xf0] %v3261_v51  ;;  %3357 = vmatprep.subr.bf16.mxu0 %v5533_v56  ;;  %4695 = vmatprep.subr.bf16.mxu1 %v7635_v30 }
 0xa9e   :  { %3387 = vmatprep.mubr.bf16.mxu0 %v7636_v24  ;;  %4709 = vmatprep.mubr.msk.bf16.mxu1 %vm5686_vm0, %v7635_v30  ;;  %v5538_v24 = vld [vmem:[#allocation9 + $0xb8] ss:$28 sps:$4 sm:$0xff]  }
 0xa9f   :  { %3951 = vperm.xlu1 %4824, %v4803_v23  }
 0xaa0   :  { %3358 = vmatpush1.bf16.msra.mxu0 %v5534_v61  ;;  %4696 = vmatpush3.bf16.msra.mxu1 %v6966_v52  ;;  %v5540_v52 = vld [vmem:[#allocation9 + $0xf0] ss:$28 sps:$4 sm:$0xff]  }
 0xaa1   :  { %3359 = vmatprep.subr.bf16.mxu0 %v5535_v36  ;;  %4697 = vmatprep.subr.bf16.mxu1 %v7635_v30 }
 0xaa4   :  { %3360 = vmatpush1.bf16.msra.mxu0 %v5536_v21  ;;  %4698 = vmatpush3.bf16.msra.mxu1 %v6972_v19  ;;  %v5542_v19 = vld [vmem:[#allocation9 + $0x128] ss:$28 sps:$4 sm:$0xff]   ;;  %v3523_v2 = vld [vmem:[#allocation3 + $0x18] sm:$0xff] }
 0xaa5   :  { %3361 = vmatprep.subr.bf16.mxu0 %v5537_v40  ;;  %4699 = vmatprep.subr.bf16.mxu1 %v7635_v30 }
 0xaa8   :  { %3362 = vmatpush1.bf16.msra.mxu0 %v5538_v24  ;;  %4700 = vmatpush3.bf16.msra.mxu1 %v6978_v41  ;;  %v5544_v41 = vld [vmem:[#allocation9 + $0x160] ss:$28 sps:$4 sm:$0xff]  }
 0xaa9   :  { %3363 = vmatprep.subr.bf16.mxu0 %v5539_v42  ;;  %4701 = vmatprep.subr.bf16.mxu1 %v7635_v30 }
 0xaac   :  { %3364 = vmatpush1.bf16.msra.mxu0 %v5540_v52  ;;  %4702 = vmatpush3.bf16.msra.mxu1 %v6984_v47  ;;  %v5546_v47 = vld [vmem:[#allocation9 + $0x198] ss:$28 sps:$4 sm:$0xff]  }
 0xaad   :  { %3365 = vmatprep.subr.bf16.mxu0 %v5541_v43  ;;  %4703 = vmatprep.subr.bf16.mxu1 %v7635_v30 }
 0xab0   :  { %3366 = vmatpush1.bf16.msra.mxu0 %v5542_v19  ;;  %4704 = vmatpush3.bf16.msra.mxu1 %v6990_v38  ;;  %v4993_v38 = vld [vmem:[%s7504_s5] sm:$0xff]  }
 0xab1   :  { %3367 = vmatprep.subr.bf16.mxu0 %v5543_v50  ;;  %4705 = vmatprep.subr.bf16.mxu1 %v7635_v30 }
 0xab4   :  { %3368 = vmatpush1.bf16.msra.mxu0 %v5544_v41  ;;  %4706 = vmatpush3.bf16.msra.mxu1 %v6996_v54  ;;  %v4994_v54 = vld [vmem:[%s7504_s5 + $0x8] sm:$0xff]  }
 0xab5   :  { %3369 = vmatprep.subr.bf16.mxu0 %v5545_v15  ;;  %4707 = vmatprep.subr.bf16.mxu1 %v7635_v30 }
 0xab8   :  { %3370 = vmatpush1.bf16.msra.mxu0 %v5546_v47  ;;  %4708 = vmatpush3.bf16.msra.mxu1 %v7002_v34  ;;  %v4995_v34 = vld [vmem:[%s7504_s5 + $0x10] sm:$0xff]  }
 0xab9   :  { %4713 = vmatprep.subr.bf16.mxu0 %v7635_v30 }
 0xabb   :  { %3388 = vmatmul.mubr.bf16.vlgmr.msra.gmra.mrb[16].mxu0 %v3259_v62  ;;  %4710 = vmatmul.mubr.bf16.vlgmr.msra.gmra.mrb[56].mxu1 %v3259_v62 }
 0xabc   :  { %4714 = vmatpush3.bf16.msra.mxu0 %v4993_v38  ;;  %4729 = vmatprep.mubr.msk.bf16.mxu0 %vm5686_vm0, %v7635_v30 }
 0xabd   :  { %4715 = vmatprep.subr.bf16.mxu0 %v7635_v30 }
 0xac0   :  { %4716 = vmatpush3.bf16.msra.mxu0 %v4994_v54 }
 0xac1   :  { %4717 = vmatprep.subr.bf16.mxu0 %v7635_v30 }
 0xac4   :  { %4718 = vmatpush3.bf16.msra.mxu0 %v4995_v34 }
 0xac5   :  { %4719 = vmatprep.subr.bf16.mxu0 %v7635_v30 }
 0xac8   :  { %4720 = vmatpush3.bf16.msra.mxu0 %v4996_v59 }
 0xac9   :  { %4721 = vmatprep.subr.bf16.mxu0 %v7635_v30 }
 0xacc   :  { %4722 = vmatpush3.bf16.msra.mxu0 %v4997_v3 }
 0xacd   :  { %4723 = vmatprep.subr.bf16.mxu0 %v7635_v30 }
 0xad0   :  { %4724 = vmatpush3.bf16.msra.mxu0 %v4998_v46 }
 0xad1   :  { %4725 = vmatprep.subr.bf16.mxu0 %v7635_v30 }
 0xad4   :  { %4726 = vmatpush3.bf16.msra.mxu0 %v4999_v48 }
 0xad5   :  { %4727 = vmatprep.subr.bf16.mxu0 %v7635_v30 }
 0xad8   :  { %4728 = vmatpush3.bf16.msra.mxu0 %v5000_v18 }
 0xadb   :  { %4730 = vmatmul.mubr.bf16.vlgmr.msra.gmra.mrb[88].mxu0 %v3520_v35 }
 0xadc   :  { %4733 = vmatprep.mubr.msk.bf16.mxu0 %vm5686_vm0, %v7635_v30 }
 0xae3   :  { %4734 = vmatmul.mubr.bf16.gmra.mrb[92].mxu0 %v3521_v10 }
 0xae4   :  { %4737 = vmatprep.mubr.msk.bf16.mxu0 %vm5686_vm0, %v7635_v30 }
 0xaeb   :  { %4738 = vmatmul.mubr.bf16.gmra.mrb[96].mxu0 %v3522_v13 }
 0xaec   :  { %4741 = vmatprep.mubr.msk.bf16.mxu0 %vm5686_vm0, %v7635_v30 }
 0xaf3   :  { %4742 = vmatmul.mubr.bf16.gmra.mrb[100].mxu0 %v3523_v2 }
 0xaf4   :  { %4745 = vmatprep.mubr.msk.bf16.mxu0 %vm5686_vm0, %v7635_v30 }
 0xb6e   :  { %v3307_v39 = vpop.f32.mrb[84].mxu0  ;;  %v3348_v1 = vpop.f32.mrb[36].mxu1 }
 0xb6f   :  { %v3436_v14 = vadd.f32 %v3307_v39, %v7783_v45  ;;  %v3309_v55 = vpop.f32.mrb[85].mxu0  ;;  %v3350_v31 = vpop.f32.mrb[37].mxu1  ;;  %v4769_v35 = vadd.f32 %v3348_v1, %v7771_v6 }
 0xb70   :  { %v3437_v17 = vadd.f32 %v3309_v55, %v7784_v57  ;;  %v3311_v25 = vpop.f32.mrb[86].mxu0  ;;  %v3352_v26 = vpop.f32.mrb[38].mxu1  ;;  %v4770_v58 = vadd.f32 %v3350_v31, %v7773_v53 }
 0xb71   :  { %v4332_v16 = vmul.f32 -1.442695, %v3436_v14  ;;  %v3312_v7 = vpop.f32.mrb[87].mxu0  ;;  %v3353_v32 = vpop.f32.mrb[39].mxu1  ;;  %v4334_v33 = vmul.f32 -1.442695, %v4769_v35 }
 0xb72   :  { %v4333_v8 = vmul.f32 -1.442695, %v3437_v17  ;;  %v3504_v45 = vpop.permute.xlu1 %3503  ;;  %v7785_v25 = vld [vmem:[#allocation51_spill] sm:$0xff] }
 0xb73   :  { %5273 = vpow2.f32 %v4332_v16 }
 0xb74   :  { %5275 = vpow2.f32 %v4333_v8 }
 0xb75   :  { %5277 = vtanh.f32 %v4770_v58 }
 0xb7d   :  { %v5274_v49 = vpop.eup %5273 }
 0xb7e   :  { %v3446_v29 = vadd.f32 1.0, %v5274_v49  ;;  %v5276_v62 = vpop.eup %5275 }
 0xb7f   :  { %v3452_v4 = vadd.f32 1.0, %v5276_v62  ;;  %v5278_v51 = vpop.eup %5277 }
 0xb80   :  { %5279 = vrcp.f32 %v3446_v29 }
 0xb81   :  { %5281 = vrcp.f32 %v3452_v4 }
 0xb8a   :  { %v5280_v60 = vpop.eup %5279 }
 0xb8b   :  { %v3483_v56 = vmul.f32 %v5280_v60, %v5278_v51  ;;  %v5282_v53 = vpop.eup %5281 }
 0xb8c   :  { %v3482_v61 = vmul.f32 %v5282_v53, %v7162_v9 }
 0xb8e   :  { %v3389_v36 = vpop.f32.mrb[16].mxu0  ;;  %v3430_v21 = vpop.f32.mrb[56].mxu1  ;;  %v3484_v40 = vadd.f32 %v3483_v56, %v3482_v61 }
 0xb8f   :  { %v4771_v24 = vadd.f32 %v3389_v36, %v7777_v5  ;;  %v4773_v42 = vadd.f32 %v3430_v21, %v7697_v11  ;;  %v3391_v52 = vpop.f32.mrb[17].mxu0  ;;  %v4711_v43 = vpop.f32.mrb[57].mxu1 }
 0xb90   :  { %v4772_v19 = vadd.f32 %v3391_v52, %v7780_v27  ;;  %v3393_v50 = vpop.f32.mrb[18].mxu0  ;;  %v3433_v41 = vpop.f32.mrb[58].mxu1 }
 0xb91   :  { %v4335_v15 = vmul.f32 -1.442695, %v4771_v24  ;;  %v3475_v47 = vmin.f32 %v4773_v42, 20.0  ;;  %v3394_v38 = vpop.f32.mrb[19].mxu0  ;;  %v4712_v54 = vpop.f32.mrb[59].mxu1  ;;  %vm3474_vm9 = vcmp.gt.f32.partialorder %v4773_v42, 20.0 }
 0xb92   :  { %v4336_v34 = vmul.f32 -1.442695, %v4772_v19  ;;  %v3525_v54 = vld [vmem:[#allocation3 + $0x28] sm:$0xff] }
 0xb93   :  { %5283 = vpow2.f32 %v4335_v15  ;;  %v3476_v9 = vmul.f32 1.442695, %v3475_v47 }
 0xb94   :  { %5285 = vpow2.f32 %v4336_v34  ;;  %v3526_v34 = vld [vmem:[#allocation3 + $0x30] sm:$0xff] }
 0xb95   :  { %5287 = vpow2.f32 %v3476_v9  ;;  %v3527_v9 = vld [vmem:[#allocation3 + $0x38] sm:$0xff] }
 0xb9d   :  { %v5284_v59 = vpop.eup %5283 }
 0xb9e   :  { %v5286_v3 = vpop.eup %5285  ;;  %v3465_v5 = vadd.f32 1.0, %v5284_v59 }
 0xb9f   :  { %v5288_v46 = vpop.eup %5287  ;;  %v3471_v11 = vadd.f32 1.0, %v5286_v3 }
 0xba0   :  { %5289 = vrcp.f32 %v3465_v5  ;;  %v3478_v48 = vadd.f32 1.0, %v5288_v46 }
 0xba1   :  { %5291 = vrcp.f32 %v3471_v11 }
 0xba2   :  { %5293 = vlog2.f32 %v3478_v48 }
 0xba3   :  { %5295 = vpow2.f32 %v4334_v33 }
 0xbaa   :  { %v5290_v27 = vpop.eup %5289 }
 0xbab   :  { %v5292_v18 = vpop.eup %5291  ;;  %v3486_v10 = vmul.f32 %v5290_v27, %v5278_v51 }
 0xbac   :  { %v5294_v13 = vpop.eup %5293  ;;  %v3485_v12 = vmul.f32 %v5292_v18, %v7149_v0 }
 0xbad   :  { %v3480_v2 = vmul.f32 0.6931472, %v5294_v13  ;;  %v5296_v58 = vpop.eup %5295 }
 0xbae   :  { %v3487_v63 = vadd.f32 %v3486_v10, %v3485_v12  ;;  %v7253_v20 = vpop.f32.mrb[88].mxu0  ;;  %v3458_v23 = vadd.f32 1.0, %v5296_v58 }
 0xbaf   :  { %v4731_v39 = vpop.f32.mrb[89].mxu0  ;;  %v3481_v14 = vsel %vm3474_vm9, %v4773_v42, %v3480_v2  ;;  %v3716_v3 = vmin.f32 %v7253_v20, 20.0  ;;  %vm3698_vm10 = vcmp.gt.f32.partialorder %v7253_v20, 20.0 }
 0xbb0   :  { %v7255_v55 = vpop.f32.mrb[90].mxu0  ;;  %v3488_v31 = vsub.f32 %v3484_v40, %v3487_v63  ;;  %v3489_v57 = vsub.f32 0.0, %v3481_v14 }
 0xbb1   :  { %v4732_v17 = vpop.f32.mrb[91].mxu0  ;;  %v3734_v5 = vmul.f32 1.442695, %v3716_v3  ;;  %v3717_v27 = vmin.f32 %v7255_v55, 20.0  ;;  %vm3699_vm2 = vcmp.gt.f32.partialorder %v7255_v55, 20.0 }
 0xbb2   :  { %v3495_v6 = vmul.f32 %v7785_v25, %v3489_v57  ;;  %v3506_v1 = vmul.f32 %v3504_v45, %v3489_v57 }
 0xbb4   :  { %v3496_v26 = vmul.f32 1.442695, %v3495_v6  ;;  %v3507_v0 = vmul.f32 1.442695, %v3506_v1 }
 0xbb6   :  { %5297 = vpow2.f32 %v3496_v26  ;;  %v7258_v16 = vpop.f32.mrb[92].mxu0 }
 0xbb7   :  { %5299 = vpow2.f32 %v3507_v0  ;;  %v4735_v7 = vpop.f32.mrb[93].mxu0  ;;  %v3718_v46 = vmin.f32 %v7258_v16, 20.0  ;;  %vm3700_vm12 = vcmp.gt.f32.partialorder %v7258_v16, 20.0 }
 0xbb8   :  { %v7260_v32 = vpop.f32.mrb[94].mxu0  ;;  %5301 = vrcp.f32 %v3458_v23 }
 0xbb9   :  { %v4736_v8 = vpop.f32.mrb[95].mxu0  ;;  %v3738_v48 = vmul.f32 1.442695, %v3718_v46  ;;  %v3719_v57 = vmin.f32 %v7260_v32, 20.0  ;;  %vm3701_vm6 = vcmp.gt.f32.partialorder %v7260_v32, 20.0 }
 0xbbb   :  { %v3740_v0 = vmul.f32 1.442695, %v3719_v57 }
 0xbbe   :  { %v7262_v37 = vpop.f32.mrb[96].mxu0 }
 0xbbf   :  { %v4739_v49 = vpop.f32.mrb[97].mxu0  ;;  %v3720_v11 = vmin.f32 %v7262_v37, 20.0  ;;  %vm3702_vm14 = vcmp.gt.f32.partialorder %v7262_v37, 20.0 }
 0xbc0   :  { %v5298_v29 = vpop.eup %5297  ;;  %v7264_v62 = vpop.f32.mrb[98].mxu0 }
 0xbc1   :  { %v5300_v4 = vpop.eup %5299  ;;  %v3498_v51 = vmul.f32 %v5298_v29, %v3488_v31  ;;  %v4740_v60 = vpop.f32.mrb[99].mxu0  ;;  %v3742_v18 = vmul.f32 1.442695, %v3720_v11  ;;  %v3721_v7 = vmin.f32 %v7264_v62, 20.0  ;;  %vm3703_vm8 = vcmp.gt.f32.partialorder %v7264_v62, 20.0 }
 0xbc2   :  { %v3509_v56 = vmul.f32 %v5300_v4, %v3488_v31  ;;  %v5302_v42 = vpop.eup %5301 }
 0xbc3   :  { %v3499_v53 = vadd.f32 %v3498_v51, %v3487_v63  ;;  %v3744_v60 = vmul.f32 1.442695, %v3721_v7 }
 0xbc4   :  { %v3510_v61 = vadd.f32 %v3509_v56, %v3487_v63 }
 0xbc5   :  { %5303 = vtanh.f32 %v3499_v53 }
 0xbc6   :  { %5305 = vtanh.f32 %v3510_v61  ;;  %v7266_v36 = vpop.f32.mrb[100].mxu0 }
 0xbc7   :  { %v4743_v21 = vpop.f32.mrb[101].mxu0  ;;  %5307 = vpow2.f32 %v3734_v5  ;;  %v3722_v35 = vmin.f32 %v7266_v36, 20.0  ;;  %vm3704_vm15 = vcmp.gt.f32.partialorder %v7266_v36, 20.0 }
 0xbc8   :  { %v7268_v40 = vpop.f32.mrb[102].mxu0  ;;  %5309 = vpow2.f32 %v3738_v48 }
 0xbc9   :  { %v4744_v24 = vpop.f32.mrb[103].mxu0  ;;  %5311 = vpow2.f32 %v3742_v18  ;;  %v3746_v2 = vmul.f32 1.442695, %v3722_v35 }
 0xbcf   :  { %v5304_v52 = vpop.eup %5303 }
 0xbd0   :  { %v5306_v43 = vpop.eup %5305  ;;  %v3501_v19 = vmul.f32 %v5304_v52, %v5302_v42 }
 0xbd1   :  { %v3512_v50 = vmul.f32 %v5306_v43, %v5302_v42  ;;  %v5308_v12 = vpop.eup %5307  ;;  %v3723_v42 = vmin.f32 %v7268_v40, 20.0 }
 0xbd2   :  { %v3513_v41 = vpack.c.bf16 %v3501_v19, %v3501_v19  ;;  %v3770_v14 = vadd.f32 1.0, %v5308_v12  ;;  %v5310_v6 = vpop.eup %5309 }
 0xbd3   :  { %v3515_v15 = vpack.c.bf16 %v3512_v50, %v3512_v50  ;;  %v5312_v23 = vpop.eup %5311  ;;  %v3772_v4 = vadd.f32 1.0, %v5310_v6  ;;  %v7786_v6 = vlaneseq }
 0xbd4   :  { %3514 = vst [vmem:[#allocation3 + $0x20] sm:$0xf] %v3513_v41  ;;  %v3774_v53 = vadd.f32 1.0, %v5312_v23 }
 0xbd5   :  { %v3517_v47 = vrot.slane %v3515_v15, 4 }
 0xbd7   :  { %3519 = vst [vmem:[#allocation3 + $0x40] sm:$0xf0] %v3517_v47 }
 0xbdb   :  { %v3524_v38 = vld [vmem:[#allocation3 + $0x20] sm:$0xff] }
 0xbdc   :  { %4746 = vmatmul.mubr.bf16.gmra.mrb[104].mxu0 %v3524_v38 }
 0xbdd   :  { %4749 = vmatprep.mubr.msk.bf16.mxu0 %vm5686_vm0, %v7635_v30 }
 0xbde   :  { %v3528_v59 = vld [vmem:[#allocation3 + $0x40] sm:$0xff] }
 0xbe4   :  { %4750 = vmatmul.mubr.bf16.gmra.mrb[108].mxu0 %v3525_v54 }
 0xbe5   :  { %4753 = vmatprep.mubr.msk.bf16.mxu0 %vm5686_vm0, %v7635_v30 }
 0xbec   :  { %4754 = vmatmul.mubr.bf16.gmra.mrb[112].mxu0 %v3526_v34 }
 0xbed   :  { %4757 = vmatprep.mubr.msk.bf16.mxu0 %vm5686_vm0, %v7635_v30 }
 0xbf4   :  { %4758 = vmatmul.mubr.bf16.gmra.mrb[116].mxu0 %v3527_v9 }
 0xbf5   :  { %4761 = vmatprep.mubr.msk.bf16.mxu0 %vm5686_vm0, %v7635_v30  ;;  %v3736_v30 = vmul.f32 1.442695, %v3717_v27 }
 0xbf7   :  { %5313 = vpow2.f32 %v3736_v30 }
 0xbf8   :  { %5315 = vpow2.f32 %v3746_v2 }
 0xbfc   :  { %4762 = vmatmul.mubr.bf16.gmra.mrb[120].mxu0 %v3528_v59  ;;  %v3748_v59 = vmul.f32 1.442695, %v3723_v42 }
 0xc01   :  { %v5314_v56 = vpop.eup %5313 }
 0xc02   :  { %v5316_v61 = vpop.eup %5315  ;;  %v3771_v19 = vadd.f32 1.0, %v5314_v56 }
 0xc03   :  { %v3776_v9 = vadd.f32 1.0, %v5316_v61 }
 0xcaf   :  { %v7283_v10 = vpop.f32.mrb[104].mxu0 }
 0xcb0   :  { %v4747_v13 = vpop.f32.mrb[105].mxu0  ;;  %v3724_v63 = vmin.f32 %v7283_v10, 20.0  ;;  %vm3706_vm3 = vcmp.gt.f32.partialorder %v7283_v10, 20.0 }
 0xcb1   :  { %v7286_v33 = vpop.f32.mrb[106].mxu0 }
 0xcb2   :  { %v3725_v39 = vmin.f32 %v7286_v33, 20.0  ;;  %v4748_v45 = vpop.f32.mrb[107].mxu0  ;;  %v3750_v17 = vmul.f32 1.442695, %v3724_v63  ;;  %vm3707_vm13 = vcmp.gt.f32.partialorder %v7286_v33, 20.0 }
 0xcb4   :  { %v3752_v31 = vmul.f32 1.442695, %v3725_v39 }
 0xcb6   :  { %5317 = vpow2.f32 %v3752_v31 }
 0xcb7   :  { %v7290_v25 = vpop.f32.mrb[108].mxu0  ;;  %5319 = vlog2.f32 %v3770_v14 }
 0xcb8   :  { %v3726_v1 = vmin.f32 %v7290_v25, 20.0  ;;  %v4751_v26 = vpop.f32.mrb[109].mxu0  ;;  %5321 = vpow2.f32 %v3750_v17  ;;  %vm3708_vm0 = vcmp.gt.f32.partialorder %v7290_v25, 20.0 }
 0xcb9   :  { %v7294_v8 = vpop.f32.mrb[110].mxu0 }
 0xcba   :  { %v3754_v58 = vmul.f32 1.442695, %v3726_v1  ;;  %v3727_v49 = vmin.f32 %v7294_v8, 20.0  ;;  %v4752_v29 = vpop.f32.mrb[111].mxu0  ;;  %v7313_v1 = vand.u32 127, %v7786_v6  ;;  %vm3709_vm1 = vcmp.gt.f32.partialorder %v7294_v8, 20.0 }
 0xcbc   :  { %5323 = vpow2.f32 %v3754_v58  ;;  %v3756_v51 = vmul.f32 1.442695, %v3727_v49  ;;  %vm3989_vm11 = vcmp.lt.s32.totalorder %v7313_v1, 5 }
 0xcbd   :  { %5325 = vpow2.f32 %v3740_v0 }
 0xcbe   :  { %5327 = vpow2.f32 %v3756_v51 }
 0xcbf   :  { %5329 = vlog2.f32 %v3772_v4  ;;  %v7297_v21 = vpop.f32.mrb[112].mxu0 }
 0xcc0   :  { %v5318_v24 = vpop.eup %5317  ;;  %v3728_v52 = vmin.f32 %v7297_v21, 20.0  ;;  %v4755_v43 = vpop.f32.mrb[113].mxu0  ;;  %5331 = vpow2.f32 %v3744_v60  ;;  %vm3710_vm4 = vcmp.gt.f32.partialorder %v7297_v21, 20.0 }
 0xcc1   :  { %v3779_v50 = vadd.f32 1.0, %v5318_v24  ;;  %v7301_v41 = vpop.f32.mrb[114].mxu0  ;;  %v5320_v15 = vpop.eup %5319  ;;  %5333 = vlog2.f32 %v3774_v53 }
 0xcc2   :  { %v3758_v47 = vmul.f32 1.442695, %v3728_v52  ;;  %v3729_v38 = vmin.f32 %v7301_v41, 20.0  ;;  %v4756_v54 = vpop.f32.mrb[115].mxu0  ;;  %v5322_v34 = vpop.eup %5321  ;;  %v3789_v5 = vmul.f32 0.6931472, %v5320_v15 }
 0xcc3   :  { %5335 = vlog2.f32 %v3779_v50  ;;  %v3778_v11 = vadd.f32 1.0, %v5322_v34  ;;  %vm3711_vm5 = vcmp.gt.f32.partialorder %v7301_v41, 20.0 }
 0xcc4   :  { %5337 = vpow2.f32 %v3758_v47  ;;  %v3760_v3 = vmul.f32 1.442695, %v3729_v38  ;;  %v3824_v2 = vsel %vm3698_vm10, %v7253_v20, %v3789_v5 }
 0xcc5   :  { %5339 = vlog2.f32 %v3771_v19  ;;  %v3899_v0 = vadd.f32 2.220446e-16, %v3824_v2 }
 0xcc6   :  { %v5324_v46 = vpop.eup %5323  ;;  %5341 = vpow2.f32 %v3760_v3 }
 0xcc7   :  { %v5326_v48 = vpop.eup %5325  ;;  %5343 = vlog2.f32 %v3776_v9  ;;  %v3780_v27 = vadd.f32 1.0, %v5324_v46  ;;  %v7304_v18 = vpop.f32.mrb[116].mxu0 }
 0xcc8   :  { %v5328_v35 = vpop.eup %5327  ;;  %5345 = vpow2.f32 %v3748_v59  ;;  %v3730_v30 = vmin.f32 %v7304_v18, 20.0  ;;  %v4759_v13 = vpop.f32.mrb[117].mxu0  ;;  %v3773_v17 = vadd.f32 1.0, %v5326_v48  ;;  %vm3712_vm10 = vcmp.gt.f32.partialorder %v7304_v18, 20.0 }
 0xcc9   :  { %v5330_v12 = vpop.eup %5329  ;;  %5347 = vlog2.f32 %v3780_v27  ;;  %v3781_v63 = vadd.f32 1.0, %v5328_v35  ;;  %v7309_v39 = vpop.f32.mrb[118].mxu0 }
 0xcca   :  { %5349 = vlog2.f32 %v3778_v11  ;;  %v3762_v45 = vmul.f32 1.442695, %v3730_v30  ;;  %v3731_v14 = vmin.f32 %v7309_v39, 20.0  ;;  %v4760_v31 = vpop.f32.mrb[119].mxu0  ;;  %v5332_v57 = vpop.eup %5331  ;;  %v3793_v7 = vmul.f32 0.6931472, %v5330_v12 }
 0xccb   :  { %5351 = vlog2.f32 %v3781_v63  ;;  %v5334_v26 = vpop.eup %5333  ;;  %v3775_v43 = vadd.f32 1.0, %v5332_v57 }
 0xccc   :  { %5353 = vpow2.f32 %v3762_v45  ;;  %v3764_v20 = vmul.f32 1.442695, %v3731_v14  ;;  %v3826_v56 = vsel %vm3700_vm12, %v7258_v16, %v3793_v7  ;;  %v3797_v52 = vmul.f32 0.6931472, %v5334_v26 }
 0xccd   :  { %v5336_v58 = vpop.eup %5335  ;;  %v3901_v9 = vadd.f32 2.220446e-16, %v3826_v56  ;;  %vm3713_vm12 = vcmp.gt.f32.partialorder %v7309_v39, 20.0 }
 0xcce   :  { %v5338_v49 = vpop.eup %5337  ;;  %5355 = vpow2.f32 %v3764_v20  ;;  %v3807_v29 = vmul.f32 0.6931472, %v5336_v58  ;;  %v3828_v48 = vsel %vm3702_vm14, %v7262_v37, %v3797_v52 }
 0xccf   :  { %v5340_v23 = vpop.eup %5339  ;;  %5357 = vlog2.f32 %v3773_v17  ;;  %v3782_v4 = vadd.f32 1.0, %v5338_v49  ;;  %v7318_v51 = vpop.f32.mrb[120].mxu0  ;;  %v3903_v14 = vadd.f32 2.220446e-16, %v3828_v48 }
 0xcd0   :  { %v5342_v60 = vpop.eup %5341  ;;  %5359 = vlog2.f32 %v3899_v0  ;;  %v3732_v53 = vmin.f32 %v7318_v51, 20.0  ;;  %v4763_v61 = vpop.f32.mrb[121].mxu0  ;;  %v3833_v24 = vsel %vm3707_vm13, %v7286_v33, %v3807_v29  ;;  %v3791_v11 = vmul.f32 0.6931472, %v5340_v23 }
 0xcd1   :  { %v5344_v42 = vpop.eup %5343  ;;  %v3783_v19 = vadd.f32 1.0, %v5342_v60  ;;  %v7323_v50 = vpop.f32.mrb[122].mxu0  ;;  %v3990_v15 = vsel %vm3989_vm11, %v3833_v24, 0.0  ;;  %5361 = vlog2.f32 %v3782_v4  ;;  %vm3705_vm13 = vcmp.gt.f32.partialorder %v7268_v40, 20.0 }
 0xcd2   :  { %v5346_v47 = vpop.eup %5345  ;;  %v3766_v38 = vmul.f32 1.442695, %v3732_v53  ;;  %v3733_v54 = vmin.f32 %v7323_v50, 20.0  ;;  %3999 = vadd.xlane.f32.xlu0 %v3990_v15  ;;  %v4764_v16 = vpop.f32.mrb[123].mxu0  ;;  %v3801_v59 = vmul.f32 0.6931472, %v5344_v42  ;;  %v3825_v0 = vsel %vm3699_vm2, %v7255_v55, %v3791_v11 }
 0xcd3   :  { %v5348_v34 = vpop.eup %5347  ;;  %5363 = vlog2.f32 %v3783_v19  ;;  %v3777_v35 = vadd.f32 1.0, %v5346_v47  ;;  %v3900_v4 = vadd.f32 2.220446e-16, %v3825_v0 }
 0xcd4   :  { %v5350_v33 = vpop.eup %5349  ;;  %5365 = vpow2.f32 %v3766_v38  ;;  %v3768_v3 = vmul.f32 1.442695, %v3733_v54  ;;  %v3809_v5 = vmul.f32 0.6931472, %v5348_v34  ;;  %v3830_v37 = vsel %vm3704_vm15, %v7266_v36, %v3801_v59 }
 0xcd5   :  { %v5352_v46 = vpop.eup %5351  ;;  %5367 = vlog2.f32 %v3775_v43  ;;  %v3805_v17 = vmul.f32 0.6931472, %v5350_v33  ;;  %v3905_v7 = vadd.f32 2.220446e-16, %v3830_v37 }
 0xcd6   :  { %v5354_v27 = vpop.eup %5353  ;;  %5369 = vpow2.f32 %v3768_v3  ;;  %v3834_v30 = vsel %vm3708_vm0, %v7290_v25, %v3809_v5  ;;  %v3811_v13 = vmul.f32 0.6931472, %v5352_v46  ;;  %v3928_v25 = vpop.permute.xlu1 %3927  ;;  %vm3714_vm0 = vcmp.gt.f32.partialorder %v7318_v51, 20.0 }
 0xcd7   :  { %v3784_v12 = vadd.f32 1.0, %v5354_v27  ;;  %v3991_v2 = vsel %vm3989_vm11, %v3834_v30, 0.0  ;;  %v4366_v63 = vpack.c.bf16 %v3834_v30, %v3833_v24  ;;  %5371 = vlog2.f32 %v3901_v9 }
 0xcd8   :  { %v5356_v45 = vpop.eup %5355  ;;  %4001 = vadd.xlane.f32.xlu1 %v3991_v2  ;;  %v3835_v31 = vsel %vm3709_vm1, %v7294_v8, %v3811_v13  ;;  %v3832_v49 = vsel %vm3706_vm3, %v7283_v10, %v3805_v17  ;;  %vm3953_vm7 = vcmp.eq.s32.totalorder %v7313_v1, %v3928_v25  ;;  %vm3715_vm1 = vcmp.gt.f32.partialorder %v7323_v50, 20.0 }
 0xcd9   :  { %v5358_v57 = vpop.eup %5357  ;;  %5373 = vlog2.f32 %v3784_v12  ;;  %v3785_v6 = vadd.f32 1.0, %v5356_v45  ;;  %4367 = vst [vmem:[#allocation10] sm:$0xff] %v4366_v63   ;;  %v3992_v36 = vsel %vm3989_vm11, %v3835_v31, 0.0  ;;  %v3907_v42 = vadd.f32 2.220446e-16, %v3832_v49 }
 0xcda   :  { %v5360_v26 = vpop.eup %5359  ;;  %5375 = vlog2.f32 %v3777_v35  ;;  %v3934_v58 = vpop.permute.xlu1 %3933  ;;  %v3795_v60 = vmul.f32 0.6931472, %v5358_v57 }
 0xcdb   :  { %5377 = vlog2.f32 %v3785_v6  ;;  %v5362_v20 = vpop.eup %5361  ;;  %v3909_v47 = vmul.f32 0.6931472, %v5360_v26  ;;  %vm3955_vm9 = vcmp.eq.s32.totalorder %v7313_v1, %v3934_v58 }
 0xcdc   :  { %5379 = vlog2.f32 %v3903_v14  ;;  %4003 = vadd.xlane.f32.xlu1 %v3992_v36  ;;  %v3813_v29 = vmul.f32 0.6931472, %v5362_v20 }
 0xcdd   :  { %v5364_v8 = vpop.eup %5363  ;;  %5381 = vlog2.f32 %v3905_v7  ;;  %v3962_v3 = vsel %vm3953_vm7, %v3909_v47, 0.0 }
 0xcde   :  { %v5366_v23 = vpop.eup %5365  ;;  %v3815_v55 = vmul.f32 0.6931472, %v5364_v8  ;;  %v3836_v61 = vsel %vm3710_vm4, %v7297_v21, %v3813_v29  ;;  %v7356_v21 = vpop.permute.xlu0 %3930 }
 0xcdf   :  { %v5368_v56 = vpop.eup %5367  ;;  %v3786_v53 = vadd.f32 1.0, %v5366_v23  ;;  %v3993_v52 = vsel %vm3989_vm11, %v3836_v61, 0.0  ;;  %v4371_v10 = vpack.c.bf16 %v3836_v61, %v3835_v31  ;;  %v7359_v34 = vpop.permute.xlu1 %3936  ;;  %vm3954_vm3 = vcmp.eq.s32.totalorder %v7313_v1, %v7356_v21 }
 0xce0   :  { %v5370_v24 = vpop.eup %5369  ;;  %v3837_v43 = vsel %vm3711_vm5, %v7301_v41, %v3815_v55  ;;  %4005 = vadd.xlane.f32.xlu0 %v3993_v52  ;;  %v3799_v54 = vmul.f32 0.6931472, %v5368_v56  ;;  %v3827_v41 = vsel %vm3701_vm6, %v7260_v32, %v3795_v60  ;;  %vm3956_vm4 = vcmp.eq.s32.totalorder %v7313_v1, %v7359_v34  ;;  %v7412_v34 = vld [vmem:[%s7500_s1 + $0x8] sm:$0xff] }
 0xce1   :  { %5383 = vlog2.f32 %v3786_v53  ;;  %v3787_v19 = vadd.f32 1.0, %v5370_v24  ;;  %v3994_v15 = vsel %vm3989_vm11, %v3837_v43, 0.0  ;;  %v5372_v38 = vpop.eup %5371  ;;  %4383 = vst [vmem:[#allocation10 + $0x8] sm:$0xff] %v4371_v10   ;;  %v3902_v32 = vadd.f32 2.220446e-16, %v3827_v41 }
 0xce2   :  { %4007 = vadd.xlane.f32.xlu1 %v3994_v15  ;;  %v3913_v5 = vmul.f32 0.6931472, %v5372_v38  ;;  %v3829_v11 = vsel %vm3703_vm8, %v7264_v62, %v3799_v54  ;;  %v3940_v48 = vpop.permute.xlu0 %3939  ;;  %v7403_v54 = vld [vmem:[%s7500_s1] sm:$0xff]  ;;  %vm4080_vm6 = vcmask 23568  }
 0xce3   :  { %v5374_v16 = vpop.eup %5373  ;;  %5385 = vlog2.f32 %v3787_v19  ;;  %v7368_v13 = vpop.permute.xlu1 %3942  ;;  %vm3957_vm14 = vcmp.eq.s32.totalorder %v7313_v1, %v3940_v48  ;;  %v4105_v41 = vsel %vm4080_vm6, %v7403_v54, 0.0  ;;  %v5553_v48 = vld [vmem:[%s7500_s1 + $0x18] sm:$0xff] }
 0xce4   :  { %v5376_v9 = vpop.eup %5375  ;;  %5387 = vlog2.f32 %v3907_v42  ;;  %v3817_v33 = vmul.f32 0.6931472, %v5374_v16  ;;  %v3964_v62 = vsel %vm3955_vm9, %v3913_v5, 0.0  ;;  %v5552_v5 = vld [vmem:[%s7500_s1 + $0x10] sm:$0xff] }
 0xce5   :  { %v5378_v59 = vpop.eup %5377  ;;  %5389 = vlog2.f32 %v3900_v4  ;;  %v3803_v30 = vmul.f32 0.6931472, %v5376_v9  ;;  %v4106_v9 = vsel %vm4080_vm6, %v7412_v34, 0.0 }
 0xce6   :  { %v5380_v46 = vpop.eup %5379  ;;  %3971 = vadd.xlane.f32.xlu1 %v3962_v3  ;;  %v3838_v27 = vsel %vm3712_vm10, %v7304_v18, %v3817_v33  ;;  %v3819_v35 = vmul.f32 0.6931472, %v5378_v59  ;;  %5391 = vlog2.f32 %v3902_v32  ;;  %v3904_v18 = vadd.f32 2.220446e-16, %v3829_v11  ;;  %v3946_v37 = vpop.permute.xlu0 %3945 }
 0xce7   :  { %v3995_v12 = vsel %vm3989_vm11, %v3838_v27, 0.0  ;;  %v4376_v2 = vpack.c.bf16 %v3838_v27, %v3837_v43  ;;  %v5382_v45 = vpop.eup %5381  ;;  %v3917_v14 = vmul.f32 0.6931472, %v5380_v46  ;;  %v3831_v57 = vsel %vm3705_vm13, %v7268_v40, %v3803_v30  ;;  %v3949_v25 = vpop.permute.xlu1 %3948 }
 0xce8   :  { %4009 = vadd.xlane.f32.xlu0 %v3995_v12  ;;  %v3839_v63 = vsel %vm3713_vm12, %v7309_v39, %v3819_v35  ;;  %vm3959_vm15 = vcmp.eq.s32.totalorder %v7313_v1, %v3946_v37  ;;  %v3921_v0 = vmul.f32 0.6931472, %v5382_v45  ;;  %5393 = vlog2.f32 %v3904_v18  ;;  %v5554_v12 = vld [vmem:[%s7500_s1 + $0x20] sm:$0xff]  ;;  %v5555_v18 = vld [vmem:[%s7500_s1 + $0x28] sm:$0xff] }
 0xce9   :  { %4384 = vst [vmem:[#allocation10 + $0x10] sm:$0xff] %v4376_v2   ;;  %v3996_v39 = vsel %vm3989_vm11, %v3839_v63, 0.0  ;;  %v3966_v26 = vsel %vm3957_vm14, %v3917_v14, 0.0  ;;  %v3906_v36 = vadd.f32 2.220446e-16, %v3831_v57  ;;  %vm3960_vm5 = vcmp.eq.s32.totalorder %v7313_v1, %v3949_v25 }
 0xcea   :  { %3975 = vadd.xlane.f32.xlu1 %v3964_v62  ;;  %v3968_v4 = vsel %vm3959_vm15, %v3921_v0, 0.0  ;;  %v4107_v59 = vadd.f32 %v4106_v9, %v4105_v41  ;;  %v4108_v46 = vsel %vm4080_vm6, %v5552_v5, 0.0  ;;  %v4110_v27 = vsel %vm4080_vm6, %v5553_v48, 0.0 }
 0xceb   :  { %v5384_v31 = vpop.eup %5383  ;;  %v3952_v58 = vpop.permute.xlu1 %3951  ;;  %5395 = vlog2.f32 %v3906_v36  ;;  %v4112_v45 = vsel %vm4080_vm6, %v5554_v12, 0.0  ;;  %v4116_v25 = vsel %vm4080_vm6, %v7227_v44, 0.0 }
 0xcec   :  { %4011 = vadd.xlane.f32.xlu0 %v3996_v39  ;;  %v3821_v17 = vmul.f32 0.6931472, %v5384_v31  ;;  %vm3961_vm2 = vcmp.eq.s32.totalorder %v7313_v1, %v3952_v58  ;;  %v4109_v11 = vadd.f32 %v4108_v46, %v4107_v59  ;;  %v4114_v31 = vsel %vm4080_vm6, %v5555_v18, 0.0 }
 0xced   :  { %v5386_v6 = vpop.eup %5385 }
 0xcee   :  { %v5388_v7 = vpop.eup %5387  ;;  %3979 = vadd.xlane.f32.xlu1 %v3966_v26  ;;  %v3840_v20 = vsel %vm3714_vm0, %v7318_v51, %v3821_v17  ;;  %v3823_v40 = vmul.f32 0.6931472, %v5386_v6  ;;  %v4118_v26 = vsel %vm4080_vm6, %v7233_v28, 0.0 }
 0xcef   :  { %v5390_v8 = vpop.eup %5389  ;;  %v3997_v49 = vsel %vm3989_vm11, %v3840_v20, 0.0  ;;  %v4381_v29 = vpack.c.bf16 %v3840_v20, %v3839_v63  ;;  %v3925_v55 = vmul.f32 0.6931472, %v5388_v7  ;;  %v4111_v63 = vadd.f32 %v4110_v27, %v4109_v11 }
 0xcf0   :  { %4013 = vadd.xlane.f32.xlu0 %v3997_v49  ;;  %v3841_v23 = vsel %vm3715_vm1, %v7323_v50, %v3823_v40  ;;  %v3911_v56 = vmul.f32 0.6931472, %v5390_v8  ;;  %v5392_v53 = vpop.eup %5391  ;;  %v4120_v7 = vsel %vm4080_vm6, %v7244_v22, 0.0  ;;  %v5690_v49 = vmov 2  }
 0xcf1   :  { %4385 = vst [vmem:[#allocation10 + $0x18] sm:$0xff] %v4381_v29   ;;  %v4362_v60 = vpack.c.bf16 %v3841_v23, %v3841_v23  ;;  %v3998_v51 = vsel %vm3989_vm11, %v3841_v23, 0.0  ;;  %v3970_v50 = vsel %vm3961_vm2, %v3925_v55, 0.0  ;;  %v3915_v24 = vmul.f32 0.6931472, %v5392_v53  ;;  %4826 = vset.pattern.permute.xlu0 %v5690_v49  ;;  %4827 = vset.pattern.permute.xlu1 %v5690_v49 }
 0xcf2   :  { %3983 = vadd.xlane.f32.xlu1 %v3968_v4  ;;  %v3963_v61 = vsel %vm3954_vm3, %v3911_v56, 0.0  ;;  %v5394_v42 = vpop.eup %5393  ;;  %vm3958_vm11 = vcmp.eq.s32.totalorder %v7313_v1, %v7368_v13  ;;  %v4113_v14 = vadd.f32 %v4112_v45, %v4111_v63 }
 0xcf3   :  { %3887 = vst [vmem:[#allocation10 + $0x20] sm:$0xf] %v4362_v60  ;;  %v3965_v52 = vsel %vm3956_vm4, %v3915_v24, 0.0  ;;  %v3919_v10 = vmul.f32 0.6931472, %v5394_v42 }
 0xcf4   :  { %4015 = vadd.xlane.f32.xlu0 %v3998_v51  ;;  %v4115_v57 = vadd.f32 %v4114_v31, %v4113_v14  ;;  %v5557_v14 = vld [vmem:[%s7500_s1 + $0x38] sm:$0xff] }
 0xcf5   :  { %v5396_v43 = vpop.eup %5395  ;;  %v3967_v19 = vsel %vm3958_vm11, %v3919_v10, 0.0 }
 0xcf6   :  { %3987 = vadd.xlane.f32.xlu1 %v3970_v50  ;;  %v3923_v15 = vmul.f32 0.6931472, %v5396_v43  ;;  %v4117_v17 = vadd.f32 %v4116_v25, %v4115_v57 }
 0xcf8   :  { %3973 = vadd.xlane.f32.xlu0 %v3963_v61  ;;  %v3969_v47 = vsel %vm3960_vm5, %v3923_v15, 0.0  ;;  %v4119_v0 = vadd.f32 %v4118_v26, %v4117_v17 }
 0xcfa   :  { %v4121_v20 = vadd.f32 %v4120_v7, %v4119_v0 }
 0xcfc   :  { %3977 = vadd.xlane.f32.xlu0 %v3965_v52  ;;  %v4122_v8 = vrot.slane %v4121_v20, 4 }
 0xd00   :  { %3981 = vadd.xlane.f32.xlu0 %v3967_v19 }
 0xd04   :  { %3985 = vadd.xlane.f32.xlu0 %v3969_v47 }
 0xd5f   :  { %v4000_v38 = vpop.xlane.xlu0 %3999 }
 0xd60   :  { %v4026_v21 = vmul.f32 %v7403_v54, %v4000_v38 }
 0xd62   :  { %4044 = vrot.lane.b32.xlu0 %v4026_v21, %s5689_s20 }
 0xd65   :  { %v4002_v16 = vpop.xlane.xlu1 %4001 }
 0xd66   :  { %v4027_v33 = vmul.f32 %v7412_v34, %v4002_v16 }
 0xd68   :  { %4046 = vrot.lane.b32.xlu1 %v4027_v33, %s5689_s20 }
 0xd69   :  { %v4004_v3 = vpop.xlane.xlu1 %4003 }
 0xd6a   :  { %v4028_v32 = vmul.f32 %v5552_v5, %v4004_v3 }
 0xd6c   :  { %4048 = vrot.lane.b32.xlu1 %v4028_v32, %s5689_s20 }
 0xd6d   :  { %v4006_v35 = vpop.xlane.xlu0 %4005 }
 0xd6e   :  { %v4029_v30 = vmul.f32 %v5553_v48, %v4006_v35 }
 0xd6f   :  { %v4008_v13 = vpop.xlane.xlu1 %4007 }
 0xd70   :  { %v4030_v2 = vmul.f32 %v5554_v12, %v4008_v13  ;;  %4050 = vrot.lane.b32.xlu0 %v4029_v30, %s5689_s20 }
 0xd72   :  { %4052 = vrot.lane.b32.xlu1 %v4030_v2, %s5689_s20 }
 0xd73   :  { %v3972_v51 = vpop.xlane.xlu1 %3971 }
 0xd74   :  { %v4017_v15 = vmul.f32 %v7403_v54, %v3972_v51 }
 0xd75   :  { %v4010_v62 = vpop.xlane.xlu0 %4009 }
 0xd76   :  { %v4031_v37 = vmul.f32 %v5555_v18, %v4010_v62 }
 0xd77   :  { %v3976_v56 = vpop.xlane.xlu1 %3975 }
 0xd78   :  { %4054 = vrot.lane.b32.xlu0 %v4031_v37, %s5689_s20  ;;  %v4019_v47 = vmul.f32 %v5552_v5, %v3976_v56 }
 0xd79   :  { %v4012_v39 = vpop.xlane.xlu0 %4011 }
 0xd7a   :  { %v4032_v6 = vmul.f32 %v7227_v44, %v4012_v39  ;;  %v4123_v44 = vadd.f32 %v4122_v8, %v4121_v20 }
 0xd7b   :  { %v3980_v53 = vpop.xlane.xlu1 %3979 }
 0xd7c   :  { %4056 = vrot.lane.b32.xlu1 %v4032_v6, %s5689_s20  ;;  %v4124_v23 = vrot.slane %v4123_v44, 2  ;;  %v4021_v46 = vmul.f32 %v5554_v12, %v3980_v53  ;;  %v5558_v6 = vld [vmem:[%s7500_s1 + $0x40] sm:$0xff] }
 0xd7d   :  { %v4014_v36 = vpop.xlane.xlu0 %4013 }
 0xd7e   :  { %v4033_v40 = vmul.f32 %v7233_v28, %v4014_v36  ;;  %v4125_v4 = vadd.f32 %v4124_v23, %v4123_v44 }
 0xd7f   :  { %v3984_v61 = vpop.xlane.xlu1 %3983 }
 0xd80   :  { %4058 = vrot.lane.b32.xlu0 %v4033_v40, %s5689_s20  ;;  %v4126_v60 = vrot.slane %v4125_v4, 1 }
 0xd81   :  { %v4016_v58 = vpop.xlane.xlu0 %4015 }
 0xd82   :  { %v4034_v29 = vmul.f32 %v7244_v22, %v4016_v58  ;;  %v4127_v55 = vadd.f32 %v4126_v60, %v4125_v4 }
 0xd83   :  { %v3988_v42 = vpop.xlane.xlu1 %3987 }
 0xd84   :  { %4060 = vrot.lane.b32.xlu1 %v4034_v29, %s5689_s20  ;;  %4132 = vperm.xlu0 %4826, %v4127_v55   ;;  %v4025_v26 = vmul.f32 %v5558_v6, %v3988_v42 }
 0xd85   :  { %v3974_v28 = vpop.xlane.xlu0 %3973 }
 0xd86   :  { %v4018_v22 = vmul.f32 %v7412_v34, %v3974_v28 }
 0xd89   :  { %v3978_v50 = vpop.xlane.xlu0 %3977 }
 0xd8a   :  { %v4020_v16 = vmul.f32 %v5553_v48, %v3978_v50  ;;  %v5556_v48 = vld [vmem:[%s7500_s1 + $0x30] sm:$0xff]  ;;  %s4148_s1 = sshll.u32 %s5691_s17, 4  ;;  %s4149_s1 = int_to_ptr.vmem [resolvable:$true] %s4148_s1 }
 0xd8b   :  { %v4023_v13 = vmul.f32 %v5556_v48, %v3984_v61  ;;  %s5625_s0 = scalar_lea.vmem %s4149_s1, 576  ;;  %p5630_p11 = scmp.lt.s32.totalorder %s4149_s1, %s4149_s1 }
 0xd8c   :  { %p5626_p10 = scmp.ne.s32.totalorder %s4149_s1, %s5625_s0  ;;  %p5631_p12 = scmp.lt.s32.totalorder %s5625_s0, %s5625_s0 }
 0xd8d   :  { %v3982_v24 = vpop.xlane.xlu0 %3981 }
 0xd8e   :  { %v4022_v35 = vmul.f32 %v5555_v18, %v3982_v24  ;;  %p5632_p13 = por %p5631_p12, %p5630_p11 }
 0xd90   :  { %p5633_p0 = pnand %p5632_p13, %p5626_p10 }
 0xd91   :  { %v3986_v52 = vpop.xlane.xlu0 %3985 }
 0xd92   :  { %v4024_v18 = vmul.f32 %v5557_v14, %v3986_v52 }
 0xdd4   :  { %v4045_v43 = vpop.permute.xlu0 %4044 }
 0xdd5   :  { %v4071_v41 = vsub.f32 %v4017_v15, %v4045_v43 }
 0xdd7   :  { %v4081_v32 = vsel %vm4080_vm6, %v4071_v41, 0.0 }
 0xdda   :  { %v4047_v10 = vpop.permute.xlu1 %4046 }
 0xddb   :  { %v4072_v38 = vsub.f32 %v4018_v22, %v4047_v10 }
 0xddd   :  { %v4082_v33 = vsel %vm4080_vm6, %v4072_v38, 0.0 }
 0xdde   :  { %v4049_v19 = vpop.permute.xlu1 %4048  ;;  %v4083_v27 = vadd.f32 %v4082_v33, %v4081_v32 }
 0xddf   :  { %v4073_v9 = vsub.f32 %v4019_v47, %v4049_v19 }
 0xde1   :  { %v4084_v11 = vsel %vm4080_vm6, %v4073_v9, 0.0 }
 0xde2   :  { %v4051_v21 = vpop.permute.xlu0 %4050  ;;  %v4085_v30 = vadd.f32 %v4084_v11, %v4083_v27 }
 0xde3   :  { %v4074_v59 = vsub.f32 %v4020_v16, %v4051_v21 }
 0xde4   :  { %v4053_v3 = vpop.permute.xlu1 %4052 }
 0xde5   :  { %v4086_v54 = vsel %vm4080_vm6, %v4074_v59, 0.0  ;;  %v4075_v5 = vsub.f32 %v4021_v46, %v4053_v3 }
 0xde6   :  { %v4087_v63 = vadd.f32 %v4086_v54, %v4085_v30 }
 0xde7   :  { %v4088_v12 = vsel %vm4080_vm6, %v4075_v5, 0.0 }
 0xde8   :  { %v4089_v31 = vadd.f32 %v4088_v12, %v4087_v63 }
 0xdea   :  { %v4055_v34 = vpop.permute.xlu0 %4054 }
 0xdeb   :  { %v4076_v2 = vsub.f32 %v4022_v35, %v4055_v34 }
 0xded   :  { %v4090_v37 = vsel %vm4080_vm6, %v4076_v2, 0.0 }
 0xdee   :  { %v4057_v45 = vpop.permute.xlu1 %4056  ;;  %v4091_v17 = vadd.f32 %v4090_v37, %v4089_v31 }
 0xdef   :  { %v4077_v62 = vsub.f32 %v4023_v13, %v4057_v45 }
 0xdf1   :  { %v4092_v25 = vsel %vm4080_vm6, %v4077_v62, 0.0 }
 0xdf2   :  { %v4059_v57 = vpop.permute.xlu0 %4058  ;;  %v4093_v7 = vadd.f32 %v4092_v25, %v4091_v17 }
 0xdf3   :  { %v4078_v39 = vsub.f32 %v4024_v18, %v4059_v57 }
 0xdf5   :  { %v4094_v0 = vsel %vm4080_vm6, %v4078_v39, 0.0 }
 0xdf6   :  { %v4061_v36 = vpop.permute.xlu1 %4060  ;;  %v4095_v40 = vadd.f32 %v4094_v0, %v4093_v7 }
 0xdf7   :  { %v4079_v20 = vsub.f32 %v4025_v26, %v4061_v36 }
 0xdf9   :  { %v4096_v8 = vsel %vm4080_vm6, %v4079_v20, 0.0 }
 0xdfa   :  { %v4097_v58 = vadd.f32 %v4096_v8, %v4095_v40 }
 0xdfc   :  { %v4098_v49 = vrot.slane %v4097_v58, 4 }
 0xdfe   :  { %v4099_v44 = vadd.f32 %v4098_v49, %v4097_v58 }
 0xe00   :  { %v4100_v29 = vrot.slane %v4099_v44, 2 }
 0xe02   :  { %v4101_v23 = vadd.f32 %v4100_v29, %v4099_v44 }
 0xe04   :  { %v4102_v4 = vrot.slane %v4101_v23, 1 }
 0xe06   :  { %v4103_v60 = vadd.f32 %v4102_v4, %v4101_v23 }
 0xe08   :  { %v4104_v55 = vsub.f32 0.0, %v4103_v60 }
 0xe0a   :  { %4138 = vperm.xlu1 %4827, %v4104_v55  }
 0xe0b   :  { %5636 = shalt.err (!%p5633_p0)
}
 0xe0c   :  { %s5637_s3 = scalar_lea.hbm %s7505_s6, 576 }
 0xe0d   :  { %p5638_p1 = scmp.ne.s32.totalorder %s7505_s6, %s5637_s3  ;;  %p5641_p2 = scmp.lt.u32.totalorder %s5637_s3, %s7505_s6 }
 0xe0f   :  { %p5643_p3 = pnand %p5641_p2, %p5638_p1 }
 0xe11   :  { %5646 = shalt.err (!%p5643_p3)
}
 0xe12   :  { %4154 = dma.vmem_to_hbm [thread:$0]  %s4149_s1, 576, %s7505_s6, [#allocation6], %s5681_s2, %s5681_s2, %s5682_s25   ;;  %vm4129_vm7 = vcmp.eq.s32.totalorder %v7313_v1, 1  ;;  %v4133_v51 = vpop.permute.xlu0 %4132  ;;  %vm4128_vm8 = vcmp.eq.s32.totalorder %v7313_v1, 0 }
 0xe13   :  { %s5692_s22 = smov [#allocation11]   ;;  %v4135_v56 = vsel %vm4129_vm7, %v4133_v51, 0.0 }
 0xe14   :  { %s4161_s23 = sshll.u32 %s5692_s22, 4  ;;  %s4162_s23 = int_to_ptr.vmem [resolvable:$true] %s4161_s23 }
 0xe15   :  { %s5647_s24 = scalar_lea.vmem %s4162_s23, 128  ;;  %p5652_p5 = scmp.lt.s32.totalorder %s4162_s23, %s4162_s23 }
 0xe16   :  { %p5648_p4 = scmp.ne.s32.totalorder %s4162_s23, %s5647_s24  ;;  %p5653_p6 = scmp.lt.s32.totalorder %s5647_s24, %s5647_s24 }
 0xe18   :  { %p5654_p7 = por %p5653_p6, %p5652_p5 }
 0xe1a   :  { %p5655_p8 = pnand %p5654_p7, %p5648_p4 }
 0xe89   :  { %v4139_v28 = vpop.permute.xlu1 %4138 }
 0xe8a   :  { %v4141_v53 = vsel %vm4128_vm8, %v4139_v28, %v4135_v56 }
 0xe8b   :  { %4142 = vst [vmem:[#allocation11] sm:$0xff] %v4141_v53 }
 0xe8c   :  { %5658 = shalt.err (!%p5655_p8)
}
 0xe8d   :  { %s5659_s25 = scalar_lea.hbm %s7506_s7, 128 }
 0xe8e   :  { %p5660_p9 = scmp.ne.s32.totalorder %s7506_s7, %s5659_s25  ;;  %p5663_p10 = scmp.lt.u32.totalorder %s5659_s25, %s7506_s7 }
 0xe90   :  { %p5665_p11 = pnand %p5663_p10, %p5660_p9 }
 0xe92   :  { %5668 = shalt.err (!%p5665_p11)
}
 0xe93   :  { %4164 = dma.vmem_to_hbm [thread:$0]  %s4162_s23, 128, %s7506_s7, [#allocation12]  }
 0xe94   :  { %5673 = dma.done.wait [#allocation6], 576  }
 0xe95   :  { %5674 = vsyncadd [#allocation6], 4294966720 }
 0xe96   :  { %5675 = dma.done.wait [#allocation12], 128  }
 0xe97   :  { %5676 = vsyncadd [#allocation12], 4294967168 }
 0xe98   :  { %4171 = vsyncpa [#allocation5], 1 }
 0xe99   :  { %4172 = vsyncpa [#allocation8], 1 }
 0xe9a   :  { %4173 = vsyncpa [#allocation6], 1 }
 0xe9b   :  { %4174 = vsyncpa [#allocation12], 1 }

</bundles_post_ra>
